<compile_context>
chip_gen: v6e
topology: v6e:2x2x1
jax: 0.10.0
libtpu: 0.0.40
codegen_flags: <defaults>
</compile_context>

<pallas_src>
import functools

import jax
import jax.numpy as jnp
from jax.experimental import pallas as pl
from jax.experimental.pallas import tpu as pltpu


def _round_up(x, m):
    return ((x + m - 1) // m) * m


# --------------------------------------------------------------------------
# Fused stem kernel (conv1-matmul + 3x 3x3 convs, intermediates in VMEM)
# --------------------------------------------------------------------------
def _stem_kernel(p1_ref, w1_ref, s1_ref, w2_ref, s2_ref, w3_ref, s3_ref,
                 wp_ref, bp_ref, o_ref, pad_a, pad_b, *, oh, ow):
    bt = p1_ref.shape[0]                    # images per grid step
    m = bt * oh * ow                        # matmul M for every layer
    c = w1_ref.shape[1]                     # hidden dim
    cdt = pad_a.dtype                       # compute dtype (bf16 or f32)

    # ---- conv1 (pre-im2col'd): (M, 49*Cin) @ (49*Cin, C), BN shift, ReLU ----
    p1 = p1_ref[...].reshape(m, p1_ref.shape[-1])
    y = jnp.dot(p1, w1_ref[...], preferred_element_type=jnp.float32)
    y = jnp.maximum(y + s1_ref[...], 0.0)

    # Zero-padded VMEM images for the 3x3 convs (borders must be exact zeros).
    pad_a[...] = jnp.zeros(pad_a.shape, cdt)
    pad_b[...] = jnp.zeros(pad_b.shape, cdt)
    pad_a[:, 1:oh + 1, 1:ow + 1, :] = y.reshape(bt, oh, ow, c).astype(cdt)

    def conv3x3(src_ref, w_ref, shift, relu):
        # One MXU matmul per conv: the 9 shifted windows are merged into the
        # contraction dim (K = 9*C); windows stay in the compute dtype.
        x = src_ref[...]                                    # (bt, oh+2, ow+2, C)
        taps = [x[:, di:di + oh, dj:dj + ow, :]
                for di in range(3) for dj in range(3)]
        p = jnp.concatenate(taps, axis=-1)                  # (bt, oh, ow, 9*C)
        p = p.reshape(m, 9 * x.shape[-1])
        acc = jnp.dot(p, w_ref[...], preferred_element_type=jnp.float32)
        acc = acc + shift                                   # f32 epilogue
        if relu:
            acc = jnp.maximum(acc, 0.0)
        return acc                                          # (M, Cout) f32

    # conv2 -> pad_b, conv3 -> pad_a (reuse: border still zero), proj -> out
    y2 = conv3x3(pad_a, w2_ref, s2_ref[...], True)
    pad_b[:, 1:oh + 1, 1:ow + 1, :] = y2.reshape(bt, oh, ow, c).astype(cdt)

    y3 = conv3x3(pad_b, w3_ref, s3_ref[...], True)
    pad_a[:, 1:oh + 1, 1:ow + 1, :] = y3.reshape(bt, oh, ow, c).astype(cdt)

    yp = conv3x3(pad_a, wp_ref, bp_ref[...], False)         # (M, 128) f32
    # Lane-dense store (last dim padded to 128); wrapper slices to out_channels.
    o_ref[...] = yp.reshape(bt, oh * ow, yp.shape[-1]).astype(o_ref.dtype)


# --------------------------------------------------------------------------
# Wrapper-side helpers
# --------------------------------------------------------------------------
def _im2col_7x7_s2(x_nhwc):
    """(N,H,W,C) -> ((N, OH*OW, 49*C), OH, OW) for the 7x7/s2/p3 conv."""
    x = jnp.pad(x_nhwc, ((0, 0), (3, 3), (3, 3), (0, 0)))
    n, hp, wp, c = x.shape
    oh = (hp - 7) // 2 + 1
    ow = (wp - 7) // 2 + 1
    cols = []
    for i in range(7):
        for j in range(7):
            cols.append(x[:, i:i + 2 * oh:2, j:j + 2 * ow:2, :])
    patches = jnp.concatenate(cols, axis=-1)                # (N, OH, OW, 49*C)
    return patches.reshape(n, oh * ow, 49 * c), oh, ow


def _bn_fold(gamma, beta, mean, var, eps=1e-5):
    scale = gamma / jnp.sqrt(var + eps)
    shift = beta - mean * scale
    return scale, shift


def _fold_conv_weight(w_oihw, scale, dtype):
    """(Cout,Cin,kh,kw) -> (kh*kw*Cin, Cout), BN scale folded, K-order (kh,kw,cin)."""
    cout, cin, kh, kw = w_oihw.shape
    w = jnp.transpose(w_oihw, (2, 3, 1, 0)).reshape(kh * kw * cin, cout)
    return (w * scale[None, :]).astype(dtype)


def _pick_batch_tile(n, pixels, target_rows=512):
    """Largest divisor of n with bt*pixels <= max(target_rows, pixels)."""
    bt = 1
    for cand in range(1, n + 1):
        if n % cand == 0 and cand * pixels <= max(target_rows, pixels):
            bt = cand
    return bt


# --------------------------------------------------------------------------
# Full Stem forward (NCHW in -> NCHW out) — one fused pallas_call
# --------------------------------------------------------------------------
def stem_forward(x_nchw, p, compute_dtype=jnp.bfloat16):
    n = x_nchw.shape[0]
    hidden = p["conv1_w"].shape[0]
    out_ch = p["proj_w"].shape[0]
    cp_out = _round_up(out_ch, 128)                 # lane-dense final store

    x = jnp.transpose(x_nchw, (0, 2, 3, 1))         # NCHW -> NHWC
    patches, oh, ow = _im2col_7x7_s2(x)
    patches = patches.astype(compute_dtype)
    k1 = patches.shape[-1]

    s1, sh1 = _bn_fold(p["bn1_gamma"], p["bn1_beta"], p["bn1_mean"], p["bn1_var"])
    s2, sh2 = _bn_fold(p["bn2_gamma"], p["bn2_beta"], p["bn2_mean"], p["bn2_var"])
    s3, sh3 = _bn_fold(p["bn3_gamma"], p["bn3_beta"], p["bn3_mean"], p["bn3_var"])

    w1 = _fold_conv_weight(p["conv1_w"], s1, compute_dtype)        # (49*Cin, C)
    w2 = _fold_conv_weight(p["conv2_w"], s2, compute_dtype)        # (9*C, C)
    w3 = _fold_conv_weight(p["conv3_w"], s3, compute_dtype)        # (9*C, C)
    ones = jnp.ones((out_ch,), jnp.float32)
    wp = _fold_conv_weight(p["proj_w"], ones, compute_dtype)       # (9*C, out)
    wp = jnp.pad(wp, ((0, 0), (0, cp_out - out_ch)))               # pad N -> 128
    bp = jnp.pad(p["proj_b"], (0, cp_out - out_ch)).reshape(1, cp_out)
    bp = bp.astype(jnp.float32)

    sh1 = sh1.reshape(1, hidden).astype(jnp.float32)
    sh2 = sh2.reshape(1, hidden).astype(jnp.float32)
    sh3 = sh3.reshape(1, hidden).astype(jnp.float32)

    bt = _pick_batch_tile(n, oh * ow)
    grid = (n // bt,)

    out = pl.pallas_call(
        functools.partial(_stem_kernel, oh=oh, ow=ow),
        out_shape=jax.ShapeDtypeStruct((n, oh * ow, cp_out), jnp.float32),
        grid=grid,
        in_specs=[
            pl.BlockSpec((bt, oh * ow, k1), lambda i: (i, 0, 0)),   # conv1 patches
            pl.BlockSpec((k1, hidden), lambda i: (0, 0)),           # w1 (folded)
            pl.BlockSpec((1, hidden), lambda i: (0, 0)),            # BN1 shift
            pl.BlockSpec((9 * hidden, hidden), lambda i: (0, 0)),   # w2 (folded)
            pl.BlockSpec((1, hidden), lambda i: (0, 0)),            # BN2 shift
            pl.BlockSpec((9 * hidden, hidden), lambda i: (0, 0)),   # w3 (folded)
            pl.BlockSpec((1, hidden), lambda i: (0, 0)),            # BN3 shift
            pl.BlockSpec((9 * hidden, cp_out), lambda i: (0, 0)),   # proj w (padded)
            pl.BlockSpec((1, cp_out), lambda i: (0, 0)),            # proj bias (padded)
        ],
        out_specs=pl.BlockSpec((bt, oh * ow, cp_out), lambda i: (i, 0, 0)),
        scratch_shapes=[
            pltpu.VMEM((bt, oh + 2, ow + 2, hidden), compute_dtype),
            pltpu.VMEM((bt, oh + 2, ow + 2, hidden), compute_dtype),
        ],
        compiler_params=pltpu.CompilerParams(
            dimension_semantics=("parallel",),
            allow_input_fusion=[True] + [False] * 8,
        ),
    )(patches, w1, sh1, w2, sh2, w3, sh3, wp, bp)

    out = out[:, :, :out_ch].reshape(n, oh, ow, out_ch)
    return jnp.transpose(out, (0, 3, 1, 2))          # NHWC -> NCHW


# --------------------------------------------------------------------------
# Parameter construction (deterministic, synthetic)
# --------------------------------------------------------------------------
def make_stem_params(key, in_channels, hidden_dim, out_channels):
    ks = jax.random.split(key, 12)
    p = {}
    p["conv1_w"] = 0.1 * jax.random.normal(ks[0], (hidden_dim, in_channels, 7, 7), jnp.float32)
    p["conv2_w"] = 0.1 * jax.random.normal(ks[1], (hidden_dim, hidden_dim, 3, 3), jnp.float32)
    p["conv3_w"] = 0.1 * jax.random.normal(ks[2], (hidden_dim, hidden_dim, 3, 3), jnp.float32)
    p["proj_w"] = 0.1 * jax.random.normal(ks[3], (out_channels, hidden_dim, 3, 3), jnp.float32)
    p["proj_b"] = 0.1 * jax.random.normal(ks[4], (out_channels,), jnp.float32)
    for i, bk in zip((1, 2, 3), (ks[5], ks[6], ks[7])):
        g, b, m, v = jax.random.split(bk, 4)
        p[f"bn{i}_gamma"] = 1.0 + 0.1 * jax.random.normal(g, (hidden_dim,), jnp.float32)
        p[f"bn{i}_beta"] = 0.1 * jax.random.normal(b, (hidden_dim,), jnp.float32)
        p[f"bn{i}_mean"] = 0.1 * jax.random.normal(m, (hidden_dim,), jnp.float32)
        p[f"bn{i}_var"] = 1.0 + 0.5 * jnp.abs(jax.random.normal(v, (hidden_dim,), jnp.float32))
    return p


# --------------------------------------------------------------------------
# Pure-JAX reference (for the correctness check)
# --------------------------------------------------------------------------
def _ref_conv(x_nhwc, w_oihw, stride, pad, bias=None):
    w_hwio = jnp.transpose(w_oihw, (2, 3, 1, 0))
    y = jax.lax.conv_general_dilated(
        x_nhwc, w_hwio, (stride, stride), [(pad, pad), (pad, pad)],
        dimension_numbers=("NHWC", "HWIO", "NHWC"),
        precision=jax.lax.Precision.HIGHEST)
    if bias is not None:
        y = y + bias
    return y


def stem_reference(x_nchw, p):
    x = jnp.transpose(x_nchw, (0, 2, 3, 1))
    for i, (w, stride, pad) in enumerate(
            [(p["conv1_w"], 2, 3), (p["conv2_w"], 1, 1), (p["conv3_w"], 1, 1)], start=1):
        x = _ref_conv(x, w, stride, pad)
        s, b = _bn_fold(p[f"bn{i}_gamma"], p[f"bn{i}_beta"], p[f"bn{i}_mean"], p[f"bn{i}_var"])
        x = jnp.maximum(x * s + b, 0.0)
    x = _ref_conv(x, p["proj_w"], 1, 1, bias=p["proj_b"])
    return jnp.transpose(x, (0, 3, 1, 2))


# --------------------------------------------------------------------------
if __name__ == "__main__":
    key = jax.random.PRNGKey(0)
    k_x, k_p = jax.random.split(key)

    in_channels, hidden_dim, out_channels = 4, 32, 32
    x = jax.random.normal(k_x, (2, in_channels, 16, 16), jnp.float32)   # NCHW

    params = make_stem_params(k_p, in_channels, hidden_dim, out_channels)

    stem_fn = jax.jit(stem_forward, static_argnames=("compute_dtype",))

    # Default (perf) path: bf16 MXU operands, f32 accumulation / epilogue.
    out_bf16 = jax.block_until_ready(stem_fn(x, params, compute_dtype=jnp.bfloat16))
    # Strict path: pure f32 through the same kernel, checked tightly.
    out_f32 = jax.block_until_ready(stem_fn(x, params, compute_dtype=jnp.float32))

    ref = stem_reference(x, params)

    assert out_bf16.shape == (2, out_channels, 8, 8), out_bf16.shape
    err_f32 = float(jnp.max(jnp.abs(out_f32 - ref)))
    err_bf16 = float(jnp.max(jnp.abs(out_bf16 - ref)))
    assert jnp.allclose(out_f32, ref, atol=2e-2, rtol=2e-2), err_f32
    # bf16 operand rounding across 4 chained convs -> relaxed tolerance.
    assert jnp.allclose(out_bf16, ref, atol=3e-1, rtol=1e-1), err_bf16

    print("KERNEL_OK")
</pallas_src>

<mosaic_0001>
module attributes {stable_mosaic.version = 11 : i64} {
  func.func @_stem_kernel(%arg0: i32, %arg1: memref<2x64x196xbf16, #tpu.memory_space<vmem>>, %arg2: memref<196x32xbf16, #tpu.memory_space<vmem>>, %arg3: memref<1x32xf32, #tpu.memory_space<vmem>>, %arg4: memref<288x32xbf16, #tpu.memory_space<vmem>>, %arg5: memref<1x32xf32, #tpu.memory_space<vmem>>, %arg6: memref<288x32xbf16, #tpu.memory_space<vmem>>, %arg7: memref<1x32xf32, #tpu.memory_space<vmem>>, %arg8: memref<288x128xbf16, #tpu.memory_space<vmem>>, %arg9: memref<1x128xf32, #tpu.memory_space<vmem>>, %arg10: memref<2x64x128xf32, #tpu.memory_space<vmem>>, %arg11: memref<2x10x10x32xbf16, #tpu.memory_space<vmem>>, %arg12: memref<2x10x10x32xbf16, #tpu.memory_space<vmem>>) attributes {dimension_semantics = [#tpu.dimension_semantics<parallel>], iteration_bounds = array<i64: 1>, scalar_prefetch = 0 : i64, scratch_operands = 2 : i64, tpu.core_type = #tpu.core_type<tc>, window_params = [{transform_indices = @transform_0, window_bounds = array<i64: 2, 64, 196>}, {pipeline_mode = #tpu.pipeline_mode<synchronous>, transform_indices = @transform_1, window_bounds = array<i64: 196, 32>}, {pipeline_mode = #tpu.pipeline_mode<synchronous>, transform_indices = @transform_2, window_bounds = array<i64: 1, 32>}, {pipeline_mode = #tpu.pipeline_mode<synchronous>, transform_indices = @transform_3, window_bounds = array<i64: 288, 32>}, {pipeline_mode = #tpu.pipeline_mode<synchronous>, transform_indices = @transform_4, window_bounds = array<i64: 1, 32>}, {pipeline_mode = #tpu.pipeline_mode<synchronous>, transform_indices = @transform_5, window_bounds = array<i64: 288, 32>}, {pipeline_mode = #tpu.pipeline_mode<synchronous>, transform_indices = @transform_6, window_bounds = array<i64: 1, 32>}, {pipeline_mode = #tpu.pipeline_mode<synchronous>, transform_indices = @transform_7, window_bounds = array<i64: 288, 128>}, {pipeline_mode = #tpu.pipeline_mode<synchronous>, transform_indices = @transform_8, window_bounds = array<i64: 1, 128>}, {transform_indices = @transform_9, window_bounds = array<i64: 2, 64, 128>}]} {
    %c0 = arith.constant 0 : index
    %c0_0 = arith.constant 0 : index
    %c0_1 = arith.constant 0 : index
    %0 = vector.load %arg1[%c0, %c0_0, %c0_1] : memref<2x64x196xbf16, #tpu.memory_space<vmem>>, vector<2x64x196xbf16>
    %1 = vector.shape_cast %0 : vector<2x64x196xbf16> to vector<128x196xbf16>
    %c0_2 = arith.constant 0 : index
    %c0_3 = arith.constant 0 : index
    %2 = vector.load %arg2[%c0_2, %c0_3] : memref<196x32xbf16, #tpu.memory_space<vmem>>, vector<196x32xbf16>
    %cst = arith.constant dense<0.000000e+00> : vector<128x32xf32>
    %3 = tpu.matmul %1, %2, %cst {dimension_numbers = #tpu.dot_dimension_numbers<[1], [0], [0], [1], [0, 0, 1, 1], [], []>} : vector<128x196xbf16>, vector<196x32xbf16>, vector<128x32xf32> -> vector<128x32xf32>
    %c0_4 = arith.constant 0 : index
    %c0_5 = arith.constant 0 : index
    %4 = vector.load %arg3[%c0_4, %c0_5] : memref<1x32xf32, #tpu.memory_space<vmem>>, vector<1x32xf32>
    %5 = vector.broadcast %4 : vector<1x32xf32> to vector<128x32xf32>
    %6 = arith.addf %3, %5 : vector<128x32xf32>
    %cst_6 = arith.constant 0.000000e+00 : f32
    %7 = vector.broadcast %cst_6 : f32 to vector<128x32xf32>
    %8 = arith.maximumf %6, %7 : vector<128x32xf32>
    %cst_7 = arith.constant 0.000000e+00 : bf16
    %9 = vector.broadcast %cst_7 : bf16 to vector<2x10x10x32xbf16>
    %c0_8 = arith.constant 0 : index
    %c0_9 = arith.constant 0 : index
    %c0_10 = arith.constant 0 : index
    %c0_11 = arith.constant 0 : index
    %10 = vector.load %arg11[%c0_8, %c0_9, %c0_10, %c0_11] : memref<2x10x10x32xbf16, #tpu.memory_space<vmem>>, vector<2x10x10x32xbf16>
    tpu.vector_store %arg11[%c0_8, %c0_9, %c0_10, %c0_11], %9 {strides = array<i32>} : memref<2x10x10x32xbf16, #tpu.memory_space<vmem>>, vector<2x10x10x32xbf16>,
    %cst_12 = arith.constant 0.000000e+00 : bf16
    %11 = vector.broadcast %cst_12 : bf16 to vector<2x10x10x32xbf16>
    %c0_13 = arith.constant 0 : index
    %c0_14 = arith.constant 0 : index
    %c0_15 = arith.constant 0 : index
    %c0_16 = arith.constant 0 : index
    %12 = vector.load %arg12[%c0_13, %c0_14, %c0_15, %c0_16] : memref<2x10x10x32xbf16, #tpu.memory_space<vmem>>, vector<2x10x10x32xbf16>
    tpu.vector_store %arg12[%c0_13, %c0_14, %c0_15, %c0_16], %11 {strides = array<i32>} : memref<2x10x10x32xbf16, #tpu.memory_space<vmem>>, vector<2x10x10x32xbf16>,
    %13 = vector.shape_cast %8 : vector<128x32xf32> to vector<2x8x8x32xf32>
    %14 = arith.truncf %13 : vector<2x8x8x32xf32> to vector<2x8x8x32xbf16>
    %c0_17 = arith.constant 0 : index
    %c1 = arith.constant 1 : index
    %c1_18 = arith.constant 1 : index
    %c0_19 = arith.constant 0 : index
    %15 = vector.load %arg11[%c0_17, %c1, %c1_18, %c0_19] : memref<2x10x10x32xbf16, #tpu.memory_space<vmem>>, vector<2x8x8x32xbf16>
    tpu.vector_store %arg11[%c0_17, %c1, %c1_18, %c0_19], %14 {strides = array<i32>} : memref<2x10x10x32xbf16, #tpu.memory_space<vmem>>, vector<2x8x8x32xbf16>,
    %c0_20 = arith.constant 0 : index
    %c0_21 = arith.constant 0 : index
    %16 = vector.load %arg5[%c0_20, %c0_21] : memref<1x32xf32, #tpu.memory_space<vmem>>, vector<1x32xf32>
    %c0_22 = arith.constant 0 : index
    %c0_23 = arith.constant 0 : index
    %c0_24 = arith.constant 0 : index
    %c0_25 = arith.constant 0 : index
    %17 = vector.load %arg11[%c0_22, %c0_23, %c0_24, %c0_25] : memref<2x10x10x32xbf16, #tpu.memory_space<vmem>>, vector<2x10x10x32xbf16>
    %18 = vector.extract_strided_slice %17 {offsets = [0, 0, 0, 0], sizes = [2, 8, 8, 32], strides = [1, 1, 1, 1]} : vector<2x10x10x32xbf16> to vector<2x8x8x32xbf16>
    %19 = vector.extract_strided_slice %17 {offsets = [0, 0, 1, 0], sizes = [2, 8, 8, 32], strides = [1, 1, 1, 1]} : vector<2x10x10x32xbf16> to vector<2x8x8x32xbf16>
    %20 = vector.extract_strided_slice %17 {offsets = [0, 0, 2, 0], sizes = [2, 8, 8, 32], strides = [1, 1, 1, 1]} : vector<2x10x10x32xbf16> to vector<2x8x8x32xbf16>
    %21 = vector.extract_strided_slice %17 {offsets = [0, 1, 0, 0], sizes = [2, 8, 8, 32], strides = [1, 1, 1, 1]} : vector<2x10x10x32xbf16> to vector<2x8x8x32xbf16>
    %22 = vector.extract_strided_slice %17 {offsets = [0, 1, 1, 0], sizes = [2, 8, 8, 32], strides = [1, 1, 1, 1]} : vector<2x10x10x32xbf16> to vector<2x8x8x32xbf16>
    %23 = vector.extract_strided_slice %17 {offsets = [0, 1, 2, 0], sizes = [2, 8, 8, 32], strides = [1, 1, 1, 1]} : vector<2x10x10x32xbf16> to vector<2x8x8x32xbf16>
    %24 = vector.extract_strided_slice %17 {offsets = [0, 2, 0, 0], sizes = [2, 8, 8, 32], strides = [1, 1, 1, 1]} : vector<2x10x10x32xbf16> to vector<2x8x8x32xbf16>
    %25 = vector.extract_strided_slice %17 {offsets = [0, 2, 1, 0], sizes = [2, 8, 8, 32], strides = [1, 1, 1, 1]} : vector<2x10x10x32xbf16> to vector<2x8x8x32xbf16>
    %26 = vector.extract_strided_slice %17 {offsets = [0, 2, 2, 0], sizes = [2, 8, 8, 32], strides = [1, 1, 1, 1]} : vector<2x10x10x32xbf16> to vector<2x8x8x32xbf16>
    %27 = tpu.concatenate %18, %19, %20, %21, %22, %23, %24, %25, %26 in 3 : vector<2x8x8x32xbf16>, vector<2x8x8x32xbf16>, vector<2x8x8x32xbf16>, vector<2x8x8x32xbf16>, vector<2x8x8x32xbf16>, vector<2x8x8x32xbf16>, vector<2x8x8x32xbf16>, vector<2x8x8x32xbf16>, vector<2x8x8x32xbf16> -> vector<2x8x8x288xbf16>
    %28 = vector.shape_cast %27 : vector<2x8x8x288xbf16> to vector<128x288xbf16>
    %c0_26 = arith.constant 0 : index
    %c0_27 = arith.constant 0 : index
    %29 = vector.load %arg4[%c0_26, %c0_27] : memref<288x32xbf16, #tpu.memory_space<vmem>>, vector<288x32xbf16>
    %cst_28 = arith.constant dense<0.000000e+00> : vector<128x32xf32>
    %30 = tpu.matmul %28, %29, %cst_28 {dimension_numbers = #tpu.dot_dimension_numbers<[1], [0], [0], [1], [0, 0, 1, 1], [], []>} : vector<128x288xbf16>, vector<288x32xbf16>, vector<128x32xf32> -> vector<128x32xf32>
    %31 = vector.broadcast %16 : vector<1x32xf32> to vector<128x32xf32>
    %32 = arith.addf %30, %31 : vector<128x32xf32>
    %cst_29 = arith.constant 0.000000e+00 : f32
    %33 = vector.broadcast %cst_29 : f32 to vector<128x32xf32>
    %34 = arith.maximumf %32, %33 : vector<128x32xf32>
    %35 = vector.shape_cast %34 : vector<128x32xf32> to vector<2x8x8x32xf32>
    %36 = arith.truncf %35 : vector<2x8x8x32xf32> to vector<2x8x8x32xbf16>
    %c0_30 = arith.constant 0 : index
    %c1_31 = arith.constant 1 : index
    %c1_32 = arith.constant 1 : index
    %c0_33 = arith.constant 0 : index
    %37 = vector.load %arg12[%c0_30, %c1_31, %c1_32, %c0_33] : memref<2x10x10x32xbf16, #tpu.memory_space<vmem>>, vector<2x8x8x32xbf16>
    tpu.vector_store %arg12[%c0_30, %c1_31, %c1_32, %c0_33], %36 {strides = array<i32>} : memref<2x10x10x32xbf16, #tpu.memory_space<vmem>>, vector<2x8x8x32xbf16>,
    %c0_34 = arith.constant 0 : index
    %c0_35 = arith.constant 0 : index
    %38 = vector.load %arg7[%c0_34, %c0_35] : memref<1x32xf32, #tpu.memory_space<vmem>>, vector<1x32xf32>
    %c0_36 = arith.constant 0 : index
    %c0_37 = arith.constant 0 : index
    %c0_38 = arith.constant 0 : index
    %c0_39 = arith.constant 0 : index
    %39 = vector.load %arg12[%c0_36, %c0_37, %c0_38, %c0_39] : memref<2x10x10x32xbf16, #tpu.memory_space<vmem>>, vector<2x10x10x32xbf16>
    %40 = vector.extract_strided_slice %39 {offsets = [0, 0, 0, 0], sizes = [2, 8, 8, 32], strides = [1, 1, 1, 1]} : vector<2x10x10x32xbf16> to vector<2x8x8x32xbf16>
    %41 = vector.extract_strided_slice %39 {offsets = [0, 0, 1, 0], sizes = [2, 8, 8, 32], strides = [1, 1, 1, 1]} : vector<2x10x10x32xbf16> to vector<2x8x8x32xbf16>
    %42 = vector.extract_strided_slice %39 {offsets = [0, 0, 2, 0], sizes = [2, 8, 8, 32], strides = [1, 1, 1, 1]} : vector<2x10x10x32xbf16> to vector<2x8x8x32xbf16>
    %43 = vector.extract_strided_slice %39 {offsets = [0, 1, 0, 0], sizes = [2, 8, 8, 32], strides = [1, 1, 1, 1]} : vector<2x10x10x32xbf16> to vector<2x8x8x32xbf16>
    %44 = vector.extract_strided_slice %39 {offsets = [0, 1, 1, 0], sizes = [2, 8, 8, 32], strides = [1, 1, 1, 1]} : vector<2x10x10x32xbf16> to vector<2x8x8x32xbf16>
    %45 = vector.extract_strided_slice %39 {offsets = [0, 1, 2, 0], sizes = [2, 8, 8, 32], strides = [1, 1, 1, 1]} : vector<2x10x10x32xbf16> to vector<2x8x8x32xbf16>
    %46 = vector.extract_strided_slice %39 {offsets = [0, 2, 0, 0], sizes = [2, 8, 8, 32], strides = [1, 1, 1, 1]} : vector<2x10x10x32xbf16> to vector<2x8x8x32xbf16>
    %47 = vector.extract_strided_slice %39 {offsets = [0, 2, 1, 0], sizes = [2, 8, 8, 32], strides = [1, 1, 1, 1]} : vector<2x10x10x32xbf16> to vector<2x8x8x32xbf16>
    %48 = vector.extract_strided_slice %39 {offsets = [0, 2, 2, 0], sizes = [2, 8, 8, 32], strides = [1, 1, 1, 1]} : vector<2x10x10x32xbf16> to vector<2x8x8x32xbf16>
    %49 = tpu.concatenate %40, %41, %42, %43, %44, %45, %46, %47, %48 in 3 : vector<2x8x8x32xbf16>, vector<2x8x8x32xbf16>, vector<2x8x8x32xbf16>, vector<2x8x8x32xbf16>, vector<2x8x8x32xbf16>, vector<2x8x8x32xbf16>, vector<2x8x8x32xbf16>, vector<2x8x8x32xbf16>, vector<2x8x8x32xbf16> -> vector<2x8x8x288xbf16>
    %50 = vector.shape_cast %49 : vector<2x8x8x288xbf16> to vector<128x288xbf16>
    %c0_40 = arith.constant 0 : index
    %c0_41 = arith.constant 0 : index
    %51 = vector.load %arg6[%c0_40, %c0_41] : memref<288x32xbf16, #tpu.memory_space<vmem>>, vector<288x32xbf16>
    %cst_42 = arith.constant dense<0.000000e+00> : vector<128x32xf32>
    %52 = tpu.matmul %50, %51, %cst_42 {dimension_numbers = #tpu.dot_dimension_numbers<[1], [0], [0], [1], [0, 0, 1, 1], [], []>} : vector<128x288xbf16>, vector<288x32xbf16>, vector<128x32xf32> -> vector<128x32xf32>
    %53 = vector.broadcast %38 : vector<1x32xf32> to vector<128x32xf32>
    %54 = arith.addf %52, %53 : vector<128x32xf32>
    %cst_43 = arith.constant 0.000000e+00 : f32
    %55 = vector.broadcast %cst_43 : f32 to vector<128x32xf32>
    %56 = arith.maximumf %54, %55 : vector<128x32xf32>
    %57 = vector.shape_cast %56 : vector<128x32xf32> to vector<2x8x8x32xf32>
    %58 = arith.truncf %57 : vector<2x8x8x32xf32> to vector<2x8x8x32xbf16>
    %c0_44 = arith.constant 0 : index
    %c1_45 = arith.constant 1 : index
    %c1_46 = arith.constant 1 : index
    %c0_47 = arith.constant 0 : index
    %59 = vector.load %arg11[%c0_44, %c1_45, %c1_46, %c0_47] : memref<2x10x10x32xbf16, #tpu.memory_space<vmem>>, vector<2x8x8x32xbf16>
    tpu.vector_store %arg11[%c0_44, %c1_45, %c1_46, %c0_47], %58 {strides = array<i32>} : memref<2x10x10x32xbf16, #tpu.memory_space<vmem>>, vector<2x8x8x32xbf16>,
    %c0_48 = arith.constant 0 : index
    %c0_49 = arith.constant 0 : index
    %60 = vector.load %arg9[%c0_48, %c0_49] : memref<1x128xf32, #tpu.memory_space<vmem>>, vector<1x128xf32>
    %c0_50 = arith.constant 0 : index
    %c0_51 = arith.constant 0 : index
    %c0_52 = arith.constant 0 : index
    %c0_53 = arith.constant 0 : index
    %61 = vector.load %arg11[%c0_50, %c0_51, %c0_52, %c0_53] : memref<2x10x10x32xbf16, #tpu.memory_space<vmem>>, vector<2x10x10x32xbf16>
    %62 = vector.extract_strided_slice %61 {offsets = [0, 0, 0, 0], sizes = [2, 8, 8, 32], strides = [1, 1, 1, 1]} : vector<2x10x10x32xbf16> to vector<2x8x8x32xbf16>
    %63 = vector.extract_strided_slice %61 {offsets = [0, 0, 1, 0], sizes = [2, 8, 8, 32], strides = [1, 1, 1, 1]} : vector<2x10x10x32xbf16> to vector<2x8x8x32xbf16>
    %64 = vector.extract_strided_slice %61 {offsets = [0, 0, 2, 0], sizes = [2, 8, 8, 32], strides = [1, 1, 1, 1]} : vector<2x10x10x32xbf16> to vector<2x8x8x32xbf16>
    %65 = vector.extract_strided_slice %61 {offsets = [0, 1, 0, 0], sizes = [2, 8, 8, 32], strides = [1, 1, 1, 1]} : vector<2x10x10x32xbf16> to vector<2x8x8x32xbf16>
    %66 = vector.extract_strided_slice %61 {offsets = [0, 1, 1, 0], sizes = [2, 8, 8, 32], strides = [1, 1, 1, 1]} : vector<2x10x10x32xbf16> to vector<2x8x8x32xbf16>
    %67 = vector.extract_strided_slice %61 {offsets = [0, 1, 2, 0], sizes = [2, 8, 8, 32], strides = [1, 1, 1, 1]} : vector<2x10x10x32xbf16> to vector<2x8x8x32xbf16>
    %68 = vector.extract_strided_slice %61 {offsets = [0, 2, 0, 0], sizes = [2, 8, 8, 32], strides = [1, 1, 1, 1]} : vector<2x10x10x32xbf16> to vector<2x8x8x32xbf16>
    %69 = vector.extract_strided_slice %61 {offsets = [0, 2, 1, 0], sizes = [2, 8, 8, 32], strides = [1, 1, 1, 1]} : vector<2x10x10x32xbf16> to vector<2x8x8x32xbf16>
    %70 = vector.extract_strided_slice %61 {offsets = [0, 2, 2, 0], sizes = [2, 8, 8, 32], strides = [1, 1, 1, 1]} : vector<2x10x10x32xbf16> to vector<2x8x8x32xbf16>
    %71 = tpu.concatenate %62, %63, %64, %65, %66, %67, %68, %69, %70 in 3 : vector<2x8x8x32xbf16>, vector<2x8x8x32xbf16>, vector<2x8x8x32xbf16>, vector<2x8x8x32xbf16>, vector<2x8x8x32xbf16>, vector<2x8x8x32xbf16>, vector<2x8x8x32xbf16>, vector<2x8x8x32xbf16>, vector<2x8x8x32xbf16> -> vector<2x8x8x288xbf16>
    %72 = vector.shape_cast %71 : vector<2x8x8x288xbf16> to vector<128x288xbf16>
    %c0_54 = arith.constant 0 : index
    %c0_55 = arith.constant 0 : index
    %73 = vector.load %arg8[%c0_54, %c0_55] : memref<288x128xbf16, #tpu.memory_space<vmem>>, vector<288x128xbf16>
    %cst_56 = arith.constant dense<0.000000e+00> : vector<128x128xf32>
    %74 = tpu.matmul %72, %73, %cst_56 {dimension_numbers = #tpu.dot_dimension_numbers<[1], [0], [0], [1], [0, 0, 1, 1], [], []>} : vector<128x288xbf16>, vector<288x128xbf16>, vector<128x128xf32> -> vector<128x128xf32>
    %75 = vector.broadcast %60 : vector<1x128xf32> to vector<128x128xf32>
    %76 = arith.addf %74, %75 : vector<128x128xf32>
    %77 = vector.shape_cast %76 : vector<128x128xf32> to vector<2x64x128xf32>
    %c0_57 = arith.constant 0 : index
    %c0_58 = arith.constant 0 : index
    %c0_59 = arith.constant 0 : index
    %78 = vector.load %arg10[%c0_57, %c0_58, %c0_59] : memref<2x64x128xf32, #tpu.memory_space<vmem>>, vector<2x64x128xf32>
    tpu.vector_store %arg10[%c0_57, %c0_58, %c0_59], %77 {strides = array<i32>} : memref<2x64x128xf32, #tpu.memory_space<vmem>>, vector<2x64x128xf32>,
    return
  }
  func.func @transform_0(%arg0: i32) -> (i32, i32, i32) {
    %c0_i32 = arith.constant 0 : i32
    %c0_i32_0 = arith.constant 0 : i32
    %c0_i32_1 = arith.constant 0 : i32
    return %arg0, %c0_i32, %c0_i32_0 : i32, i32, i32
  }
  func.func @transform_1(%arg0: i32) -> (i32, i32) {
    %c0_i32 = arith.constant 0 : i32
    %c0_i32_0 = arith.constant 0 : i32
    %c0_i32_1 = arith.constant 0 : i32
    return %c0_i32, %c0_i32_0 : i32, i32
  }
  func.func @transform_2(%arg0: i32) -> (i32, i32) {
    %c0_i32 = arith.constant 0 : i32
    %c0_i32_0 = arith.constant 0 : i32
    %c0_i32_1 = arith.constant 0 : i32
    return %c0_i32, %c0_i32_0 : i32, i32
  }
  func.func @transform_3(%arg0: i32) -> (i32, i32) {
    %c0_i32 = arith.constant 0 : i32
    %c0_i32_0 = arith.constant 0 : i32
    %c0_i32_1 = arith.constant 0 : i32
    return %c0_i32, %c0_i32_0 : i32, i32
  }
  func.func @transform_4(%arg0: i32) -> (i32, i32) {
    %c0_i32 = arith.constant 0 : i32
    %c0_i32_0 = arith.constant 0 : i32
    %c0_i32_1 = arith.constant 0 : i32
    return %c0_i32, %c0_i32_0 : i32, i32
  }
  func.func @transform_5(%arg0: i32) -> (i32, i32) {
    %c0_i32 = arith.constant 0 : i32
    %c0_i32_0 = arith.constant 0 : i32
    %c0_i32_1 = arith.constant 0 : i32
    return %c0_i32, %c0_i32_0 : i32, i32
  }
  func.func @transform_6(%arg0: i32) -> (i32, i32) {
    %c0_i32 = arith.constant 0 : i32
    %c0_i32_0 = arith.constant 0 : i32
    %c0_i32_1 = arith.constant 0 : i32
    return %c0_i32, %c0_i32_0 : i32, i32
  }
  func.func @transform_7(%arg0: i32) -> (i32, i32) {
    %c0_i32 = arith.constant 0 : i32
    %c0_i32_0 = arith.constant 0 : i32
    %c0_i32_1 = arith.constant 0 : i32
    return %c0_i32, %c0_i32_0 : i32, i32
  }
  func.func @transform_8(%arg0: i32) -> (i32, i32) {
    %c0_i32 = arith.constant 0 : i32
    %c0_i32_0 = arith.constant 0 : i32
    %c0_i32_1 = arith.constant 0 : i32
    return %c0_i32, %c0_i32_0 : i32, i32
  }
  func.func @transform_9(%arg0: i32) -> (i32, i32, i32) {
    %c0_i32 = arith.constant 0 : i32
    %c0_i32_0 = arith.constant 0 : i32
    %c0_i32_1 = arith.constant 0 : i32
    return %arg0, %c0_i32, %c0_i32_0 : i32, i32, i32
  }
}

</mosaic_0001>

<bundles_post_ra>
// kernel: stem_forward.2
= control target key start
LH: loop header
LB: loop body
LE: loop exit
PB: predicated region body
PF: predicated region fallthrough
CT: control target
= control target key end

     0   :  { %v6456_v1 = vmov 0   ;;  %vm514_vm0 = vcmask 556032   ;;  %vm539_vm1 = vcmask 1041408   ;;  %vm656_vm2 = vcmask 257024   ;;  %s6458_s24 = smov 32   ;;  %s6459_s25 = smov 96   ;;  %s9051_s0 = inlined_call_operand.vmem [shape: bf16[196,32], index: 0, kind: input, shape index: {}]   ;;  %s9052_s1 = inlined_call_operand.vmem [shape: f32[1,32], index: 1, kind: input, shape index: {}]   ;;  %s9053_s2 = inlined_call_operand.vmem [shape: bf16[288,32], index: 2, kind: input, shape index: {}]   ;;  %s9054_s3 = inlined_call_operand.vmem [shape: f32[1,32], index: 3, kind: input, shape index: {}]   ;;  %s9055_s4 = inlined_call_operand.vmem [shape: bf16[288,32], index: 4, kind: input, shape index: {}]   ;;  %s9056_s5 = inlined_call_operand.vmem [shape: f32[1,32], index: 5, kind: input, shape index: {}]   ;;  %s9057_s6 = inlined_call_operand.vmem [shape: bf16[288,128], index: 6, kind: input, shape index: {}]   ;;  %s9058_s7 = inlined_call_operand.vmem [shape: f32[1,128], index: 7, kind: input, shape index: {}]   ;;  %s9059_s8 = inlined_call_operand.vmem [shape: bf16[2,8,8,196], index: 8, kind: input, shape index: {}]   ;;  %s9060_s9 = inlined_call_operand.vmem [shape: f32[2,64,128], index: 9, kind: output, shape index: {}]  }
   0x1   :  { %v6238_v0 = vld [vmem:[%s9051_s0 + $0x38] sm:$0xff]   ;;  %543 = vmatprep.subr.bf16.mxu0 %v6456_v1  ;;  %v6239_v2 = vld [vmem:[%s9051_s0 + $0x30] sm:$0xff]   ;;  %v6240_v3 = vld [vmem:[%s9051_s0 + $0x28] sm:$0xff]   ;;  %660 = vst.msk [vmem:[#allocation2 + $0x8] sm:$0xf] %vm656_vm2, %v6456_v1  ;;  %vm658_vm3 = vcmask 253952  }
   0x2   :  { %544 = vmatpush1.bf16.msra.mxu0 %v6238_v0  ;;  %v6241_v4 = vld [vmem:[%s9051_s0 + $0x20] sm:$0xff]   ;;  %v6242_v5 = vld [vmem:[%s9051_s0 + $0x18] sm:$0xff]   ;;  %v6251_v7 = vld [vmem:[%s9059_s8 + $0x8] sm:$0xff]   ;;  %657 = vst.msk [vmem:[#allocation2] sm:$0xf] %vm656_vm2, %v6456_v1  ;;  %vm1576_vm8 = vcmask 261120  }
   0x3   :  { %545 = vmatprep.subr.bf16.mxu0 %v6456_v1  ;;  %v32_v6 = vld [vmem:[%s9059_s8] sm:$0xff]   ;;  %v6252_v8 = vld [vmem:[%s9059_s8 + $0x10] sm:$0xff]   ;;  %v6253_v9 = vld [vmem:[%s9059_s8 + $0x18] sm:$0xff]   ;;  %662 = vst.msk [vmem:[#allocation2 + $0x10] sm:$0xf] %vm656_vm2, %v6456_v1  ;;  %vm1625_vm9 = vcmask 523264  }
   0x4   :  { %38 = vst [vmem:[#allocation4] sm:$0xff] %v32_v6   ;;  %v6243_v10 = vld [vmem:[%s9051_s0 + $0x10] sm:$0xff]   ;;  %v6256_v11 = vld [vmem:[%s9059_s8 + $0x20] sm:$0xff]   ;;  %v6257_v12 = vld [vmem:[%s9059_s8 + $0x28] sm:$0xff]   ;;  %v5465_v39 = vcombine.high %v6252_v8, %v6253_v9  ;;  %v5464_v40 = vcombine.low %v6252_v8, %v6253_v9  ;;  %vm964_vm4 = vsmask.f32 7938 }
   0x5   :  { %v6260_v13 = vld [vmem:[%s9059_s8 + $0x30] sm:$0xff]   ;;  %v6261_v14 = vld [vmem:[%s9059_s8 + $0x38] sm:$0xff]   ;;  %v6244_v15 = vld [vmem:[%s9051_s0 + $0x8] sm:$0xff]   ;;  %v5467_v41 = vcombine.high %v6256_v11, %v6257_v12  ;;  %v5466_v42 = vcombine.low %v6256_v11, %v6257_v12  ;;  %664 = vst.msk [vmem:[#allocation2 + $0x18] sm:$0xf] %vm656_vm2, %v6456_v1  ;;  %vm1658_vm10 = vcmask 785408  }
   0x6   :  { %546 = vmatpush1.bf16.msra.mxu0 %v6239_v2  ;;  %v6264_v18 = vld [vmem:[%s9059_s8 + $0x40] sm:$0xff]   ;;  %v6265_v20 = vld [vmem:[%s9059_s8 + $0x48] sm:$0xff]   ;;  %v6268_v21 = vld [vmem:[%s9059_s8 + $0x50] sm:$0xff]   ;;  %v5469_v43 = vcombine.high %v6260_v13, %v6261_v14  ;;  %v5468_v44 = vcombine.low %v6260_v13, %v6261_v14  ;;  %666 = vst.msk [vmem:[#allocation2 + $0x20] sm:$0xf] %vm656_vm2, %v6456_v1 }
   0x7   :  { %547 = vmatprep.subr.bf16.mxu0 %v6456_v1  ;;  %v6246_v19 = vld [vmem:[%s9051_s0 + $0x60] ss:$0 sps:$4 sm:$0x33]   ;;  %v6269_v23 = vld [vmem:[%s9059_s8 + $0x58] sm:$0xff]   ;;  %v6273_v26 = vld [vmem:[%s9059_s8 + $0x68] sm:$0xff]   ;;  %v5471_v45 = vcombine.high %v6264_v18, %v6265_v20  ;;  %v5470_v46 = vcombine.low %v6264_v18, %v6265_v20 }
   0x8   :  { %v6245_v22 = vld [vmem:[%s9051_s0] sm:$0xff]   ;;  %v5472_v25 = vcombine.low %v6268_v21, %v6269_v23  ;;  %v6276_v27 = vld [vmem:[%s9059_s8 + $0x70] sm:$0xff]   ;;  %v541_v28 = vsel %vm539_vm1, %v6246_v19, 0  ;;  %v6277_v31 = vld [vmem:[%s9059_s8 + $0x78] sm:$0xff]   ;;  %v5473_v47 = vcombine.high %v6268_v21, %v6269_v23  ;;  %668 = vst.msk [vmem:[#allocation2 + $0x28] sm:$0xf] %vm656_vm2, %v6456_v1 }
   0x9   :  { %v6272_v24 = vld [vmem:[%s9059_s8 + $0x60] sm:$0xff]   ;;  %v5477_v32 = vcombine.high %v6276_v27, %v6277_v31  ;;  %v5476_v33 = vcombine.low %v6276_v27, %v6277_v31  ;;  %v6247_v34 = vld [vmem:[%s9051_s0 + $0x58] sm:$0xff]   ;;  %v6248_v35 = vld [vmem:[%s9051_s0 + $0x50] sm:$0xff]   ;;  %670 = vst.msk [vmem:[#allocation2 + $0x30] sm:$0xf] %vm656_vm2, %v6456_v1 }
   0xa   :  { %548 = vmatpush1.bf16.msra.mxu0 %v6240_v3  ;;  %v5475_v29 = vcombine.high %v6272_v24, %v6273_v26  ;;  %v5474_v30 = vcombine.low %v6272_v24, %v6273_v26  ;;  %v6249_v36 = vld [vmem:[%s9051_s0 + $0x48] sm:$0xff]   ;;  %v6250_v37 = vld [vmem:[%s9051_s0 + $0x40] sm:$0xff]   ;;  %672 = vst.msk [vmem:[#allocation2 + $0x38] sm:$0xf] %vm656_vm2, %v6456_v1  ;;  %674 = vst.msk [vmem:[#allocation2 + $0x40] sm:$0xf] %vm656_vm2, %v6456_v1 }
   0xb   :  { %549 = vmatprep.subr.bf16.mxu0 %v6456_v1  ;;  %v319_v16 = vld [vmem:[#allocation4] sm:$0xff]  ;;  %676 = vst.msk [vmem:[#allocation2 + $0x48] sm:$0xf] %vm656_vm2, %v6456_v1  ;;  %678 = vst.msk [vmem:[#allocation2 + $0x50] sm:$0xf] %vm656_vm2, %v6456_v1  ;;  %s6457_s0 = smov 64  }
   0xc   :  { %v5463_v17 = vcombine.high %v319_v16, %v6251_v7  ;;  %v5462_v38 = vcombine.low %v319_v16, %v6251_v7  ;;  %680 = vst.msk [vmem:[#allocation2 + $0x58] sm:$0xf] %vm656_vm2, %v6456_v1  ;;  %682 = vst.msk [vmem:[#allocation2 + $0x60] sm:$0xf] %vm656_vm2, %v6456_v1  ;;  %v1066_v50 = vld [vmem:[#allocation2] sm:$0xf] }
   0xd   :  { %684 = vst.msk [vmem:[#allocation2 + $0x68] sm:$0xf] %vm656_vm2, %v6456_v1  ;;  %686 = vst.msk [vmem:[#allocation2 + $0x70] sm:$0xf] %vm656_vm2, %v6456_v1  ;;  %v6797_v16 = vld [vmem:[%s9052_s1] ss:$0 sm:$0xff] }
   0xe   :  { %550 = vmatpush1.bf16.msra.mxu0 %v6241_v4  ;;  %5491 = vmatprep.mubr.msk.bf16.mxu0 %vm514_vm0, %v5463_v17  ;;  %688 = vst.msk [vmem:[#allocation2 + $0x78] sm:$0xf] %vm656_vm2, %v6456_v1  ;;  %690 = vst.msk [vmem:[#allocation2 + $0x80] sm:$0xf] %vm656_vm2, %v6456_v1  ;;  %vm970_vm5 = vsmask.f32 256 }
   0xf   :  { %551 = vmatprep.subr.bf16.mxu0 %v6456_v1  ;;  %692 = vst.msk [vmem:[#allocation2 + $0x88] sm:$0xf] %vm656_vm2, %v6456_v1  ;;  %694 = vst.msk [vmem:[#allocation2 + $0x90] sm:$0xf] %vm656_vm2, %v6456_v1 }
  0x10   :  { %696 = vst.msk [vmem:[#allocation2 + $0x98] sm:$0xf] %vm656_vm2, %v6456_v1  ;;  %698 = vst.msk [vmem:[#allocation3] sm:$0xf] %vm656_vm2, %v6456_v1 }
  0x11   :  { %700 = vst.msk [vmem:[#allocation3 + $0x8] sm:$0xf] %vm656_vm2, %v6456_v1  ;;  %702 = vst.msk [vmem:[#allocation3 + $0x10] sm:$0xf] %vm656_vm2, %v6456_v1 }
  0x12   :  { %552 = vmatpush1.bf16.msra.mxu0 %v6242_v5  ;;  %704 = vst.msk [vmem:[#allocation3 + $0x18] sm:$0xf] %vm656_vm2, %v6456_v1  ;;  %706 = vst.msk [vmem:[#allocation3 + $0x20] sm:$0xf] %vm656_vm2, %v6456_v1  ;;  %v1084_v48 = vld [vmem:[#allocation2 + $0x48] sm:$0xf] }
  0x13   :  { %553 = vmatprep.subr.bf16.mxu0 %v6456_v1  ;;  %708 = vst.msk [vmem:[#allocation3 + $0x28] sm:$0xf] %vm656_vm2, %v6456_v1  ;;  %710 = vst.msk [vmem:[#allocation3 + $0x30] sm:$0xf] %vm656_vm2, %v6456_v1  ;;  %v5549_v49 = vcombine.low %v1084_v48, %v1084_v48  ;;  %v1086_v57 = vld [vmem:[#allocation2 + $0x50] sm:$0xf] }
  0x14   :  { %712 = vst.msk [vmem:[#allocation3 + $0x38] sm:$0xf] %vm656_vm2, %v6456_v1  ;;  %714 = vst.msk [vmem:[#allocation3 + $0x40] sm:$0xf] %vm656_vm2, %v6456_v1 }
  0x15   :  { %716 = vst.msk [vmem:[#allocation3 + $0x48] sm:$0xf] %vm656_vm2, %v6456_v1  ;;  %718 = vst.msk [vmem:[#allocation3 + $0x50] sm:$0xf] %vm656_vm2, %v6456_v1  ;;  %1504 = vrot.lane.b32.xlu1 %v5549_v49, %s6457_s0 }
  0x16   :  { %554 = vmatpush1.bf16.msra.mxu0 %v6243_v10  ;;  %720 = vst.msk [vmem:[#allocation3 + $0x58] sm:$0xf] %vm656_vm2, %v6456_v1  ;;  %722 = vst.msk [vmem:[#allocation3 + $0x60] sm:$0xf] %vm656_vm2, %v6456_v1 }
  0x17   :  { %555 = vmatprep.subr.bf16.mxu0 %v6456_v1  ;;  %724 = vst.msk [vmem:[#allocation3 + $0x68] sm:$0xf] %vm656_vm2, %v6456_v1  ;;  %726 = vst.msk [vmem:[#allocation3 + $0x70] sm:$0xf] %vm656_vm2, %v6456_v1  ;;  %v1104_v53 = vld [vmem:[#allocation2 + $0x98] sm:$0xf] }
  0x18   :  { %728 = vst.msk [vmem:[#allocation3 + $0x78] sm:$0xf] %vm656_vm2, %v6456_v1  ;;  %730 = vst.msk [vmem:[#allocation3 + $0x80] sm:$0xf] %vm656_vm2, %v6456_v1  ;;  %v5550_v54 = vcombine.low %v1104_v53, %v1104_v53 }
  0x19   :  { %732 = vst.msk [vmem:[#allocation3 + $0x88] sm:$0xf] %vm656_vm2, %v6456_v1  ;;  %734 = vst.msk [vmem:[#allocation3 + $0x90] sm:$0xf] %vm656_vm2, %v6456_v1 }
  0x1a   :  { %556 = vmatpush1.bf16.msra.mxu0 %v6244_v15  ;;  %736 = vst.msk [vmem:[#allocation3 + $0x98] sm:$0xf] %vm656_vm2, %v6456_v1  ;;  %1520 = vrot.lane.b32.xlu1 %v5550_v54, %s6457_s0  ;;  %vm6808_vm6 = vmand %vm656_vm2, %vm964_vm4 }
  0x1b   :  { %557 = vmatprep.subr.bf16.mxu0 %v6456_v1  ;;  %661 = vst.msk [vmem:[#allocation2 + $0xc] sm:$0x1] %vm658_vm3, %v6456_v1  ;;  %659 = vst.msk [vmem:[#allocation2 + $0x4] sm:$0x1] %vm658_vm3, %v6456_v1 }
  0x1c   :  { %663 = vst.msk [vmem:[#allocation2 + $0x14] sm:$0x1] %vm658_vm3, %v6456_v1  ;;  %665 = vst.msk [vmem:[#allocation2 + $0x1c] sm:$0x1] %vm658_vm3, %v6456_v1 }
  0x1d   :  { %667 = vst.msk [vmem:[#allocation2 + $0x24] sm:$0x1] %vm658_vm3, %v6456_v1  ;;  %669 = vst.msk [vmem:[#allocation2 + $0x2c] sm:$0x1] %vm658_vm3, %v6456_v1 }
  0x1e   :  { %558 = vmatpush1.bf16.msra.mxu0 %v6245_v22  ;;  %671 = vst.msk [vmem:[#allocation2 + $0x34] sm:$0x1] %vm658_vm3, %v6456_v1  ;;  %673 = vst.msk [vmem:[#allocation2 + $0x3c] sm:$0x1] %vm658_vm3, %v6456_v1 }
  0x1f   :  { %565 = vmatprep.subr.bf16.mxu0 %v6456_v1  ;;  %675 = vst.msk [vmem:[#allocation2 + $0x44] sm:$0x1] %vm658_vm3, %v6456_v1  ;;  %677 = vst.msk [vmem:[#allocation2 + $0x4c] sm:$0x1] %vm658_vm3, %v6456_v1 }
  0x20   :  { %679 = vst.msk [vmem:[#allocation2 + $0x54] sm:$0x1] %vm658_vm3, %v6456_v1  ;;  %681 = vst.msk [vmem:[#allocation2 + $0x5c] sm:$0x1] %vm658_vm3, %v6456_v1 }
  0x21   :  { %683 = vst.msk [vmem:[#allocation2 + $0x64] sm:$0x1] %vm658_vm3, %v6456_v1  ;;  %685 = vst.msk [vmem:[#allocation2 + $0x6c] sm:$0x1] %vm658_vm3, %v6456_v1 }
  0x22   :  { %566 = vmatpush2.bf16.msra.mxu0 %v541_v28  ;;  %687 = vst.msk [vmem:[#allocation2 + $0x74] sm:$0x1] %vm658_vm3, %v6456_v1  ;;  %689 = vst.msk [vmem:[#allocation2 + $0x7c] sm:$0x1] %vm658_vm3, %v6456_v1  ;;  %v1067_v51 = vld [vmem:[#allocation2 + $0x4] sm:$0x1] }
  0x23   :  { %567 = vmatprep.subr.bf16.mxu0 %v6456_v1  ;;  %691 = vst.msk [vmem:[#allocation2 + $0x84] sm:$0x1] %vm658_vm3, %v6456_v1  ;;  %693 = vst.msk [vmem:[#allocation2 + $0x8c] sm:$0x1] %vm658_vm3, %v6456_v1  ;;  %v5515_v52 = vcombine.low %v1066_v50, %v1067_v51  ;;  %v6309_v28 = vld [vmem:[%s9053_s2 + $0x78] sm:$0xff]  }
  0x24   :  { %695 = vst.msk [vmem:[#allocation2 + $0x94] sm:$0x1] %vm658_vm3, %v6456_v1  ;;  %697 = vst.msk [vmem:[#allocation2 + $0x9c] sm:$0x1] %vm658_vm3, %v6456_v1  ;;  %5952 = vmatprep.subr.bf16.mxu1 %v6309_v28  ;;  %v975_v51 = vld [vmem:[#allocation2 + $0x10] sm:$0xf] }
  0x25   :  { %699 = vst.msk [vmem:[#allocation3 + $0x4] sm:$0x1] %vm658_vm3, %v6456_v1  ;;  %701 = vst.msk [vmem:[#allocation3 + $0xc] sm:$0x1] %vm658_vm3, %v6456_v1  ;;  %v1330_v55 = vrot.slane %v5515_v52, 1  ;;  %v1189_v56 = vshll.u32 %v5515_v52, 16 }
  0x26   :  { %568 = vmatpush2.bf16.msra.mxu0 %v6247_v34  ;;  %703 = vst.msk [vmem:[#allocation3 + $0x14] sm:$0x1] %vm658_vm3, %v6456_v1  ;;  %705 = vst.msk [vmem:[#allocation3 + $0x1c] sm:$0x1] %vm658_vm3, %v6456_v1  ;;  %v1187_v60 = vshrl.u32 %v5515_v52, 16 }
  0x27   :  { %569 = vmatprep.subr.bf16.mxu0 %v6456_v1  ;;  %707 = vst.msk [vmem:[#allocation3 + $0x24] sm:$0x1] %vm658_vm3, %v6456_v1  ;;  %709 = vst.msk [vmem:[#allocation3 + $0x2c] sm:$0x1] %vm658_vm3, %v6456_v1  ;;  %1346 = vrot.lane.b32.xlu0 %v1330_v55, %s6457_s0  ;;  %v1087_v58 = vld [vmem:[#allocation2 + $0x54] sm:$0x1] }
  0x28   :  { %711 = vst.msk [vmem:[#allocation3 + $0x34] sm:$0x1] %vm658_vm3, %v6456_v1  ;;  %713 = vst.msk [vmem:[#allocation3 + $0x3c] sm:$0x1] %vm658_vm3, %v6456_v1  ;;  %v5523_v59 = vcombine.low %v1086_v57, %v1087_v58  ;;  %v1191_v61 = vrot.slane %v1189_v56, 1 }
  0x29   :  { %715 = vst.msk [vmem:[#allocation3 + $0x44] sm:$0x1] %vm658_vm3, %v6456_v1  ;;  %717 = vst.msk [vmem:[#allocation3 + $0x4c] sm:$0x1] %vm658_vm3, %v6456_v1  ;;  %v1085_v62 = vld [vmem:[#allocation2 + $0x4c] sm:$0x1] }
  0x2a   :  { %570 = vmatpush2.bf16.msra.mxu0 %v6248_v35  ;;  %719 = vst.msk [vmem:[#allocation3 + $0x54] sm:$0x1] %vm658_vm3, %v6456_v1  ;;  %721 = vst.msk [vmem:[#allocation3 + $0x5c] sm:$0x1] %vm658_vm3, %v6456_v1  ;;  %v6781_v63 = vcombine.low %v1084_v48, %v1085_v62  ;;  %v1338_v0 = vrot.slane %v5523_v59, 1  ;;  %v1245_v2 = vshll.u32 %v5523_v59, 16 }
  0x2b   :  { %571 = vmatprep.subr.bf16.mxu0 %v6456_v1  ;;  %723 = vst.msk [vmem:[#allocation3 + $0x64] sm:$0x1] %vm658_vm3, %v6456_v1  ;;  %725 = vst.msk [vmem:[#allocation3 + $0x6c] sm:$0x1] %vm658_vm3, %v6456_v1  ;;  %v1243_v3 = vshrl.u32 %v5523_v59, 16  ;;  %v6315_v62 = vld [vmem:[%s9053_s2 + $0x28] sm:$0xff]  }
  0x2c   :  { %727 = vst.msk [vmem:[#allocation3 + $0x74] sm:$0x1] %vm658_vm3, %v6456_v1  ;;  %729 = vst.msk [vmem:[#allocation3 + $0x7c] sm:$0x1] %vm658_vm3, %v6456_v1  ;;  %1362 = vrot.lane.b32.xlu0 %v1338_v0, %s6457_s0  ;;  %v1247_v4 = vrot.slane %v1245_v2, 1  ;;  %v1531_v6 = vshll.u32 %v6781_v63, 16 }
  0x2d   :  { %731 = vst.msk [vmem:[#allocation3 + $0x84] sm:$0x1] %vm658_vm3, %v6456_v1  ;;  %733 = vst.msk [vmem:[#allocation3 + $0x8c] sm:$0x1] %vm658_vm3, %v6456_v1  ;;  %v1105_v5 = vld [vmem:[#allocation2 + $0x9c] sm:$0x1] }
  0x2e   :  { %572 = vmatpush2.bf16.msra.mxu0 %v6249_v36  ;;  %735 = vst.msk [vmem:[#allocation3 + $0x94] sm:$0x1] %vm658_vm3, %v6456_v1  ;;  %737 = vst.msk [vmem:[#allocation3 + $0x9c] sm:$0x1] %vm658_vm3, %v6456_v1  ;;  %v6786_v7 = vcombine.low %v1104_v53, %v1105_v5  ;;  %v1248_v8 = vor.u32 %v1247_v4, %v1243_v3  ;;  %v1529_v9 = vshrl.u32 %v6781_v63, 16  ;;  %v1533_v10 = vrot.slane %v1531_v6, 1 }
  0x2f   :  { %573 = vmatprep.subr.bf16.mxu0 %v6456_v1  ;;  %v1192_v1 = vor.u32 %v1191_v61, %v1187_v60  ;;  %v966_v35 = vld [vmem:[#allocation2 + $0x8] sm:$0xf]  ;;  %vm6814_vm7 = vmand %vm658_vm3, %vm970_vm5  ;;  %v9090_v36 = vmov 0  ;;  %v978_v52 = vld [vmem:[#allocation2 + $0x14] sm:$0x1] }
  0x30   :  { %9086 = vst [vmem:[#allocation5_spill] sm:$0xff] %v6786_v7  ;;  %1314 = vrot.lane.b32.xlu0 %v1248_v8, %s6458_s24  ;;  %v1534_v11 = vor.u32 %v1533_v10, %v1529_v9  ;;  %v1538_v12 = vshll.u32 %v6786_v7, 16  ;;  %v1536_v13 = vshrl.u32 %v6786_v7, 16  ;;  %v9091_v36 = vsel %vm6814_vm7, 4294967295, %v9090_v36  ;;  %v6314_v61 = vld [vmem:[%s9053_s2 + $0x68] sm:$0xff]  }
  0x31   :  { %1298 = vrot.lane.b32.xlu1 %v1192_v1, %s6458_s24  ;;  %9092 = vst [vmem:[#allocation7_spill] sm:$0xff] %v9091_v36  ;;  %v981_v5 = vld [vmem:[#allocation2 + $0x18] sm:$0xf]  ;;  %v984_v8 = vld [vmem:[#allocation2 + $0x1c] sm:$0x1] }
  0x32   :  { %574 = vmatpush2.bf16.msra.mxu0 %v6250_v37  ;;  %v1540_v14 = vrot.slane %v1538_v12, 1  ;;  %v972_v37 = vld [vmem:[#allocation2 + $0xc] sm:$0x1] }
  0x34   :  { %v1541_v15 = vor.u32 %v1540_v14, %v1536_v13 }
  0x35   :  { %576 = vmatmul.mubr.bf16.vlgmr.msra.gmra.mxu0 %v5462_v38  ;;  %1556 = vrot.lane.b32.xlu1 %v1534_v11, %s6459_s25 }
  0x36   :  { %5492 = vmatprep.mubr.msk.bf16.mxu0 %vm514_vm0, %v5465_v39 }
  0x39   :  { %1572 = vrot.lane.b32.xlu1 %v1541_v15, %s6459_s25 }
  0x3d   :  { %584 = vmatmul.mubr.bf16.gmra.mxu0 %v5464_v40 }
  0x3e   :  { %5493 = vmatprep.mubr.msk.bf16.mxu0 %vm514_vm0, %v5467_v41 }
  0x45   :  { %592 = vmatmul.mubr.bf16.gmra.mxu0 %v5466_v42 }
  0x46   :  { %5494 = vmatprep.mubr.msk.bf16.mxu0 %vm514_vm0, %v5469_v43 }
  0x4d   :  { %600 = vmatmul.mubr.bf16.gmra.mxu0 %v5468_v44 }
  0x4e   :  { %5495 = vmatprep.mubr.msk.bf16.mxu0 %vm514_vm0, %v5471_v45  ;;  %v6311_v45 = vld [vmem:[%s9053_s2 + $0x70] sm:$0xff]  }
  0x55   :  { %608 = vmatmul.mubr.bf16.gmra.mxu0 %v5470_v46  ;;  %v6312_v46 = vld [vmem:[%s9053_s2 + $0x30] sm:$0xff]  }
  0x56   :  { %5496 = vmatprep.mubr.msk.bf16.mxu0 %vm514_vm0, %v5473_v47 }
  0x5d   :  { %616 = vmatmul.mubr.bf16.gmra.mxu0 %v5472_v25 }
  0x5e   :  { %5497 = vmatprep.mubr.msk.bf16.mxu0 %vm514_vm0, %v5475_v29  ;;  %v6310_v29 = vld [vmem:[%s9053_s2 + $0x38] sm:$0xff]  }
  0x5f   :  { %5953 = vmatpush3.bf16.msra.mxu1 %v6310_v29  ;;  %v6317_v29 = vld [vmem:[%s9053_s2 + $0x20] sm:$0xff]  }
  0x60   :  { %5954 = vmatprep.subr.bf16.mxu1 %v6311_v45  ;;  %v6319_v45 = vld [vmem:[%s9053_s2 + $0x58] sm:$0xff]  }
  0x63   :  { %5955 = vmatpush3.bf16.msra.mxu1 %v6312_v46  ;;  %v993_v46 = vld [vmem:[#allocation2 + $0x28] sm:$0xf] }
  0x64   :  { %5956 = vmatprep.subr.bf16.mxu1 %v6314_v61  ;;  %v6323_v61 = vld [vmem:[%s9053_s2 + $0x10] sm:$0xff]  }
  0x65   :  { %624 = vmatmul.mubr.bf16.gmra.mxu0 %v5474_v30 }
  0x66   :  { %5498 = vmatprep.mubr.msk.bf16.mxu0 %vm514_vm0, %v5477_v32  ;;  %v9087_v32 = vmov 0 }
  0x67   :  { %v9088_v32 = vsel %vm6808_vm6, 4294967295, %v9087_v32  ;;  %5957 = vmatpush3.bf16.msra.mxu1 %v6315_v62 }
  0x68   :  { %9089 = vst [vmem:[#allocation6_spill] sm:$0xff] %v9088_v32 }
  0x6d   :  { %632 = vmatmul.mubr.bf16.gmra.mxu0 %v5476_v33 }
  0xf5   :  { %v577_v17 = vpop.f32.mrf.mxu0 }
  0xf6   :  { %v578_v18 = vadd.f32 %v6797_v16, %v577_v17 }
  0xf7   :  { %v579_v19 = vpop.f32.mrf.mxu0 }
  0xf8   :  { %v640_v20 = vmax.f32 %v578_v18, 0.0 }
  0xf9   :  { %v580_v21 = vpop.f32.mrf.mxu0 }
  0xfa   :  { %v5814_v22 = vpack.c.bf16 %v640_v20, %v640_v20  ;;  %v581_v23 = vadd.f32 %v6797_v16, %v580_v21  ;;  %v6316_v21 = vld [vmem:[%s9053_s2 + $0x60] sm:$0xff]  }
  0xfb   :  { %v582_v24 = vpop.f32.mrf.mxu0  ;;  %5958 = vmatprep.subr.bf16.mxu1 %v6316_v21 }
  0xfc   :  { %v803_v25 = vshrl.u32 %v5814_v22, 16  ;;  %v641_v26 = vmax.f32 %v581_v23, 0.0  ;;  %v806_v31 = vshll.u32 %v5814_v22, 16  ;;  %v987_v24 = vld [vmem:[#allocation2 + $0x20] sm:$0xf]  ;;  %5959 = vmatpush3.bf16.msra.mxu1 %v6317_v29 }
  0xfd   :  { %v585_v27 = vpop.f32.mrf.mxu0  ;;  %5960 = vmatprep.subr.bf16.mxu1 %v6319_v45  ;;  %v6328_v45 = vld [vmem:[%s9053_s2] sm:$0xff]  }
  0xfe   :  { %v805_v30 = vrot.slane %v803_v25, 7  ;;  %v5815_v33 = vpack.c.bf16 %v641_v26, %v641_v26  ;;  %v586_v34 = vadd.f32 %v6797_v16, %v585_v27  ;;  %v990_v25 = vld [vmem:[#allocation2 + $0x24] sm:$0x1] }
  0xff   :  { %v587_v38 = vpop.f32.mrf.mxu0 }
 0x100   :  { %v808_v39 = vor.u32 %v806_v31, %v805_v30  ;;  %v809_v40 = vrot.slane %v805_v30, 4  ;;  %v811_v41 = vshrl.u32 %v5815_v33, 16  ;;  %v814_v42 = vshll.u32 %v5815_v33, 16 }
 0x101   :  { %v642_v43 = vmax.f32 %v586_v34, 0.0  ;;  %v588_v44 = vpop.f32.mrf.mxu0 }
 0x102   :  { %v967_v47 = vsel %vm6808_vm6, %v808_v39, %v966_v35  ;;  %v973_v48 = vsel %vm6814_vm7, %v809_v40, %v972_v37  ;;  %v813_v49 = vrot.slane %v811_v41, 7  ;;  %v589_v50 = vadd.f32 %v6797_v16, %v588_v44 }
 0x103   :  { %968 = vst [vmem:[#allocation2 + $0x8] sm:$0xf] %v967_v47  ;;  %974 = vst [vmem:[#allocation2 + $0xc] sm:$0x1] %v973_v48  ;;  %v5816_v53 = vpack.c.bf16 %v642_v43, %v642_v43  ;;  %v590_v54 = vpop.f32.mrf.mxu0  ;;  %v996_v47 = vld [vmem:[#allocation2 + $0x2c] sm:$0x1] }
 0x104   :  { %v816_v55 = vor.u32 %v814_v42, %v813_v49  ;;  %v817_v56 = vrot.slane %v813_v49, 4  ;;  %v643_v57 = vmax.f32 %v589_v50, 0.0  ;;  %v6320_v50 = vld [vmem:[%s9053_s2 + $0x18] sm:$0xff]  }
 0x105   :  { %v819_v58 = vshrl.u32 %v5816_v53, 16  ;;  %v822_v59 = vshll.u32 %v5816_v53, 16  ;;  %v593_v60 = vpop.f32.mrf.mxu0  ;;  %5961 = vmatpush3.bf16.msra.mxu1 %v6320_v50 }
 0x106   :  { %v976_v0 = vsel %vm6808_vm6, %v816_v55, %v975_v51  ;;  %v979_v1 = vsel %vm6814_vm7, %v817_v56, %v978_v52  ;;  %v5817_v2 = vpack.c.bf16 %v643_v57, %v643_v57  ;;  %v594_v3 = vadd.f32 %v6797_v16, %v593_v60  ;;  %v6322_v60 = vld [vmem:[%s9053_s2 + $0x50] sm:$0xff]  }
 0x107   :  { %977 = vst [vmem:[#allocation2 + $0x10] sm:$0xf] %v976_v0  ;;  %980 = vst [vmem:[#allocation2 + $0x14] sm:$0x1] %v979_v1  ;;  %v821_v4 = vrot.slane %v819_v58, 7  ;;  %v595_v6 = vpop.f32.mrf.mxu0  ;;  %5962 = vmatprep.subr.bf16.mxu1 %v6322_v60 }
 0x108   :  { %v827_v9 = vshrl.u32 %v5817_v2, 16  ;;  %v830_v10 = vshll.u32 %v5817_v2, 16  ;;  %v644_v11 = vmax.f32 %v594_v3, 0.0 }
 0x109   :  { %v824_v12 = vor.u32 %v822_v59, %v821_v4  ;;  %v825_v13 = vrot.slane %v821_v4, 4  ;;  %v596_v14 = vpop.f32.mrf.mxu0  ;;  %5963 = vmatpush3.bf16.msra.mxu1 %v6323_v61 }
 0x10a   :  { %v829_v15 = vrot.slane %v827_v9, 7  ;;  %v5818_v17 = vpack.c.bf16 %v644_v11, %v644_v11  ;;  %v6840_v18 = vld [vmem:[#allocation2 + $0x8] sm:$0xf]  ;;  %v1069_v19 = vld [vmem:[#allocation2 + $0xc] sm:$0x1]  ;;  %v597_v20 = vadd.f32 %v6797_v16, %v596_v14 }
 0x10b   :  { %v982_v22 = vsel %vm6808_vm6, %v824_v12, %v981_v5  ;;  %v985_v23 = vsel %vm6814_vm7, %v825_v13, %v984_v8  ;;  %v5531_v26 = vcombine.low %v6840_v18, %v6840_v18  ;;  %v6853_v27 = vcombine.low %v6840_v18, %v1069_v19  ;;  %v598_v28 = vpop.f32.mrf.mxu0  ;;  %v1002_v11 = vld [vmem:[#allocation2 + $0x34] sm:$0x1] }
 0x10c   :  { %983 = vst [vmem:[#allocation2 + $0x18] sm:$0xf] %v982_v22  ;;  %986 = vst [vmem:[#allocation2 + $0x1c] sm:$0x1] %v985_v23  ;;  %v832_v30 = vor.u32 %v830_v10, %v829_v15  ;;  %v833_v31 = vrot.slane %v829_v15, 4  ;;  %v835_v33 = vshrl.u32 %v5818_v17, 16 }
 0x10d   :  { %v838_v34 = vshll.u32 %v5818_v17, 16  ;;  %1398 = vrot.lane.b32.xlu0 %v5531_v26, %s6459_s25  ;;  %v1331_v35 = vrot.slane %v6853_v27, 1  ;;  %v1196_v37 = vshll.u32 %v6853_v27, 16  ;;  %v645_v38 = vmax.f32 %v597_v20, 0.0  ;;  %v601_v39 = vpop.f32.mrf.mxu0  ;;  %v999_v10 = vld [vmem:[#allocation2 + $0x30] sm:$0xf] }
 0x10e   :  { %v988_v40 = vsel %vm6808_vm6, %v832_v30, %v987_v24  ;;  %v991_v41 = vsel %vm6814_vm7, %v833_v31, %v990_v25  ;;  %v837_v42 = vrot.slane %v835_v33, 7  ;;  %v6865_v43 = vld [vmem:[#allocation2 + $0x10] sm:$0xf]  ;;  %v602_v44 = vadd.f32 %v6797_v16, %v601_v39  ;;  %v1071_v53 = vld [vmem:[#allocation2 + $0x14] sm:$0x1]  ;;  %v6325_v22 = vld [vmem:[%s9053_s2 + $0x48] sm:$0xff]  }
 0x10f   :  { %989 = vst [vmem:[#allocation2 + $0x20] sm:$0xf] %v988_v40  ;;  %992 = vst [vmem:[#allocation2 + $0x24] sm:$0x1] %v991_v41  ;;  %1348 = vrot.lane.b32.xlu1 %v1331_v35, %s6457_s0  ;;  %v5819_v48 = vpack.c.bf16 %v645_v38, %v645_v38  ;;  %v603_v49 = vpop.f32.mrf.mxu0  ;;  %v5532_v55 = vcombine.low %v6865_v43, %v6865_v43  ;;  %v1198_v56 = vrot.slane %v1196_v37, 1  ;;  %v1194_v2 = vshrl.u32 %v6853_v27, 16 }
 0x110   :  { %v840_v51 = vor.u32 %v838_v34, %v837_v42  ;;  %v841_v52 = vrot.slane %v837_v42, 4  ;;  %v646_v54 = vmax.f32 %v602_v44, 0.0  ;;  %v6891_v3 = vcombine.low %v6865_v43, %v1071_v53  ;;  %v6326_v23 = vld [vmem:[%s9053_s2 + $0x8] sm:$0xff]   ;;  %v1005_v25 = vld [vmem:[#allocation2 + $0x38] sm:$0xf]  ;;  %5964 = vmatprep.subr.bf16.mxu1 %v6325_v22  ;;  %v6327_v44 = vld [vmem:[%s9053_s2 + $0x40] sm:$0xff]  }
 0x111   :  { %1452 = vrot.lane.b32.xlu0 %v1331_v35, %s6458_s24  ;;  %v843_v57 = vshrl.u32 %v5819_v48, 16  ;;  %v846_v58 = vshll.u32 %v5819_v48, 16  ;;  %v604_v59 = vpop.f32.mrf.mxu0  ;;  %v6900_v15 = vor.u32 %v1198_v56, %v1194_v2  ;;  %v1008_v33 = vld [vmem:[#allocation2 + $0x3c] sm:$0x1]  ;;  %5965 = vmatpush3.bf16.msra.mxu1 %v6326_v23 }
 0x112   :  { %v994_v62 = vsel %vm6808_vm6, %v840_v51, %v993_v46  ;;  %v997_v0 = vsel %vm6814_vm7, %v841_v52, %v996_v47  ;;  %v5820_v1 = vpack.c.bf16 %v646_v54, %v646_v54  ;;  %v605_v8 = vadd.f32 %v6797_v16, %v604_v59  ;;  %5966 = vmatprep.subr.bf16.mxu1 %v6327_v44 }
 0x113   :  { %995 = vst [vmem:[#allocation2 + $0x28] sm:$0xf] %v994_v62  ;;  %998 = vst [vmem:[#allocation2 + $0x2c] sm:$0x1] %v997_v0  ;;  %1400 = vrot.lane.b32.xlu1 %v5532_v55, %s6459_s25  ;;  %v845_v4 = vrot.slane %v843_v57, 7  ;;  %v606_v9 = vpop.f32.mrf.mxu0  ;;  %v6916_v28 = vrot.slane %v6891_v3, 1 }
 0x114   :  { %v6893_v5 = vld [vmem:[#allocation2 + $0x18] sm:$0xf]  ;;  %v1073_v6 = vld [vmem:[#allocation2 + $0x1c] sm:$0x1]  ;;  %v851_v12 = vshrl.u32 %v5820_v1, 16  ;;  %v854_v13 = vshll.u32 %v5820_v1, 16 }
 0x115   :  { %v6897_v14 = vcombine.low %v6893_v5, %v1073_v6  ;;  %1490 = vrot.lane.b32.xlu0 %v5532_v55, %s6457_s0  ;;  %v848_v17 = vor.u32 %v846_v58, %v845_v4  ;;  %v849_v19 = vrot.slane %v845_v4, 4  ;;  %v647_v20 = vmax.f32 %v605_v8, 0.0  ;;  %v609_v21 = vpop.f32.mrf.mxu0  ;;  %5967 = vmatpush3.bf16.msra.mxu1 %v6328_v45  ;;  %v1011_v0 = vld [vmem:[#allocation2 + $0x40] sm:$0xf]  ;;  %v1014_v1 = vld [vmem:[#allocation2 + $0x44] sm:$0x1] }
 0x116   :  { %v853_v24 = vrot.slane %v851_v12, 7  ;;  %v6911_v27 = vld [vmem:[#allocation2 + $0x20] sm:$0xf]  ;;  %v5533_v31 = vcombine.low %v6893_v5, %v6893_v5  ;;  %v1075_v34 = vld [vmem:[#allocation2 + $0x24] sm:$0x1]  ;;  %v610_v41 = vadd.f32 %v6797_v16, %v609_v21  ;;  %v1203_v49 = vshll.u32 %v6891_v3, 16 }
 0x117   :  { %v6909_v26 = vrot.slane %v6897_v14, 1  ;;  %1300 = vrot.lane.b32.xlu1 %v6900_v15, %s6458_s24  ;;  %v1000_v29 = vsel %vm6808_vm6, %v848_v17, %v999_v10  ;;  %v1003_v30 = vsel %vm6814_vm7, %v849_v19, %v1002_v11  ;;  %v611_v35 = vpop.f32.mrf.mxu0  ;;  %v6925_v39 = vcombine.low %v6911_v27, %v1075_v34 }
 0x118   :  { %1001 = vst [vmem:[#allocation2 + $0x30] sm:$0xf] %v1000_v29  ;;  %1004 = vst [vmem:[#allocation2 + $0x34] sm:$0x1] %v1003_v30  ;;  %v856_v37 = vor.u32 %v854_v13, %v853_v24  ;;  %v857_v38 = vrot.slane %v853_v24, 4  ;;  %v5821_v40 = vpack.c.bf16 %v647_v20, %v647_v20  ;;  %v648_v57 = vmax.f32 %v610_v41, 0.0 }
 0x119   :  { %1454 = vrot.lane.b32.xlu0 %v6916_v28, %s6458_s24  ;;  %v612_v42 = vpop.f32.mrf.mxu0  ;;  %v6947_v52 = vrot.slane %v6925_v39, 1  ;;  %v1210_v59 = vshll.u32 %v6897_v14, 16  ;;  %v1205_v8 = vrot.slane %v1203_v49, 1  ;;  %v1201_v13 = vshrl.u32 %v6891_v3, 16 }
 0x11a   :  { %v1006_v47 = vsel %vm6808_vm6, %v856_v37, %v1005_v25  ;;  %v1009_v48 = vsel %vm6814_vm7, %v857_v38, %v1008_v33  ;;  %v6943_v50 = vld [vmem:[#allocation2 + $0x28] sm:$0xf]  ;;  %v1077_v51 = vld [vmem:[#allocation2 + $0x2c] sm:$0x1]  ;;  %v859_v53 = vshrl.u32 %v5821_v40, 16  ;;  %v862_v54 = vshll.u32 %v5821_v40, 16 }
 0x11b   :  { %1492 = vrot.lane.b32.xlu1 %v5533_v31, %s6457_s0  ;;  %1007 = vst [vmem:[#allocation2 + $0x38] sm:$0xf] %v1006_v47  ;;  %1010 = vst [vmem:[#allocation2 + $0x3c] sm:$0x1] %v1009_v48  ;;  %v6950_v55 = vcombine.low %v6943_v50, %v1077_v51  ;;  %v614_v56 = vpop.f32.mrf.mxu0  ;;  %v613_v58 = vadd.f32 %v6797_v16, %v612_v42  ;;  %v5822_v2 = vpack.c.bf16 %v648_v57, %v648_v57  ;;  %v1017_v37 = vld [vmem:[#allocation2 + $0x58] sm:$0xf] }
 0x11c   :  { %v861_v60 = vrot.slane %v859_v53, 7  ;;  %v1208_v17 = vshrl.u32 %v6897_v14, 16  ;;  %v6969_v21 = vcombine.low %v6911_v27, %v6911_v27  ;;  %v1212_v22 = vrot.slane %v1210_v59, 1  ;;  %v1020_v38 = vld [vmem:[#allocation2 + $0x5c] sm:$0x1] }
 0x11d   :  { %1350 = vrot.lane.b32.xlu0 %v6916_v28, %s6457_s0  ;;  %v6957_v61 = vrot.slane %v6950_v55, 1  ;;  %v617_v62 = vpop.f32.mrf.mxu0  ;;  %v649_v4 = vmax.f32 %v613_v58, 0.0  ;;  %v867_v19 = vshrl.u32 %v5822_v2, 16  ;;  %v870_v20 = vshll.u32 %v5822_v2, 16  ;;  %v1023_v59 = vld [vmem:[#allocation2 + $0x60] sm:$0xf] }
 0x11e   :  { %v618_v6 = vadd.f32 %v6797_v16, %v617_v62  ;;  %v864_v9 = vor.u32 %v862_v54, %v861_v60  ;;  %v865_v10 = vrot.slane %v861_v60, 4  ;;  %v6981_v35 = vor.u32 %v1205_v8, %v1201_v13  ;;  %v1026_v62 = vld [vmem:[#allocation2 + $0x64] sm:$0x1] }
 0x11f   :  { %1352 = vrot.lane.b32.xlu1 %v6909_v26, %s6457_s0  ;;  %v619_v12 = vpop.f32.mrf.mxu0  ;;  %v6975_v25 = vld [vmem:[#allocation2 + $0x30] sm:$0xf]  ;;  %v1079_v3 = vld [vmem:[#allocation2 + $0x34] sm:$0x1]  ;;  %v869_v14 = vrot.slane %v867_v19, 7  ;;  %v5823_v30 = vpack.c.bf16 %v649_v4, %v649_v4  ;;  %v6989_v49 = vor.u32 %v1212_v22, %v1208_v17 }
 0x120   :  { %v1012_v23 = vsel %vm6808_vm6, %v864_v9, %v1011_v0  ;;  %v1015_v24 = vsel %vm6814_vm7, %v865_v10, %v1014_v1  ;;  %v6992_v51 = vcombine.low %v6975_v25, %v1079_v3  ;;  %v1029_v22 = vld [vmem:[#allocation2 + $0x68] sm:$0xf] }
 0x121   :  { %1402 = vrot.lane.b32.xlu0 %v5533_v31, %s6459_s25  ;;  %v620_v29 = vpop.f32.mrf.mxu0  ;;  %1013 = vst [vmem:[#allocation2 + $0x40] sm:$0xf] %v1012_v23  ;;  %1016 = vst [vmem:[#allocation2 + $0x44] sm:$0x1] %v1015_v24  ;;  %v650_v31 = vmax.f32 %v618_v6, 0.0  ;;  %v872_v44 = vor.u32 %v870_v20, %v869_v14  ;;  %v873_v45 = vrot.slane %v869_v14, 4 }
 0x122   :  { %v6977_v33 = vld [vmem:[#allocation2 + $0x38] sm:$0xf]  ;;  %v1081_v34 = vld [vmem:[#allocation2 + $0x3c] sm:$0x1]  ;;  %v621_v41 = vadd.f32 %v6797_v16, %v620_v29  ;;  %v875_v47 = vshrl.u32 %v5823_v30, 16  ;;  %v878_v48 = vshll.u32 %v5823_v30, 16 }
 0x123   :  { %1404 = vrot.lane.b32.xlu1 %v6969_v21, %s6459_s25  ;;  %v6984_v40 = vcombine.low %v6977_v33, %v1081_v34  ;;  %v622_v42 = vpop.f32.mrf.mxu0  ;;  %v5824_v53 = vpack.c.bf16 %v650_v31, %v650_v31  ;;  %v1018_v56 = vsel %vm6808_vm6, %v872_v44, %v1017_v37  ;;  %v1021_v57 = vsel %vm6814_vm7, %v873_v45, %v1020_v38  ;;  %v1032_v23 = vld [vmem:[#allocation2 + $0x6c] sm:$0x1]  ;;  %v1035_v44 = vld [vmem:[#allocation2 + $0x70] sm:$0xf]  ;;  %v1038_v45 = vld [vmem:[#allocation2 + $0x74] sm:$0x1] }
 0x124   :  { %v877_v58 = vrot.slane %v875_v47, 7  ;;  %1019 = vst [vmem:[#allocation2 + $0x58] sm:$0xf] %v1018_v56  ;;  %1022 = vst [vmem:[#allocation2 + $0x5c] sm:$0x1] %v1021_v57  ;;  %v7001_v60 = vrot.slane %v6992_v51, 1 }
 0x125   :  { %1542 = vrot.lane.b32.xlu0 %v6981_v35, %s6459_s25  ;;  %v625_v54 = vpop.f32.mrf.mxu0  ;;  %v883_v0 = vshrl.u32 %v5824_v53, 16  ;;  %v886_v1 = vshll.u32 %v5824_v53, 16  ;;  %v651_v2 = vmax.f32 %v621_v41, 0.0  ;;  %v7004_v9 = vrot.slane %v6984_v40, 1 }
 0x126   :  { %v880_v6 = vor.u32 %v878_v48, %v877_v58  ;;  %v881_v8 = vrot.slane %v877_v58, 4  ;;  %v626_v10 = vadd.f32 %v6797_v16, %v625_v54  ;;  %v5535_v48 = vcombine.low %v6943_v50, %v6943_v50 }
 0x127   :  { %1544 = vrot.lane.b32.xlu1 %v6989_v49, %s6459_s25  ;;  %v627_v4 = vpop.f32.mrf.mxu0  ;;  %v885_v12 = vrot.slane %v883_v0, 7  ;;  %v5825_v13 = vpack.c.bf16 %v651_v2, %v651_v2 }
 0x128   :  { %v1024_v19 = vsel %vm6808_vm6, %v880_v6, %v1023_v59  ;;  %v1027_v20 = vsel %vm6814_vm7, %v881_v8, %v1026_v62  ;;  %v652_v31 = vmax.f32 %v626_v10, 0.0  ;;  %v1217_v6 = vshll.u32 %v6925_v39, 16  ;;  %v1041_v8 = vld [vmem:[#allocation2 + $0x78] sm:$0xf]  ;;  %v1044_v10 = vld [vmem:[#allocation2 + $0x7c] sm:$0x1] }
 0x129   :  { %1456 = vrot.lane.b32.xlu0 %v6909_v26, %s6458_s24  ;;  %v628_v17 = vpop.f32.mrf.mxu0  ;;  %1025 = vst [vmem:[#allocation2 + $0x60] sm:$0xf] %v1024_v19  ;;  %1028 = vst [vmem:[#allocation2 + $0x64] sm:$0x1] %v1027_v20  ;;  %v888_v24 = vor.u32 %v886_v1, %v885_v12  ;;  %v889_v3 = vrot.slane %v885_v12, 4  ;;  %v891_v29 = vshrl.u32 %v5825_v13, 16 }
 0x12a   :  { %v894_v14 = vshll.u32 %v5825_v13, 16  ;;  %v5826_v47 = vpack.c.bf16 %v652_v31, %v652_v31  ;;  %v629_v56 = vadd.f32 %v6797_v16, %v628_v17  ;;  %v1224_v20 = vshll.u32 %v6950_v55, 16 }
 0x12b   :  { %1458 = vrot.lane.b32.xlu1 %v6947_v52, %s6458_s24  ;;  %v630_v30 = vpop.f32.mrf.mxu0  ;;  %v1030_v37 = vsel %vm6808_vm6, %v888_v24, %v1029_v22  ;;  %v1033_v38 = vsel %vm6814_vm7, %v889_v3, %v1032_v23  ;;  %v893_v41 = vrot.slane %v891_v29, 7 }
 0x12c   :  { %1031 = vst [vmem:[#allocation2 + $0x68] sm:$0xf] %v1030_v37  ;;  %1034 = vst [vmem:[#allocation2 + $0x6c] sm:$0x1] %v1033_v38  ;;  %v899_v58 = vshrl.u32 %v5826_v47, 16  ;;  %v902_v59 = vshll.u32 %v5826_v47, 16 }
 0x12d   :  { %1302 = vrot.lane.b32.xlu0 %v6981_v35, %s6458_s24  ;;  %v633_v42 = vpop.f32.mrf.mxu0  ;;  %v896_v53 = vor.u32 %v894_v14, %v893_v41  ;;  %v897_v54 = vrot.slane %v893_v41, 4  ;;  %v653_v12 = vmax.f32 %v629_v56, 0.0  ;;  %v1215_v14 = vshrl.u32 %v6925_v39, 16  ;;  %v1047_v47 = vld [vmem:[#allocation2 + $0x80] sm:$0xf] }
 0x12e   :  { %v634_v62 = vadd.f32 %v6797_v16, %v633_v42  ;;  %v901_v4 = vrot.slane %v899_v58, 7  ;;  %v1219_v30 = vrot.slane %v1217_v6, 1  ;;  %v5536_v42 = vcombine.low %v6975_v25, %v6975_v25 }
 0x12f   :  { %1304 = vrot.lane.b32.xlu1 %v6989_v49, %s6458_s24  ;;  %v635_v57 = vpop.f32.mrf.mxu0  ;;  %v1036_v0 = vsel %vm6808_vm6, %v896_v53, %v1035_v44  ;;  %v1039_v1 = vsel %vm6814_vm7, %v897_v54, %v1038_v45  ;;  %v5827_v22 = vpack.c.bf16 %v653_v12, %v653_v12  ;;  %v1222_v44 = vshrl.u32 %v6950_v55, 16  ;;  %v1050_v53 = vld [vmem:[#allocation2 + $0x84] sm:$0x1] }
 0x130   :  { %1037 = vst [vmem:[#allocation2 + $0x70] sm:$0xf] %v1036_v0  ;;  %1040 = vst [vmem:[#allocation2 + $0x74] sm:$0x1] %v1039_v1  ;;  %v904_v17 = vor.u32 %v902_v59, %v901_v4  ;;  %v654_v19 = vmax.f32 %v634_v62, 0.0  ;;  %v7053_v56 = vor.u32 %v1219_v30, %v1215_v14  ;;  %v1229_v14 = vshrl.u32 %v6992_v51, 16 }
 0x131   :  { %1494 = vrot.lane.b32.xlu0 %v6969_v21, %s6457_s0  ;;  %v636_v2 = vpop.f32.mrf.mxu0  ;;  %v905_v21 = vrot.slane %v901_v4, 4  ;;  %v907_v31 = vshrl.u32 %v5827_v22, 16  ;;  %v910_v37 = vshll.u32 %v5827_v22, 16  ;;  %v1053_v59 = vld [vmem:[#allocation2 + $0x88] sm:$0xf] }
 0x132   :  { %v1042_v23 = vsel %vm6808_vm6, %v904_v17, %v1041_v8  ;;  %v5828_v3 = vpack.c.bf16 %v654_v19, %v654_v19  ;;  %v637_v29 = vadd.f32 %v6797_v16, %v636_v2  ;;  %v1226_v16 = vrot.slane %v1224_v20, 1  ;;  %v1056_v62 = vld [vmem:[#allocation2 + $0x8c] sm:$0x1]  ;;  %v1059_v17 = vld [vmem:[#allocation2 + $0x90] sm:$0xf] }
 0x133   :  { %1496 = vrot.lane.b32.xlu1 %v5535_v48, %s6457_s0  ;;  %v638_v13 = vpop.f32.mrf.mxu0  ;;  %v1045_v24 = vsel %vm6814_vm7, %v905_v21, %v1044_v10  ;;  %1043 = vst [vmem:[#allocation2 + $0x78] sm:$0xf] %v1042_v23  ;;  %v909_v45 = vrot.slane %v907_v31, 7  ;;  %v1062_v21 = vld [vmem:[#allocation2 + $0x94] sm:$0x1] }
 0x134   :  { %1046 = vst [vmem:[#allocation2 + $0x7c] sm:$0x1] %v1045_v24  ;;  %v915_v38 = vshrl.u32 %v5828_v3, 16  ;;  %v918_v41 = vshll.u32 %v5828_v3, 16  ;;  %v655_v39 = vmax.f32 %v637_v29, 0.0  ;;  %v7057_v55 = vor.u32 %v1226_v16, %v1222_v44 }
 0x135   :  { %1354 = vrot.lane.b32.xlu0 %v6947_v52, %s6457_s0  ;;  %v912_v57 = vor.u32 %v910_v37, %v909_v45  ;;  %v913_v58 = vrot.slane %v909_v45, 4  ;;  %v5537_v24 = vcombine.low %v6977_v33, %v6977_v33  ;;  %v1231_v3 = vshll.u32 %v6992_v51, 16  ;;  %v1082_v31 = vld [vmem:[#allocation2 + $0x40] sm:$0xf]  ;;  %v1083_v44 = vld [vmem:[#allocation2 + $0x44] sm:$0x1] }
 0x136   :  { %v917_v54 = vrot.slane %v915_v38, 7  ;;  %v5829_v1 = vpack.c.bf16 %v655_v39, %v655_v39  ;;  %v1238_v29 = vshll.u32 %v6984_v40, 16  ;;  %v5538_v37 = vcombine.low %v1082_v31, %v1082_v31  ;;  %v7105_v45 = vld [vmem:[#allocation2 + $0x58] sm:$0xf] }
 0x137   :  { %1356 = vrot.lane.b32.xlu1 %v6957_v61, %s6457_s0  ;;  %v1048_v2 = vsel %vm6808_vm6, %v912_v57, %v1047_v47  ;;  %v1051_v4 = vsel %vm6814_vm7, %v913_v58, %v1050_v53  ;;  %v1233_v30 = vrot.slane %v1231_v3, 1  ;;  %v1236_v38 = vshrl.u32 %v6984_v40, 16  ;;  %v1089_v47 = vld [vmem:[#allocation2 + $0x5c] sm:$0x1] }
 0x138   :  { %v921_v0 = vrot.slane %v917_v54, 4  ;;  %1049 = vst [vmem:[#allocation2 + $0x80] sm:$0xf] %v1048_v2  ;;  %1052 = vst [vmem:[#allocation2 + $0x84] sm:$0x1] %v1051_v4  ;;  %v923_v10 = vshrl.u32 %v5829_v1, 16  ;;  %v7103_v51 = vcombine.low %v1082_v31, %v1083_v44  ;;  %v5524_v53 = vcombine.low %v7105_v45, %v1089_v47 }
 0x139   :  { %1406 = vrot.lane.b32.xlu0 %v5535_v48, %s6459_s25  ;;  %v920_v48 = vor.u32 %v918_v41, %v917_v54  ;;  %v926_v12 = vshll.u32 %v5829_v1, 16  ;;  %v1240_v41 = vrot.slane %v1238_v29, 1  ;;  %v5539_v57 = vcombine.low %v7105_v45, %v7105_v45  ;;  %v7129_v1 = vpop.permute.xlu1 %1504 }
 0x13a   :  { %v1057_v8 = vsel %vm6814_vm7, %v921_v0, %v1056_v62  ;;  %v925_v13 = vrot.slane %v923_v10, 7  ;;  %9093 = vst [vmem:[#allocation8_spill] sm:$0xff] %v7103_v51  ;;  %v9061_v40 = vrot.slane %v7103_v51, 1  ;;  %v1339_v54 = vrot.slane %v5524_v53, 1  ;;  %v7124_v62 = vld [vmem:[#allocation2 + $0x60] sm:$0xf] }
 0x13b   :  { %1408 = vrot.lane.b32.xlu1 %v5536_v42, %s6459_s25  ;;  %v1054_v6 = vsel %vm6808_vm6, %v920_v48, %v1053_v59  ;;  %1058 = vst [vmem:[#allocation2 + $0x8c] sm:$0x1] %v1057_v8  ;;  %v7099_v16 = vor.u32 %v1240_v41, %v1236_v38  ;;  %v1439_v39 = vshll.u32 %v7103_v51, 16  ;;  %v1437_v58 = vshrl.u32 %v7103_v51, 16  ;;  %v1091_v48 = vld [vmem:[#allocation2 + $0x64] sm:$0x1] }
 0x13c   :  { %1055 = vst [vmem:[#allocation2 + $0x88] sm:$0xf] %v1054_v6  ;;  %v928_v19 = vor.u32 %v926_v12, %v925_v13  ;;  %v929_v20 = vrot.slane %v925_v13, 4  ;;  %v5540_v0 = vcombine.low %v7124_v62, %v7124_v62  ;;  %v1252_v2 = vshll.u32 %v5524_v53, 16  ;;  %v7169_v41 = vld [vmem:[#allocation2 + $0x70] sm:$0xf] }
 0x13d   :  { %1546 = vrot.lane.b32.xlu0 %v7053_v56, %s6459_s25  ;;  %v1441_v59 = vrot.slane %v1439_v39, 1  ;;  %v5525_v6 = vcombine.low %v7124_v62, %v1091_v48  ;;  %v1250_v10 = vshrl.u32 %v5524_v53, 16  ;;  %v7141_v13 = vpop.permute.xlu1 %1520  ;;  %v5542_v44 = vcombine.low %v7169_v41, %v7169_v41 }
 0x13e   :  { %v1060_v22 = vsel %vm6808_vm6, %v928_v19, %v1059_v17  ;;  %v1063_v23 = vsel %vm6814_vm7, %v929_v20, %v1062_v21  ;;  %v1254_v12 = vrot.slane %v1252_v2, 1  ;;  %v7146_v21 = vld [vmem:[#allocation2 + $0x68] sm:$0xf]  ;;  %v1093_v19 = vld [vmem:[#allocation2 + $0x6c] sm:$0x1]  ;;  %v7148_v20 = vpop.permute.xlu0 %1346 }
 0x13f   :  { %1548 = vrot.lane.b32.xlu1 %v7057_v55, %s6459_s25  ;;  %1061 = vst [vmem:[#allocation2 + $0x90] sm:$0xf] %v1060_v22  ;;  %1064 = vst [vmem:[#allocation2 + $0x94] sm:$0x1] %v1063_v23  ;;  %v7132_v4 = vor.u32 %v1441_v59, %v1437_v58  ;;  %v7137_v8 = vrot.slane %v5525_v6, 1  ;;  %v5541_v22 = vcombine.low %v7146_v21, %v7146_v21  ;;  %v1259_v3 = vshll.u32 %v5525_v6, 16 }
 0x140   :  { %v7144_v17 = vor.u32 %v1254_v12, %v1250_v10  ;;  %v7184_v58 = vld [vmem:[%s9053_s2 + $0x88] sm:$0xff]   ;;  %v1095_v59 = vld [vmem:[#allocation2 + $0x74] sm:$0x1]  ;;  %v7221_v36 = vld [vmem:[#allocation2 + $0x80] sm:$0xf] }
 0x141   :  { %1460 = vrot.lane.b32.xlu0 %v6957_v61, %s6458_s24  ;;  %9094 = vst [vmem:[#allocation9_spill] sm:$0xff] %v7137_v8  ;;  %v7155_v23 = vpop.permute.xlu1 %1298  ;;  %v1261_v38 = vrot.slane %v1259_v3, 1  ;;  %6174 = vmatprep.subr.bf16.mxu1 %v7184_v58  ;;  %v5527_v2 = vcombine.low %v7169_v41, %v1095_v59  ;;  %v5544_v32 = vcombine.low %v7221_v36, %v7221_v36 }
 0x142   :  { %v7159_v29 = vpop.permute.xlu0 %1362 }
 0x143   :  { %1462 = vrot.lane.b32.xlu1 %v7001_v60, %s6458_s24  ;;  %v7198_v10 = vrot.slane %v5527_v2, 1 }
 0x145   :  { %1306 = vrot.lane.b32.xlu0 %v7053_v56, %s6458_s24  ;;  %9096 = vst [vmem:[#allocation11_spill] sm:$0xff] %v7198_v10 }
 0x147   :  { %1308 = vrot.lane.b32.xlu1 %v7057_v55, %s6458_s24 }
 0x149   :  { %1498 = vrot.lane.b32.xlu0 %v5536_v42, %s6457_s0  ;;  %v7095_v42 = vor.u32 %v1233_v30, %v1229_v14  ;;  %v7165_v30 = vpop.permute.xlu1 %1556 }
 0x14b   :  { %1500 = vrot.lane.b32.xlu1 %v5537_v24, %s6457_s0 }
 0x14d   :  { %1358 = vrot.lane.b32.xlu0 %v7001_v60, %s6457_s0  ;;  %v7177_v39 = vpop.permute.xlu1 %1572 }
 0x14f   :  { %1360 = vrot.lane.b32.xlu1 %v7004_v9, %s6457_s0 }
 0x151   :  { %1410 = vrot.lane.b32.xlu0 %v5537_v24, %s6459_s25  ;;  %v5526_v24 = vcombine.low %v7146_v21, %v1093_v19 }
 0x153   :  { %1412 = vrot.lane.b32.xlu1 %v5538_v37, %s6459_s25  ;;  %v7163_v14 = vrot.slane %v5526_v24, 1  ;;  %v1266_v31 = vshll.u32 %v5526_v24, 16  ;;  %v1264_v47 = vshrl.u32 %v5526_v24, 16  ;;  %v1097_v24 = vld [vmem:[#allocation2 + $0x7c] sm:$0x1] }
 0x155   :  { %1550 = vrot.lane.b32.xlu0 %v7095_v42, %s6459_s25  ;;  %9095 = vst [vmem:[#allocation10_spill] sm:$0xff] %v7163_v14  ;;  %v1268_v53 = vrot.slane %v1266_v31, 1 }
 0x157   :  { %1552 = vrot.lane.b32.xlu1 %v7099_v16, %s6459_s25  ;;  %v7188_v48 = vor.u32 %v1268_v53, %v1264_v47  ;;  %v1273_v53 = vshll.u32 %v5527_v2, 16 }
 0x159   :  { %1464 = vrot.lane.b32.xlu0 %v7004_v9, %s6458_s24  ;;  %v1275_v46 = vrot.slane %v1273_v53, 1  ;;  %v1099_v53 = vld [vmem:[#allocation2 + $0x84] sm:$0x1] }
 0x15b   :  { %1466 = vrot.lane.b32.xlu1 %v9061_v40, %s6458_s24 }
 0x15d   :  { %1310 = vrot.lane.b32.xlu0 %v7095_v42, %s6458_s24 }
 0x15f   :  { %1312 = vrot.lane.b32.xlu1 %v7099_v16, %s6458_s24 }
 0x161   :  { %1502 = vrot.lane.b32.xlu0 %v5538_v37, %s6457_s0  ;;  %v1257_v37 = vshrl.u32 %v5525_v6, 16 }
 0x163   :  { %1364 = vrot.lane.b32.xlu1 %v1339_v54, %s6457_s0 }
 0x165   :  { %1414 = vrot.lane.b32.xlu0 %v5539_v57, %s6459_s25  ;;  %v7179_v57 = vor.u32 %v1261_v38, %v1257_v37 }
 0x167   :  { %1416 = vrot.lane.b32.xlu1 %v5540_v0, %s6459_s25 }
 0x169   :  { %1554 = vrot.lane.b32.xlu0 %v7132_v4, %s6459_s25 }
 0x16b   :  { %1470 = vrot.lane.b32.xlu1 %v7137_v8, %s6458_s24 }
 0x16d   :  { %1468 = vrot.lane.b32.xlu0 %v1339_v54, %s6458_s24  ;;  %v7174_v54 = vpop.permute.xlu0 %1314 }
 0x16f   :  { %1316 = vrot.lane.b32.xlu1 %v7144_v17, %s6458_s24 }
 0x171   :  { %1506 = vrot.lane.b32.xlu0 %v5540_v0, %s6457_s0 }
 0x173   :  { %1508 = vrot.lane.b32.xlu1 %v5541_v22, %s6457_s0 }
 0x175   :  { %1366 = vrot.lane.b32.xlu0 %v7137_v8, %s6457_s0 }
 0x177   :  { %1368 = vrot.lane.b32.xlu1 %v7163_v14, %s6457_s0 }
 0x179   :  { %1418 = vrot.lane.b32.xlu0 %v5541_v22, %s6459_s25  ;;  %v7204_v22 = vld [vmem:[#allocation2 + $0x78] sm:$0xf] }
 0x17a   :  { %v5543_v31 = vcombine.low %v7204_v22, %v7204_v22  ;;  %v5528_v38 = vcombine.low %v7204_v22, %v1097_v24 }
 0x17b   :  { %1420 = vrot.lane.b32.xlu1 %v5542_v44, %s6459_s25 }
 0x17c   :  { %v7215_v40 = vrot.slane %v5528_v38, 1  ;;  %v1280_v34 = vshll.u32 %v5528_v38, 16  ;;  %v1278_v7 = vshrl.u32 %v5528_v38, 16 }
 0x17d   :  { %1558 = vrot.lane.b32.xlu0 %v7179_v57, %s6459_s25 }
 0x17f   :  { %v7191_v0 = vpop.permute.xlu0 %1398  ;;  %1560 = vrot.lane.b32.xlu1 %v7188_v48, %s6459_s25 }
 0x181   :  { %v1349_v6 = vpop.permute.xlu1 %1348  ;;  %1472 = vrot.lane.b32.xlu0 %v7163_v14, %s6458_s24 }
 0x183   :  { %v1453_v12 = vpop.permute.xlu0 %1452  ;;  %1474 = vrot.lane.b32.xlu1 %v7198_v10, %s6458_s24 }
 0x185   :  { %v1401_v19 = vpop.permute.xlu1 %1400  ;;  %1318 = vrot.lane.b32.xlu0 %v7179_v57, %s6458_s24 }
 0x187   :  { %v1491_v3 = vpop.permute.xlu0 %1490  ;;  %1320 = vrot.lane.b32.xlu1 %v7188_v48, %s6458_s24 }
 0x189   :  { %1510 = vrot.lane.b32.xlu0 %v5542_v44, %s6457_s0  ;;  %v1301_v37 = vpop.permute.xlu1 %1300  ;;  %v1271_v44 = vshrl.u32 %v5527_v2, 16 }
 0x18a   :  { %v1582_v8 = vsel %vm1576_vm8, %v6840_v18, %v1301_v37  ;;  %v6448_v37 = vld [vmem:[#allocation2] sm:$0xf] }
 0x18b   :  { %v1455_v47 = vpop.permute.xlu0 %1454  ;;  %1512 = vrot.lane.b32.xlu1 %v5543_v31, %s6457_s0  ;;  %v7233_v2 = vor.u32 %v1275_v46, %v1271_v44  ;;  %v1579_v38 = vsel %vm1576_vm8, %v6448_v37, %v7155_v23  ;;  %v5529_v44 = vcombine.low %v7221_v36, %v1099_v53 }
 0x18c   :  { %v1696_v18 = vsel %vm1576_vm8, %v6981_v35, %v1455_v47  ;;  %v1627_v47 = vsel %vm1625_vm9, %v1579_v38, %v7148_v20  ;;  %v6335_v20 = vld [vmem:[%s9053_s2 + $0x80] sm:$0xff]  }
 0x18d   :  { %1370 = vrot.lane.b32.xlu0 %v7198_v10, %s6457_s0  ;;  %v1493_v59 = vpop.permute.xlu1 %1492  ;;  %v1282_v10 = vrot.slane %v1280_v34, 1  ;;  %v1629_v34 = vsel %vm1625_vm9, %v1582_v8, %v1349_v6  ;;  %v7255_v6 = vrot.slane %v5529_v44, 1 }
 0x18e   :  { %v1742_v8 = vsel %vm1625_vm9, %v1696_v18, %v1493_v59  ;;  %v1662_v23 = vsel %vm1658_vm10, %v1629_v34, %v1401_v19 }
 0x18f   :  { %v7217_v11 = vpop.permute.xlu0 %1350  ;;  %1372 = vrot.lane.b32.xlu1 %v7215_v40, %s6457_s0  ;;  %v7239_v51 = vor.u32 %v1282_v10, %v1278_v7  ;;  %v1693_v7 = vsel %vm1576_vm8, %v6900_v15, %v1453_v12  ;;  %9097 = vst [vmem:[#allocation12_spill] sm:$0xff] %v7255_v6  ;;  %v7262_v15 = vld [vmem:[#allocation2 + $0x88] sm:$0xf]  ;;  %v1101_v12 = vld [vmem:[#allocation2 + $0x8c] sm:$0x1] }
 0x190   :  { %v1740_v10 = vsel %vm1625_vm9, %v1693_v7, %v1491_v3  ;;  %v1660_v3 = vsel %vm1658_vm10, %v1627_v47, %v7191_v0  ;;  %v5530_v34 = vcombine.low %v7262_v15, %v1101_v12  ;;  %v7278_v0 = vcombine.low %v7262_v15, %v7262_v15 }
 0x191   :  { %1422 = vrot.lane.b32.xlu0 %v5543_v31, %s6459_s25  ;;  %v7224_v24 = vpop.permute.xlu1 %1352  ;;  %v5554_v7 = vcombine.low %v1660_v3, %v1662_v23  ;;  %v1285_v23 = vshrl.u32 %v5529_v44, 16 }
 0x192   :  { %v7286_v3 = vrot.slane %v5530_v34, 1 }
 0x193   :  { %v7230_v14 = vpop.permute.xlu0 %1402  ;;  %1424 = vrot.lane.b32.xlu1 %v5544_v32, %s6459_s25 }
 0x194   :  { %9098 = vst [vmem:[#allocation13_spill] sm:$0xff] %v7286_v3 }
 0x195   :  { %1562 = vrot.lane.b32.xlu0 %v7233_v2, %s6459_s25  ;;  %v7237_v31 = vpop.permute.xlu1 %1404 }
 0x197   :  { %v1543_v46 = vpop.permute.xlu0 %1542  ;;  %1564 = vrot.lane.b32.xlu1 %v7239_v51, %s6459_s25 }
 0x198   :  { %v1772_v53 = vsel %vm1658_vm10, %v1740_v10, %v1543_v46  ;;  %v1287_v46 = vshll.u32 %v5529_v44, 16  ;;  %v1294_v10 = vshll.u32 %v5530_v34, 16  ;;  %v1103_v44 = vld [vmem:[#allocation2 + $0x94] sm:$0x1] }
 0x199   :  { %1476 = vrot.lane.b32.xlu0 %v7215_v40, %s6458_s24  ;;  %v1545_v35 = vpop.permute.xlu1 %1544 }
 0x19a   :  { %v1774_v37 = vsel %vm1658_vm10, %v1742_v8, %v1545_v35  ;;  %v1289_v47 = vrot.slane %v1287_v46, 1 }
 0x19b   :  { %v1457_v59 = vpop.permute.xlu0 %1456  ;;  %1478 = vrot.lane.b32.xlu1 %v7255_v6, %s6458_s24  ;;  %v5555_v18 = vcombine.low %v1772_v53, %v1774_v37  ;;  %v1292_v53 = vshrl.u32 %v5530_v34, 16  ;;  %v1296_v37 = vrot.slane %v1294_v10, 1 }
 0x19d   :  { %1322 = vrot.lane.b32.xlu0 %v7233_v2, %s6458_s24  ;;  %v1459_v19 = vpop.permute.xlu1 %1458  ;;  %2129 = vmatprep.mubr.bf16.mxu1 %v5555_v18  ;;  %v7292_v18 = vor.u32 %v1296_v37, %v1292_v53 }
 0x19e   :  { %2130 = vmatmul.mubr.bf16.vlgmr.msra.gmra.mxu1 %v5554_v7  ;;  %v1102_v7 = vld [vmem:[#allocation2 + $0x90] sm:$0xf] }
 0x19f   :  { %v1303_v38 = vpop.permute.xlu0 %1302  ;;  %1324 = vrot.lane.b32.xlu1 %v7239_v51, %s6458_s24  ;;  %6175 = vmatpush3.bf16.msra.mxu1 %v7184_v58  ;;  %v7300_v34 = vcombine.low %v1102_v7, %v1103_v44 }
 0x1a0   :  { %6176 = vmatprep.subr.bf16.mxu1 %v6335_v20 }
 0x1a1   :  { %1514 = vrot.lane.b32.xlu0 %v5544_v32, %s6457_s0  ;;  %v1305_v8 = vpop.permute.xlu1 %1304  ;;  %v7290_v32 = vor.u32 %v1289_v47, %v1285_v23  ;;  %v1585_v23 = vsel %vm1576_vm8, %v6865_v43, %v1303_v38  ;;  %v9072_v53 = vrot.slane %v7300_v34, 1  ;;  %v1702_v43 = vsel %vm1576_vm8, %v7053_v56, %v1459_v19 }
 0x1a2   :  { %v1588_v46 = vsel %vm1576_vm8, %v6893_v5, %v1305_v8  ;;  %v1446_v5 = vshll.u32 %v7300_v34, 16  ;;  %v1699_v8 = vsel %vm1576_vm8, %v6989_v49, %v1457_v59  ;;  %v1631_v38 = vsel %vm1625_vm9, %v1585_v23, %v7217_v11 }
 0x1a3   :  { %v1495_v35 = vpop.permute.xlu0 %1494  ;;  %1516 = vrot.lane.b32.xlu1 %v7278_v0, %s6457_s0  ;;  %6177 = vmatpush3.bf16.msra.mxu1 %v6335_v20  ;;  %v1633_v37 = vsel %vm1625_vm9, %v1588_v46, %v7224_v24  ;;  %v5546_v59 = vcombine.low %v1102_v7, %v1102_v7  ;;  %v1664_v11 = vsel %vm1658_vm10, %v1631_v38, %v7230_v14 }
 0x1a4   :  { %v1744_v44 = vsel %vm1625_vm9, %v1699_v8, %v1495_v35  ;;  %v1444_v35 = vshrl.u32 %v7300_v34, 16 }
 0x1a5   :  { %1374 = vrot.lane.b32.xlu0 %v7255_v6, %s6457_s0  ;;  %v1497_v12 = vpop.permute.xlu1 %1496 }
 0x1a6   :  { %v1746_v24 = vsel %vm1625_vm9, %v1702_v43, %v1497_v12  ;;  %v1448_v12 = vrot.slane %v1446_v5, 1 }
 0x1a7   :  { %v1355_v58 = vpop.permute.xlu0 %1354  ;;  %1376 = vrot.lane.b32.xlu1 %v7286_v3, %s6457_s0 }
 0x1a9   :  { %1566 = vrot.lane.b32.xlu0 %v7290_v32, %s6459_s25  ;;  %v1357_v20 = vpop.permute.xlu1 %1356 }
 0x1ab   :  { %v1407_v10 = vpop.permute.xlu0 %1406  ;;  %1568 = vrot.lane.b32.xlu1 %v7292_v18, %s6459_s25 }
 0x1ad   :  { %1480 = vrot.lane.b32.xlu0 %v7286_v3, %s6458_s24  ;;  %v1409_v47 = vpop.permute.xlu1 %1408 }
 0x1af   :  { %v1547_v6 = vpop.permute.xlu0 %1546  ;;  %1482 = vrot.lane.b32.xlu1 %v9072_v53, %s6458_s24  ;;  %v1666_v53 = vsel %vm1658_vm10, %v1633_v37, %v7237_v31 }
 0x1b0   :  { %v1776_v3 = vsel %vm1658_vm10, %v1744_v44, %v1547_v6  ;;  %v5557_v23 = vcombine.low %v1664_v11, %v1666_v53 }
 0x1b1   :  { %1326 = vrot.lane.b32.xlu0 %v7290_v32, %s6458_s24  ;;  %v1549_v46 = vpop.permute.xlu1 %1548 }
 0x1b2   :  { %v1778_v49 = vsel %vm1658_vm10, %v1746_v24, %v1549_v46 }
 0x1b3   :  { %v5558_v56 = vcombine.low %v1776_v3, %v1778_v49  ;;  %v1461_v19 = vpop.permute.xlu0 %1460  ;;  %1328 = vrot.lane.b32.xlu1 %v7292_v18, %s6458_s24  ;;  %v7334_v3 = vor.u32 %v1448_v12, %v1444_v35 }
 0x1b4   :  { %v1705_v49 = vsel %vm1576_vm8, %v7057_v55, %v1461_v19 }
 0x1b5   :  { %1518 = vrot.lane.b32.xlu0 %v5546_v59, %s6457_s0  ;;  %v1463_v31 = vpop.permute.xlu1 %1462  ;;  %2137 = vmatprep.mubr.bf16.mxu1 %v5558_v56 }
 0x1b6   :  { %2138 = vmatmul.mubr.bf16.gmra.mxu1 %v5557_v23 }
 0x1b7   :  { %v1307_v6 = vpop.permute.xlu0 %1306  ;;  %1428 = vrot.lane.b32.xlu1 %v5546_v59, %s6459_s25 }
 0x1b8   :  { %v1591_v38 = vsel %vm1576_vm8, %v6911_v27, %v1307_v6 }
 0x1b9   :  { %1570 = vrot.lane.b32.xlu0 %v7334_v3, %s6459_s25  ;;  %v1309_v7 = vpop.permute.xlu1 %1308  ;;  %v1635_v59 = vsel %vm1625_vm9, %v1591_v38, %v1355_v58 }
 0x1ba   :  { %v1594_v8 = vsel %vm1576_vm8, %v6943_v50, %v1309_v7  ;;  %v1668_v55 = vsel %vm1658_vm10, %v1635_v59, %v1407_v10 }
 0x1bb   :  { %v1499_v37 = vpop.permute.xlu0 %1498  ;;  %v1637_v24 = vsel %vm1625_vm9, %v1594_v8, %v1357_v20 }
 0x1bc   :  { %v1748_v56 = vsel %vm1625_vm9, %v1705_v49, %v1499_v37  ;;  %v1670_v35 = vsel %vm1658_vm10, %v1637_v24, %v1409_v47 }
 0x1bd   :  { %1426 = vrot.lane.b32.xlu0 %v7278_v0, %s6459_s25  ;;  %v1501_v14 = vpop.permute.xlu1 %1500  ;;  %v1708_v0 = vsel %vm1576_vm8, %v7095_v42, %v1463_v31  ;;  %v5560_v19 = vcombine.low %v1668_v55, %v1670_v35  ;;  %v6449_v55 = vld [vmem:[#allocation2 + $0x50] sm:$0xf] }
 0x1be   :  { %v1750_v50 = vsel %vm1625_vm9, %v1708_v0, %v1501_v14 }
 0x1bf   :  { %v1359_v53 = vpop.permute.xlu0 %1358 }
 0x1c1   :  { %v1361_v5 = vpop.permute.xlu1 %1360 }
 0x1c3   :  { %v1411_v43 = vpop.permute.xlu0 %1410 }
 0x1c5   :  { %v1413_v44 = vpop.permute.xlu1 %1412 }
 0x1c7   :  { %v1551_v46 = vpop.permute.xlu0 %1550 }
 0x1c8   :  { %v1780_v27 = vsel %vm1658_vm10, %v1748_v56, %v1551_v46 }
 0x1c9   :  { %v1553_v11 = vpop.permute.xlu1 %1552 }
 0x1ca   :  { %v1782_v20 = vsel %vm1658_vm10, %v1750_v50, %v1553_v11 }
 0x1cb   :  { %v5561_v12 = vcombine.low %v1780_v27, %v1782_v20  ;;  %v1465_v23 = vpop.permute.xlu0 %1464 }
 0x1cc   :  { %v1711_v46 = vsel %vm1576_vm8, %v7099_v16, %v1465_v23 }
 0x1cd   :  { %v1467_v6 = vpop.permute.xlu1 %1466  ;;  %2145 = vmatprep.mubr.bf16.mxu1 %v5561_v12 }
 0x1ce   :  { %2146 = vmatmul.mubr.bf16.gmra.mxu1 %v5560_v19  ;;  %v1714_v47 = vsel %vm1576_vm8, %v7132_v4, %v1467_v6 }
 0x1cf   :  { %v1311_v42 = vpop.permute.xlu0 %1310  ;;  %v1754_v38 = vsel %vm1625_vm9, %v1714_v47, %v7129_v1 }
 0x1d0   :  { %v1597_v14 = vsel %vm1576_vm8, %v6975_v25, %v1311_v42  ;;  %v1786_v25 = vsel %vm1658_vm10, %v1754_v38, %v7165_v30 }
 0x1d1   :  { %v1313_v58 = vpop.permute.xlu1 %1312  ;;  %v1639_v49 = vsel %vm1625_vm9, %v1597_v14, %v1359_v53 }
 0x1d2   :  { %v1600_v7 = vsel %vm1576_vm8, %v6977_v33, %v1313_v58  ;;  %v1672_v1 = vsel %vm1658_vm10, %v1639_v49, %v1411_v43  ;;  %v1603_v43 = vsel %vm1576_vm8, %v6449_v55, %v7174_v54 }
 0x1d3   :  { %v1503_v31 = vpop.permute.xlu0 %1502  ;;  %v1641_v10 = vsel %vm1625_vm9, %v1600_v7, %v1361_v5 }
 0x1d4   :  { %v1752_v33 = vsel %vm1625_vm9, %v1711_v46, %v1503_v31  ;;  %v1674_v4 = vsel %vm1658_vm10, %v1641_v10, %v1413_v44 }
 0x1d5   :  { %v1365_v37 = vpop.permute.xlu1 %1364  ;;  %v5563_v50 = vcombine.low %v1672_v1, %v1674_v4 }
 0x1d7   :  { %v1415_v8 = vpop.permute.xlu0 %1414 }
 0x1d9   :  { %v1417_v24 = vpop.permute.xlu1 %1416 }
 0x1db   :  { %v1555_v0 = vpop.permute.xlu0 %1554 }
 0x1dc   :  { %v1784_v59 = vsel %vm1658_vm10, %v1752_v33, %v1555_v0 }
 0x1dd   :  { %v5564_v5 = vcombine.low %v1784_v59, %v1786_v25  ;;  %v1471_v56 = vpop.permute.xlu1 %1470 }
 0x1de   :  { %v1720_v6 = vsel %vm1576_vm8, %v7179_v57, %v1471_v56 }
 0x1df   :  { %v1469_v11 = vpop.permute.xlu0 %1468  ;;  %2153 = vmatprep.mubr.bf16.mxu1 %v5564_v5 }
 0x1e0   :  { %2154 = vmatmul.mubr.bf16.gmra.mxu1 %v5563_v50  ;;  %v1717_v42 = vsel %vm1576_vm8, %v7144_v17, %v1469_v11 }
 0x1e1   :  { %v1317_v16 = vpop.permute.xlu1 %1316 }
 0x1e2   :  { %v1606_v44 = vsel %vm1576_vm8, %v7105_v45, %v1317_v16 }
 0x1e3   :  { %v1507_v53 = vpop.permute.xlu0 %1506  ;;  %v1645_v30 = vsel %vm1625_vm9, %v1606_v44, %v1365_v37  ;;  %v1643_v37 = vsel %vm1625_vm9, %v1603_v43, %v7159_v29 }
 0x1e4   :  { %v1756_v58 = vsel %vm1625_vm9, %v1717_v42, %v1507_v53  ;;  %v1678_v7 = vsel %vm1658_vm10, %v1645_v30, %v1417_v24  ;;  %v1676_v14 = vsel %vm1658_vm10, %v1643_v37, %v1415_v8 }
 0x1e5   :  { %v1509_v35 = vpop.permute.xlu1 %1508  ;;  %v5566_v38 = vcombine.low %v1676_v14, %v1678_v7 }
 0x1e6   :  { %v1758_v31 = vsel %vm1625_vm9, %v1720_v6, %v1509_v35 }
 0x1e7   :  { %v1367_v27 = vpop.permute.xlu0 %1366 }
 0x1e9   :  { %v1369_v20 = vpop.permute.xlu1 %1368 }
 0x1eb   :  { %v1419_v12 = vpop.permute.xlu0 %1418 }
 0x1ed   :  { %v1421_v23 = vpop.permute.xlu1 %1420 }
 0x1ef   :  { %v1559_v19 = vpop.permute.xlu0 %1558 }
 0x1f0   :  { %v1788_v47 = vsel %vm1658_vm10, %v1756_v58, %v1559_v19 }
 0x1f1   :  { %v1561_v45 = vpop.permute.xlu1 %1560 }
 0x1f2   :  { %v1790_v54 = vsel %vm1658_vm10, %v1758_v31, %v1561_v45 }
 0x1f3   :  { %v5567_v57 = vcombine.low %v1788_v47, %v1790_v54  ;;  %v1473_v10 = vpop.permute.xlu0 %1472 }
 0x1f4   :  { %v1723_v1 = vsel %vm1576_vm8, %v7188_v48, %v1473_v10 }
 0x1f5   :  { %v1475_v17 = vpop.permute.xlu1 %1474  ;;  %2161 = vmatprep.mubr.bf16.mxu1 %v5567_v57 }
 0x1f6   :  { %2162 = vmatmul.mubr.bf16.gmra.mxu1 %v5566_v38  ;;  %v1726_v50 = vsel %vm1576_vm8, %v7233_v2, %v1475_v17 }
 0x1f7   :  { %v1319_v46 = vpop.permute.xlu0 %1318 }
 0x1f8   :  { %v1609_v25 = vsel %vm1576_vm8, %v7124_v62, %v1319_v46 }
 0x1f9   :  { %v1321_v49 = vpop.permute.xlu1 %1320  ;;  %v1647_v11 = vsel %vm1625_vm9, %v1609_v25, %v1367_v27 }
 0x1fa   :  { %v1612_v29 = vsel %vm1576_vm8, %v7146_v21, %v1321_v49  ;;  %v1680_v48 = vsel %vm1658_vm10, %v1647_v11, %v1419_v12 }
 0x1fb   :  { %v1511_v33 = vpop.permute.xlu0 %1510  ;;  %v1649_v5 = vsel %vm1625_vm9, %v1612_v29, %v1369_v20 }
 0x1fc   :  { %v1760_v16 = vsel %vm1625_vm9, %v1723_v1, %v1511_v33  ;;  %v1682_v35 = vsel %vm1658_vm10, %v1649_v5, %v1421_v23 }
 0x1fd   :  { %v1513_v0 = vpop.permute.xlu1 %1512  ;;  %v5569_v55 = vcombine.low %v1680_v48, %v1682_v35  ;;  %v1574_v35 = vrot.slane %v6781_v63, 1  ;;  %v9105_v48 = vld [vmem:[#allocation9_spill] sm:$0xff] }
 0x1fe   :  { %v1762_v21 = vsel %vm1625_vm9, %v1726_v50, %v1513_v0  ;;  %v9109_v63 = vld [vmem:[#allocation5_spill] sm:$0xff] }
 0x1ff   :  { %v1371_v24 = vpop.permute.xlu0 %1370 }
 0x201   :  { %v1373_v4 = vpop.permute.xlu1 %1372 }
 0x203   :  { %v1423_v59 = vpop.permute.xlu0 %1422 }
 0x205   :  { %v1425_v8 = vpop.permute.xlu1 %1424 }
 0x207   :  { %v1563_v56 = vpop.permute.xlu0 %1562 }
 0x208   :  { %v1792_v62 = vsel %vm1658_vm10, %v1760_v16, %v1563_v56 }
 0x209   :  { %v1565_v53 = vpop.permute.xlu1 %1564 }
 0x20a   :  { %v1794_v20 = vsel %vm1658_vm10, %v1762_v21, %v1565_v53  ;;  %v9101_v53 = vcombine.low %v7001_v60, %v7004_v9  ;;  %v1575_v9 = vrot.slane %v9109_v63, 1 }
 0x20b   :  { %v5570_v44 = vcombine.low %v1792_v62, %v1794_v20  ;;  %v1477_v30 = vpop.permute.xlu0 %1476  ;;  %v9102_v62 = vld [vmem:[#allocation8_spill] sm:$0xff] }
 0x20c   :  { %v1729_v12 = vsel %vm1576_vm8, %v7239_v51, %v1477_v30  ;;  %v9103_v20 = vrot.slane %v9102_v62, 1  ;;  %v9104_v30 = vld [vmem:[#allocation10_spill] sm:$0xff] }
 0x20d   :  { %v1479_v43 = vpop.permute.xlu1 %1478  ;;  %2169 = vmatprep.mubr.bf16.mxu1 %v5570_v44 }
 0x20e   :  { %2170 = vmatmul.mubr.bf16.gmra.mxu1 %v5569_v55  ;;  %v1732_v37 = vsel %vm1576_vm8, %v7290_v32, %v1479_v43  ;;  %v5565_v44 = vcombine.low %v9103_v20, %v1574_v35  ;;  %v9108_v55 = vld [vmem:[#allocation12_spill] sm:$0xff]  ;;  %v9110_v43 = vrot.slane %v7300_v34, 1 }
 0x20f   :  { %v1323_v2 = vpop.permute.xlu0 %1322 }
 0x210   :  { %v1615_v58 = vsel %vm1576_vm8, %v7169_v41, %v1323_v2  ;;  %v5577_v2 = vcombine.low %v9110_v43, %v1575_v9 }
 0x211   :  { %v1325_v27 = vpop.permute.xlu1 %1324  ;;  %v1651_v47 = vsel %vm1625_vm9, %v1615_v58, %v1371_v24 }
 0x212   :  { %v1618_v42 = vsel %vm1576_vm8, %v7204_v22, %v1325_v27  ;;  %v1684_v51 = vsel %vm1658_vm10, %v1651_v47, %v1423_v59  ;;  %v2629_v27 = vld [vmem:[#allocation3] sm:$0xf] }
 0x213   :  { %v1515_v19 = vpop.permute.xlu0 %1514  ;;  %v1653_v45 = vsel %vm1625_vm9, %v1618_v42, %v1373_v4 }
 0x214   :  { %v1764_v54 = vsel %vm1625_vm9, %v1729_v12, %v1515_v19  ;;  %v1686_v57 = vsel %vm1658_vm10, %v1653_v45, %v1425_v8  ;;  %v2630_v19 = vld [vmem:[#allocation3 + $0x4] sm:$0x1]  ;;  %v2648_v45 = vld [vmem:[#allocation3 + $0x4c] sm:$0x1]  ;;  %v2649_v12 = vld [vmem:[#allocation3 + $0x50] sm:$0xf] }
 0x215   :  { %v1517_v6 = vpop.permute.xlu1 %1516  ;;  %v5572_v46 = vcombine.low %v1684_v51, %v1686_v57 }
 0x216   :  { %v1766_v22 = vsel %vm1625_vm9, %v1732_v37, %v1517_v6  ;;  %v5620_v6 = vcombine.low %v2629_v27, %v2630_v19  ;;  %v2650_v37 = vld [vmem:[#allocation3 + $0x54] sm:$0x1] }
 0x217   :  { %v1375_v23 = vpop.permute.xlu0 %1374  ;;  %v5628_v47 = vcombine.low %v2649_v12, %v2650_v37 }
 0x218   :  { %v2752_v42 = vshll.u32 %v5620_v6, 16  ;;  %v2893_v34 = vrot.slane %v5620_v6, 1 }
 0x219   :  { %v1377_v31 = vpop.permute.xlu1 %1376  ;;  %v2806_v57 = vshrl.u32 %v5628_v47, 16 }
 0x21b   :  { %v1567_v7 = vpop.permute.xlu0 %1566 }
 0x21c   :  { %v1796_v41 = vsel %vm1658_vm10, %v1764_v54, %v1567_v7 }
 0x21d   :  { %v1569_v14 = vpop.permute.xlu1 %1568 }
 0x21e   :  { %v1798_v10 = vsel %vm1658_vm10, %v1766_v22, %v1569_v14  ;;  %v2808_v22 = vshll.u32 %v5628_v47, 16 }
 0x21f   :  { %v5573_v38 = vcombine.low %v1796_v41, %v1798_v10  ;;  %v1481_v17 = vpop.permute.xlu0 %1480 }
 0x220   :  { %v1735_v29 = vsel %vm1576_vm8, %v7292_v18, %v1481_v17  ;;  %v2810_v41 = vrot.slane %v2808_v22, 1 }
 0x221   :  { %v1483_v49 = vpop.permute.xlu1 %1482  ;;  %2177 = vmatprep.mubr.bf16.mxu1 %v5573_v38 }
 0x222   :  { %2178 = vmatmul.mubr.bf16.gmra.mxu1 %v5572_v46  ;;  %v1738_v33 = vsel %vm1576_vm8, %v7334_v3, %v1483_v49  ;;  %v2811_v17 = vor.u32 %v2810_v41, %v2806_v57  ;;  %v7479_v46 = vld [vmem:[#allocation3 + $0x98] sm:$0xf] }
 0x223   :  { %v1327_v32 = vpop.permute.xlu0 %1326  ;;  %v1770_v4 = vsel %vm1625_vm9, %v1738_v33, %v7141_v13  ;;  %v5655_v33 = vcombine.low %v7479_v46, %v7479_v46 }
 0x224   :  { %v1621_v59 = vsel %vm1576_vm8, %v7221_v36, %v1327_v32  ;;  %v1802_v3 = vsel %vm1658_vm10, %v1770_v4, %v7177_v39  ;;  %v9100_v39 = vcombine.low %v6947_v52, %v6957_v61  ;;  %v9107_v61 = vld [vmem:[#allocation13_spill] sm:$0xff]  ;;  %v2901_v32 = vrot.slane %v5628_v47, 1 }
 0x225   :  { %v1329_v0 = vpop.permute.xlu1 %1328  ;;  %v1655_v18 = vsel %vm1625_vm9, %v1621_v59, %v1375_v23  ;;  %v5574_v60 = vcombine.low %v9108_v55, %v9107_v61  ;;  %v2750_v23 = vshrl.u32 %v5620_v6, 16  ;;  %v6345_v59 = vld [vmem:[%s9055_s4 + $0x88] sm:$0xff]  }
 0x226   :  { %v1624_v5 = vsel %vm1576_vm8, %v7262_v15, %v1329_v0  ;;  %v9099_v15 = vcombine.low %v6916_v28, %v6909_v26  ;;  %v5568_v26 = vcombine.low %v9105_v48, %v9104_v30  ;;  %v9106_v28 = vld [vmem:[#allocation11_spill] sm:$0xff]  ;;  %6194 = vmatprep.subr.bf16.mxu1 %v6345_v59 }
 0x227   :  { %v1519_v24 = vpop.permute.xlu0 %1518  ;;  %v1657_v13 = vsel %vm1625_vm9, %v1624_v5, %v1377_v31  ;;  %v5571_v52 = vcombine.low %v9106_v28, %v7215_v40  ;;  %v2754_v40 = vrot.slane %v2752_v42, 1  ;;  %v2647_v31 = vld [vmem:[#allocation3 + $0x48] sm:$0xf] }
 0x228   :  { %v1768_v25 = vsel %vm1625_vm9, %v1735_v29, %v1519_v24  ;;  %v7471_v7 = vcombine.low %v2647_v31, %v2648_v45  ;;  %v5654_v54 = vcombine.low %v2647_v31, %v2647_v31 }
 0x229   :  { %v1429_v1 = vpop.permute.xlu1 %1428  ;;  %v2755_v58 = vor.u32 %v2754_v40, %v2750_v23 }
 0x22a   :  { %v1690_v16 = vsel %vm1658_vm10, %v1657_v13, %v1429_v1  ;;  %v3094_v14 = vshll.u32 %v7471_v7, 16  ;;  %3067 = vrot.lane.b32.xlu1 %v5654_v54, %s6457_s0  ;;  %v3092_v10 = vshrl.u32 %v7471_v7, 16 }
 0x22b   :  { %v1571_v8 = vpop.permute.xlu0 %1570  ;;  %2861 = vrot.lane.b32.xlu0 %v2755_v58, %s6458_s24 }
 0x22c   :  { %v1800_v56 = vsel %vm1658_vm10, %v1768_v25, %v1571_v8  ;;  %v3096_v38 = vrot.slane %v3094_v14, 1 }
 0x22d   :  { %v5576_v50 = vcombine.low %v1800_v56, %v1802_v3  ;;  %v6347_v3 = vld [vmem:[%s9055_s4 + $0x80] sm:$0xff]  }
 0x22e   :  { %v3097_v51 = vor.u32 %v3096_v38, %v3092_v10 }
 0x22f   :  { %v1427_v11 = vpop.permute.xlu0 %1426  ;;  %2185 = vmatprep.mubr.bf16.mxu1 %v5576_v50  ;;  %2909 = vrot.lane.b32.xlu0 %v2893_v34, %s6457_s0 }
 0x230   :  { %v1688_v36 = vsel %vm1658_vm10, %v1655_v18, %v1427_v11  ;;  %3119 = vrot.lane.b32.xlu1 %v3097_v51, %s6459_s25 }
 0x231   :  { %v5575_v21 = vcombine.low %v1688_v36, %v1690_v16 }
 0x233   :  { %2186 = vmatmul.mubr.bf16.gmra.mxu1 %v5575_v21  ;;  %2877 = vrot.lane.b32.xlu0 %v2811_v17, %s6458_s24 }
 0x234   :  { %6178 = vmatprep.mubr.msk.bf16.mxu1 %vm1576_vm8, %v9099_v15  ;;  %3083 = vrot.lane.b32.xlu1 %v5655_v33, %s6457_s0 }
 0x237   :  { %2925 = vrot.lane.b32.xlu0 %v2901_v32, %s6457_s0 }
 0x23b   :  { %6179 = vmatmul.mubr.msk.bf16.vlgmr.msra.gmra.mxu1 %vm1576_vm8, %v9100_v39 }
 0x23c   :  { %6182 = vmatprep.mubr.msk.bf16.mxu1 %vm1576_vm8, %v9101_v53  ;;  %6195 = vmatpush3.bf16.msra.mxu1 %v6345_v59 }
 0x23d   :  { %6196 = vmatprep.subr.bf16.mxu1 %v6347_v3 }
 0x240   :  { %6197 = vmatpush3.bf16.msra.mxu1 %v6347_v3 }
 0x243   :  { %6183 = vmatmul.mubr.msk.bf16.gmra.mxu1 %vm1576_vm8, %v5565_v44 }
 0x244   :  { %6186 = vmatprep.mubr.msk.bf16.mxu1 %vm1576_vm8, %v5568_v26 }
 0x24b   :  { %6187 = vmatmul.mubr.msk.bf16.gmra.mxu1 %vm1576_vm8, %v5571_v52 }
 0x24c   :  { %6190 = vmatprep.mubr.msk.bf16.mxu1 %vm1576_vm8, %v5574_v60 }
 0x253   :  { %6191 = vmatmul.mubr.msk.bf16.gmra.mxu1 %vm1576_vm8, %v5577_v2  ;;  %v5553_v2 = vld [vmem:[%s9054_s3] ss:$0 sm:$0xff] }
 0x25e   :  { %v5968_v49 = vpop.f32.mrf.mxu1 }
 0x260   :  { %v5969_v0 = vpop.f32.mrf.mxu1 }
 0x261   :  { %v5970_v60 = vadd.f32 %v5969_v0, %v5968_v49 }
 0x262   :  { %v5971_v24 = vpop.f32.mrf.mxu1 }
 0x263   :  { %v2132_v58 = vadd.f32 %v5970_v60, %v5553_v2 }
 0x264   :  { %v5972_v4 = vpop.f32.mrf.mxu1 }
 0x265   :  { %v5973_v9 = vadd.f32 %v5972_v4, %v5971_v24 }
 0x267   :  { %v2135_v37 = vadd.f32 %v5973_v9, %v5553_v2  ;;  %v2535_v9 = vld [vmem:[#allocation3 + $0xc] sm:$0x1] }
 0x276   :  { %v5974_v29 = vpop.f32.mrf.mxu1 }
 0x278   :  { %v5975_v25 = vpop.f32.mrf.mxu1 }
 0x279   :  { %v5976_v55 = vadd.f32 %v5975_v25, %v5974_v29 }
 0x27a   :  { %v5977_v8 = vpop.f32.mrf.mxu1 }
 0x27b   :  { %v2140_v42 = vadd.f32 %v5976_v55, %v5553_v2 }
 0x27c   :  { %v5978_v5 = vpop.f32.mrf.mxu1 }
 0x27d   :  { %v5979_v43 = vadd.f32 %v5978_v5, %v5977_v8 }
 0x27f   :  { %v2143_v12 = vadd.f32 %v5979_v43, %v5553_v2 }
 0x28e   :  { %v5980_v56 = vpop.f32.mrf.mxu1 }
 0x290   :  { %v5981_v1 = vpop.f32.mrf.mxu1 }
 0x291   :  { %v5982_v27 = vadd.f32 %v5981_v1, %v5980_v56 }
 0x292   :  { %v5983_v50 = vpop.f32.mrf.mxu1 }
 0x293   :  { %v2148_v14 = vadd.f32 %v5982_v27, %v5553_v2 }
 0x294   :  { %v5984_v13 = vpop.f32.mrf.mxu1 }
 0x295   :  { %v5985_v6 = vadd.f32 %v5984_v13, %v5983_v50 }
 0x297   :  { %v7494_v38 = vadd.f32 %v5985_v6, %v5553_v2 }
 0x2a0   :  { %v5986_v18 = vpop.f32.mrf.mxu1 }
 0x2a2   :  { %v5987_v11 = vpop.f32.mrf.mxu1 }
 0x2a3   :  { %v5988_v23 = vadd.f32 %v5987_v11, %v5986_v18 }
 0x2a4   :  { %v5989_v16 = vpop.f32.mrf.mxu1 }
 0x2a5   :  { %v2156_v33 = vadd.f32 %v5988_v23, %v5553_v2 }
 0x2a6   :  { %v5990_v36 = vpop.f32.mrf.mxu1 }
 0x2a7   :  { %v5991_v31 = vadd.f32 %v5990_v36, %v5989_v16 }
 0x2a9   :  { %v2159_v29 = vadd.f32 %v5991_v31, %v5553_v2 }
 0x2b6   :  { %v5992_v21 = vpop.f32.mrf.mxu1 }
 0x2b8   :  { %v5993_v15 = vpop.f32.mrf.mxu1 }
 0x2b9   :  { %v5994_v47 = vadd.f32 %v5993_v15, %v5992_v21 }
 0x2ba   :  { %v5995_v39 = vpop.f32.mrf.mxu1 }
 0x2bb   :  { %v7498_v5 = vadd.f32 %v5994_v47, %v5553_v2 }
 0x2bc   :  { %v5996_v53 = vpop.f32.mrf.mxu1 }
 0x2bd   :  { %v5997_v34 = vadd.f32 %v5996_v53, %v5995_v39 }
 0x2bf   :  { %v7500_v56 = vadd.f32 %v5997_v34, %v5553_v2 }
 0x2ce   :  { %v5998_v35 = vpop.f32.mrf.mxu1 }
 0x2d0   :  { %v5999_v62 = vpop.f32.mrf.mxu1 }
 0x2d1   :  { %v6000_v54 = vadd.f32 %v5999_v62, %v5998_v35  ;;  %v2544_v62 = vld [vmem:[#allocation3 + $0x18] sm:$0xf] }
 0x2d2   :  { %v6001_v20 = vpop.f32.mrf.mxu1 }
 0x2d3   :  { %v7496_v59 = vadd.f32 %v6000_v54, %v5553_v2 }
 0x2d4   :  { %v6002_v44 = vpop.f32.mrf.mxu1 }
 0x2d5   :  { %v6003_v57 = vadd.f32 %v6002_v44, %v6001_v20  ;;  %v2547_v20 = vld [vmem:[#allocation3 + $0x1c] sm:$0x1] }
 0x2d7   :  { %v7502_v13 = vadd.f32 %v6003_v57, %v5553_v2  ;;  %v2550_v57 = vld [vmem:[#allocation3 + $0x20] sm:$0xf] }
 0x2e2   :  { %v6004_v30 = vpop.f32.mrf.mxu1 }
 0x2e4   :  { %v6005_v48 = vpop.f32.mrf.mxu1 }
 0x2e5   :  { %v6006_v17 = vadd.f32 %v6005_v48, %v6004_v30 }
 0x2e6   :  { %v6007_v26 = vpop.f32.mrf.mxu1 }
 0x2e7   :  { %v7506_v36 = vadd.f32 %v6006_v17, %v5553_v2 }
 0x2e8   :  { %v6008_v28 = vpop.f32.mrf.mxu1 }
 0x2e9   :  { %v6009_v51 = vadd.f32 %v6008_v28, %v6007_v26 }
 0x2eb   :  { %v7508_v21 = vadd.f32 %v6009_v51, %v5553_v2 }
 0x2f3   :  { %v6010_v52 = vpop.f32.mrf.mxu1 }
 0x2f5   :  { %v6011_v61 = vpop.f32.mrf.mxu1 }
 0x2f6   :  { %v6012_v49 = vadd.f32 %v6011_v61, %v6010_v52 }
 0x2f7   :  { %v6013_v63 = vpop.f32.mrf.mxu1 }
 0x2f8   :  { %v7504_v16 = vadd.f32 %v6012_v49, %v5553_v2 }
 0x2f9   :  { %v6014_v19 = vpop.f32.mrf.mxu1 }
 0x2fa   :  { %v6015_v25 = vadd.f32 %v6014_v19, %v6013_v63  ;;  %v2532_v63 = vld [vmem:[#allocation3 + $0x8] sm:$0xf] }
 0x2fb   :  { %v6180_v40 = vpop.f32.mrf.mxu1 }
 0x2fc   :  { %v2237_v45 = vadd.f32 %v6180_v40, %v2140_v42  ;;  %v7510_v28 = vadd.f32 %v6015_v25, %v5553_v2 }
 0x2fd   :  { %v2228_v22 = vpop.f32.mrf.mxu1 }
 0x2fe   :  { %v2293_v41 = vmax.f32 %v2237_v45, 0.0  ;;  %v2229_v10 = vadd.f32 %v2228_v22, %v2132_v58 }
 0x2ff   :  { %v6181_v32 = vpop.f32.mrf.mxu1 }
 0x300   :  { %v5832_v0 = vpack.c.bf16 %v2293_v41, %v2293_v41  ;;  %v2291_v24 = vmax.f32 %v2229_v10, 0.0  ;;  %v2240_v4 = vadd.f32 %v6181_v32, %v2143_v12  ;;  %v2553_v41 = vld [vmem:[#allocation3 + $0x24] sm:$0x1] }
 0x301   :  { %v2231_v8 = vpop.f32.mrf.mxu1 }
 0x302   :  { %v2388_v3 = vshrl.u32 %v5832_v0, 16  ;;  %v5830_v1 = vpack.c.bf16 %v2291_v24, %v2291_v24  ;;  %v2294_v50 = vmax.f32 %v2240_v4, 0.0  ;;  %v2232_v18 = vadd.f32 %v2231_v8, %v2135_v37  ;;  %v2538_v24 = vld [vmem:[#allocation3 + $0x10] sm:$0xf]  ;;  %v2541_v4 = vld [vmem:[#allocation3 + $0x14] sm:$0x1] }
 0x303   :  { %v6184_v11 = vpop.f32.mrf.mxu1  ;;  %v2391_v39 = vshll.u32 %v5832_v0, 16 }
 0x304   :  { %v2390_v15 = vrot.slane %v2388_v3, 7  ;;  %v2372_v53 = vshrl.u32 %v5830_v1, 16  ;;  %v5833_v35 = vpack.c.bf16 %v2294_v50, %v2294_v50  ;;  %v2375_v44 = vshll.u32 %v5830_v1, 16 }
 0x305   :  { %v2292_v30 = vmax.f32 %v2232_v18, 0.0  ;;  %v2253_v48 = vadd.f32 %v6184_v11, %v2156_v33  ;;  %v2244_v26 = vpop.f32.mrf.mxu1 }
 0x306   :  { %v2393_v52 = vor.u32 %v2391_v39, %v2390_v15  ;;  %v2394_v61 = vrot.slane %v2390_v15, 4  ;;  %v2374_v55 = vrot.slane %v2372_v53, 7  ;;  %v2396_v60 = vshrl.u32 %v5833_v35, 16 }
 0x307   :  { %v2399_v43 = vshll.u32 %v5833_v35, 16  ;;  %v5831_v27 = vpack.c.bf16 %v2292_v30, %v2292_v30  ;;  %v2297_v19 = vmax.f32 %v2253_v48, 0.0  ;;  %v2245_v6 = vadd.f32 %v2244_v26, %v2148_v14  ;;  %v6185_v42 = vpop.f32.mrf.mxu1  ;;  %v2568_v30 = vld [vmem:[#allocation3 + $0x38] sm:$0xf]  ;;  %v2571_v48 = vld [vmem:[#allocation3 + $0x3c] sm:$0x1] }
 0x308   :  { %v2545_v40 = vsel %vm6808_vm6, %v2393_v52, %v2544_v62  ;;  %v2548_v31 = vsel %vm6814_vm7, %v2394_v61, %v2547_v20  ;;  %v2377_v45 = vor.u32 %v2375_v44, %v2374_v55  ;;  %v2378_v2 = vrot.slane %v2374_v55, 4  ;;  %v6372_v20 = vld [vmem:[%s9055_s4 + $0x78] sm:$0xff]  }
 0x309   :  { %2546 = vst [vmem:[#allocation3 + $0x18] sm:$0xf] %v2545_v40  ;;  %2549 = vst [vmem:[#allocation3 + $0x1c] sm:$0x1] %v2548_v31  ;;  %v2398_v12 = vrot.slane %v2396_v60, 7  ;;  %v2380_v37 = vshrl.u32 %v5831_v27, 16  ;;  %v5836_v34 = vpack.c.bf16 %v2297_v19, %v2297_v19  ;;  %v2247_v54 = vpop.f32.mrf.mxu1  ;;  %v2256_v17 = vadd.f32 %v6185_v42, %v2159_v29  ;;  %6026 = vmatprep.subr.bf16.mxu0 %v6372_v20 }
 0x30a   :  { %v2383_v47 = vshll.u32 %v5831_v27, 16  ;;  %v2533_v22 = vsel %vm6808_vm6, %v2377_v45, %v2532_v63  ;;  %v2536_v14 = vsel %vm6814_vm7, %v2378_v2, %v2535_v9  ;;  %v2295_v10 = vmax.f32 %v2245_v6, 0.0  ;;  %v2559_v27 = vld [vmem:[#allocation3 + $0x2c] sm:$0x1] }
 0x30b   :  { %2534 = vst [vmem:[#allocation3 + $0x8] sm:$0xf] %v2533_v22  ;;  %2537 = vst [vmem:[#allocation3 + $0xc] sm:$0x1] %v2536_v14  ;;  %v2401_v51 = vor.u32 %v2399_v43, %v2398_v12  ;;  %v2402_v49 = vrot.slane %v2398_v12, 4  ;;  %v2382_v32 = vrot.slane %v2380_v37, 7  ;;  %v6188_v0 = vpop.f32.mrf.mxu1  ;;  %v2248_v1 = vadd.f32 %v2247_v54, %v7494_v38 }
 0x30c   :  { %v2420_v33 = vshrl.u32 %v5836_v34, 16  ;;  %v2423_v25 = vshll.u32 %v5836_v34, 16  ;;  %v5834_v8 = vpack.c.bf16 %v2295_v10, %v2295_v10  ;;  %v2298_v3 = vmax.f32 %v2256_v17, 0.0  ;;  %v2556_v43 = vld [vmem:[#allocation3 + $0x28] sm:$0xf]  ;;  %v6373_v37 = vld [vmem:[%s9055_s4 + $0x38] sm:$0xff]  }
 0x30d   :  { %v2551_v50 = vsel %vm6808_vm6, %v2401_v51, %v2550_v57  ;;  %v2554_v29 = vsel %vm6814_vm7, %v2402_v49, %v2553_v41  ;;  %v2385_v18 = vor.u32 %v2383_v47, %v2382_v32  ;;  %v2386_v11 = vrot.slane %v2382_v32, 4  ;;  %v2260_v15 = vpop.f32.mrf.mxu1  ;;  %v2574_v41 = vld [vmem:[#allocation3 + $0x40] sm:$0xf]  ;;  %v2577_v10 = vld [vmem:[#allocation3 + $0x44] sm:$0x1]  ;;  %6027 = vmatpush3.bf16.msra.mxu0 %v6373_v37 }
 0x30e   :  { %2552 = vst [vmem:[#allocation3 + $0x20] sm:$0xf] %v2551_v50  ;;  %2555 = vst [vmem:[#allocation3 + $0x24] sm:$0x1] %v2554_v29  ;;  %v2422_v39 = vrot.slane %v2420_v33, 7  ;;  %v2404_v53 = vshrl.u32 %v5834_v8, 16  ;;  %v5837_v62 = vpack.c.bf16 %v2298_v3, %v2298_v3  ;;  %v2269_v52 = vadd.f32 %v6188_v0, %v7496_v59 }
 0x30f   :  { %v2407_v35 = vshll.u32 %v5834_v8, 16  ;;  %v2539_v38 = vsel %vm6808_vm6, %v2385_v18, %v2538_v24  ;;  %v2542_v44 = vsel %vm6814_vm7, %v2386_v11, %v2541_v4  ;;  %v2296_v26 = vmax.f32 %v2248_v1, 0.0  ;;  %v6189_v61 = vpop.f32.mrf.mxu1  ;;  %v2562_v24 = vld [vmem:[#allocation3 + $0x30] sm:$0xf]  ;;  %v2565_v4 = vld [vmem:[#allocation3 + $0x34] sm:$0x1] }
 0x310   :  { %2540 = vst [vmem:[#allocation3 + $0x10] sm:$0xf] %v2539_v38  ;;  %2543 = vst [vmem:[#allocation3 + $0x14] sm:$0x1] %v2542_v44  ;;  %v2425_v55 = vor.u32 %v2423_v25, %v2422_v39  ;;  %v2426_v60 = vrot.slane %v2422_v39, 4  ;;  %v2406_v63 = vrot.slane %v2404_v53, 7  ;;  %v2261_v40 = vadd.f32 %v2260_v15, %v7498_v5 }
 0x311   :  { %v2428_v9 = vshrl.u32 %v5837_v62, 16  ;;  %v2431_v19 = vshll.u32 %v5837_v62, 16  ;;  %v5835_v6 = vpack.c.bf16 %v2296_v26, %v2296_v26  ;;  %v2301_v42 = vmax.f32 %v2269_v52, 0.0  ;;  %v2263_v31 = vpop.f32.mrf.mxu1  ;;  %v7551_v62 = vld [vmem:[#allocation3 + $0x18] sm:$0xf] }
 0x312   :  { %v2569_v45 = vsel %vm6808_vm6, %v2425_v55, %v2568_v30  ;;  %v2572_v59 = vsel %vm6814_vm7, %v2426_v60, %v2571_v48  ;;  %v2409_v2 = vor.u32 %v2407_v35, %v2406_v63  ;;  %v2410_v12 = vrot.slane %v2406_v63, 4  ;;  %v2592_v44 = vld [vmem:[#allocation3 + $0x68] sm:$0xf]  ;;  %v2595_v30 = vld [vmem:[#allocation3 + $0x6c] sm:$0x1]  ;;  %v6375_v63 = vld [vmem:[%s9055_s4 + $0x30] sm:$0xff]  }
 0x313   :  { %2570 = vst [vmem:[#allocation3 + $0x38] sm:$0xf] %v2569_v45  ;;  %2573 = vst [vmem:[#allocation3 + $0x3c] sm:$0x1] %v2572_v59  ;;  %v2430_v47 = vrot.slane %v2428_v9, 7  ;;  %v2412_v34 = vshrl.u32 %v5835_v6, 16  ;;  %v5840_v22 = vpack.c.bf16 %v2301_v42, %v2301_v42  ;;  %v6192_v5 = vpop.f32.mrf.mxu1  ;;  %v2272_v51 = vadd.f32 %v6189_v61, %v7502_v13 }
 0x314   :  { %v2415_v54 = vshll.u32 %v5835_v6, 16  ;;  %v2557_v14 = vsel %vm6808_vm6, %v2409_v2, %v2556_v43  ;;  %v2560_v57 = vsel %vm6814_vm7, %v2410_v12, %v2559_v27  ;;  %v2299_v17 = vmax.f32 %v2261_v40, 0.0  ;;  %v2580_v9 = vld [vmem:[#allocation3 + $0x58] sm:$0xf]  ;;  %v2583_v43 = vld [vmem:[#allocation3 + $0x5c] sm:$0x1] }
 0x315   :  { %2558 = vst [vmem:[#allocation3 + $0x28] sm:$0xf] %v2557_v14  ;;  %2561 = vst [vmem:[#allocation3 + $0x2c] sm:$0x1] %v2560_v57  ;;  %v2433_v49 = vor.u32 %v2431_v19, %v2430_v47  ;;  %v2434_v32 = vrot.slane %v2430_v47, 4  ;;  %v2414_v33 = vrot.slane %v2412_v34, 7  ;;  %v2264_v1 = vadd.f32 %v2263_v31, %v7500_v56  ;;  %v2276_v11 = vpop.f32.mrf.mxu1 }
 0x316   :  { %v2452_v0 = vshrl.u32 %v5840_v22, 16  ;;  %v2455_v25 = vshll.u32 %v5840_v22, 16  ;;  %v5838_v8 = vpack.c.bf16 %v2299_v17, %v2299_v17  ;;  %v2302_v3 = vmax.f32 %v2272_v51, 0.0  ;;  %v6374_v56 = vld [vmem:[%s9055_s4 + $0x70] sm:$0xff]   ;;  %v2636_v34 = vld [vmem:[#allocation3 + $0x1c] sm:$0x1] }
 0x317   :  { %v2575_v50 = vsel %vm6808_vm6, %v2433_v49, %v2574_v41  ;;  %v2578_v13 = vsel %vm6814_vm7, %v2434_v32, %v2577_v10  ;;  %v2417_v29 = vor.u32 %v2415_v54, %v2414_v33  ;;  %v2418_v18 = vrot.slane %v2414_v33, 4  ;;  %6028 = vmatprep.subr.bf16.mxu0 %v6374_v56  ;;  %v2601_v14 = vld [vmem:[#allocation3 + $0x74] sm:$0x1]  ;;  %v2586_v57 = vld [vmem:[#allocation3 + $0x60] sm:$0xf] }
 0x318   :  { %2576 = vst [vmem:[#allocation3 + $0x40] sm:$0xf] %v2575_v50  ;;  %2579 = vst [vmem:[#allocation3 + $0x44] sm:$0x1] %v2578_v13  ;;  %v2454_v15 = vrot.slane %v2452_v0, 7  ;;  %v2436_v39 = vshrl.u32 %v5838_v8, 16  ;;  %v5841_v35 = vpack.c.bf16 %v2302_v3, %v2302_v3  ;;  %v2285_v26 = vadd.f32 %v6192_v5, %v7504_v16  ;;  %v6193_v16 = vpop.f32.mrf.mxu1  ;;  %6029 = vmatpush3.bf16.msra.mxu0 %v6375_v63 }
 0x319   :  { %v2439_v53 = vshll.u32 %v5838_v8, 16  ;;  %v2563_v20 = vsel %vm6808_vm6, %v2417_v29, %v2562_v24  ;;  %v2566_v38 = vsel %vm6814_vm7, %v2418_v18, %v2565_v4  ;;  %v2300_v48 = vmax.f32 %v2264_v1, 0.0  ;;  %v2598_v5 = vld [vmem:[#allocation3 + $0x70] sm:$0xf]  ;;  %v2589_v32 = vld [vmem:[#allocation3 + $0x64] sm:$0x1] }
 0x31a   :  { %2564 = vst [vmem:[#allocation3 + $0x30] sm:$0xf] %v2563_v20  ;;  %2567 = vst [vmem:[#allocation3 + $0x34] sm:$0x1] %v2566_v38  ;;  %v2457_v52 = vor.u32 %v2455_v25, %v2454_v15  ;;  %v2458_v61 = vrot.slane %v2454_v15, 4  ;;  %v2438_v55 = vrot.slane %v2436_v39, 7  ;;  %v5638_v42 = vcombine.low %v7551_v62, %v7551_v62  ;;  %v2279_v3 = vpop.f32.mrf.mxu1 }
 0x31b   :  { %v2460_v60 = vshrl.u32 %v5841_v35, 16  ;;  %v2463_v27 = vshll.u32 %v5841_v35, 16  ;;  %v5839_v19 = vpack.c.bf16 %v2300_v48, %v2300_v48  ;;  %v2305_v6 = vmax.f32 %v2285_v26, 0.0  ;;  %v7581_v8 = vld [vmem:[#allocation3 + $0x8] sm:$0xf] }
 0x31c   :  { %v2593_v40 = vsel %vm6808_vm6, %v2457_v52, %v2592_v44  ;;  %v2596_v31 = vsel %vm6814_vm7, %v2458_v61, %v2595_v30  ;;  %v2441_v45 = vor.u32 %v2439_v53, %v2438_v55  ;;  %v2442_v59 = vrot.slane %v2438_v55, 4  ;;  %2965 = vrot.lane.b32.xlu0 %v5638_v42, %s6459_s25  ;;  %3055 = vrot.lane.b32.xlu1 %v5638_v42, %s6457_s0  ;;  %v2616_v29 = vld [vmem:[#allocation3 + $0x88] sm:$0xf]  ;;  %v2632_v53 = vld [vmem:[#allocation3 + $0xc] sm:$0x1] }
 0x31d   :  { %2594 = vst [vmem:[#allocation3 + $0x68] sm:$0xf] %v2593_v40  ;;  %2597 = vst [vmem:[#allocation3 + $0x6c] sm:$0x1] %v2596_v31  ;;  %v2462_v2 = vrot.slane %v2460_v60, 7  ;;  %v2444_v12 = vshrl.u32 %v5839_v19, 16  ;;  %v5844_v47 = vpack.c.bf16 %v2305_v6, %v2305_v6  ;;  %v2277_v41 = vadd.f32 %v2276_v11, %v7506_v36 }
 0x31e   :  { %v2447_v37 = vshll.u32 %v5839_v19, 16  ;;  %v2581_v54 = vsel %vm6808_vm6, %v2441_v45, %v2580_v9  ;;  %v2584_v22 = vsel %vm6814_vm7, %v2442_v59, %v2583_v43  ;;  %v2288_v10 = vadd.f32 %v6193_v16, %v7510_v28  ;;  %v6376_v36 = vld [vmem:[%s9055_s4 + $0x68] sm:$0xff]   ;;  %v7603_v48 = vld [vmem:[#allocation3 + $0x10] sm:$0xf]  ;;  %v2634_v26 = vld [vmem:[#allocation3 + $0x14] sm:$0x1] }
 0x31f   :  { %2582 = vst [vmem:[#allocation3 + $0x58] sm:$0xf] %v2581_v54  ;;  %2585 = vst [vmem:[#allocation3 + $0x5c] sm:$0x1] %v2584_v22  ;;  %v2465_v17 = vor.u32 %v2463_v27, %v2462_v2  ;;  %v2466_v51 = vrot.slane %v2462_v2, 4  ;;  %v2446_v49 = vrot.slane %v2444_v12, 7  ;;  %v7579_v25 = vcombine.low %v7551_v62, %v2636_v34  ;;  %6030 = vmatprep.subr.bf16.mxu0 %v6376_v36 }
 0x320   :  { %v2484_v33 = vshrl.u32 %v5844_v47, 16  ;;  %v2487_v0 = vshll.u32 %v5844_v47, 16  ;;  %v2303_v24 = vmax.f32 %v2277_v41, 0.0  ;;  %v2306_v4 = vmax.f32 %v2288_v10, 0.0  ;;  %v6379_v35 = vld [vmem:[%s9055_s4 + $0x28] sm:$0xff]  }
 0x321   :  { %v2599_v28 = vsel %vm6808_vm6, %v2465_v17, %v2598_v5  ;;  %v2602_v1 = vsel %vm6814_vm7, %v2466_v51, %v2601_v14  ;;  %v2449_v50 = vor.u32 %v2447_v37, %v2446_v49  ;;  %v2450_v13 = vrot.slane %v2446_v49, 4  ;;  %v2619_v38 = vld [vmem:[#allocation3 + $0x8c] sm:$0x1]  ;;  %v7607_v60 = vld [vmem:[#allocation3 + $0x20] sm:$0xf]  ;;  %6031 = vmatpush3.bf16.msra.mxu0 %v6379_v35 }
 0x322   :  { %2600 = vst [vmem:[#allocation3 + $0x70] sm:$0xf] %v2599_v28  ;;  %2603 = vst [vmem:[#allocation3 + $0x74] sm:$0x1] %v2602_v1  ;;  %v2486_v18 = vrot.slane %v2484_v33, 7  ;;  %v5842_v11 = vpack.c.bf16 %v2303_v24, %v2303_v24  ;;  %v5845_v15 = vpack.c.bf16 %v2306_v4, %v2306_v4  ;;  %v7591_v39 = vrot.slane %v7579_v25, 1 }
 0x323   :  { %v2587_v56 = vsel %vm6808_vm6, %v2449_v50, %v2586_v57  ;;  %v2590_v20 = vsel %vm6814_vm7, %v2450_v13, %v2589_v32  ;;  %v5636_v44 = vcombine.low %v7581_v8, %v7581_v8  ;;  %v2280_v30 = vadd.f32 %v2279_v3, %v7508_v21  ;;  %v2604_v9 = vld [vmem:[#allocation3 + $0x78] sm:$0xf]  ;;  %v2607_v43 = vld [vmem:[#allocation3 + $0x7c] sm:$0x1]  ;;  %v2638_v6 = vld [vmem:[#allocation3 + $0x24] sm:$0x1] }
 0x324   :  { %2588 = vst [vmem:[#allocation3 + $0x60] sm:$0xf] %v2587_v56  ;;  %2591 = vst [vmem:[#allocation3 + $0x64] sm:$0x1] %v2590_v20  ;;  %v2489_v52 = vor.u32 %v2487_v0, %v2486_v18  ;;  %v2490_v61 = vrot.slane %v2486_v18, 4  ;;  %v2468_v55 = vshrl.u32 %v5842_v11, 16  ;;  %2915 = vrot.lane.b32.xlu1 %v7591_v39, %s6457_s0  ;;  %v7611_v19 = vcombine.low %v7581_v8, %v2632_v53 }
 0x325   :  { %v2471_v63 = vshll.u32 %v5842_v11, 16  ;;  %v2492_v27 = vshrl.u32 %v5845_v15, 16  ;;  %2961 = vrot.lane.b32.xlu0 %v5636_v44, %s6459_s25  ;;  %v2304_v21 = vmax.f32 %v2280_v30, 0.0  ;;  %v2622_v31 = vld [vmem:[#allocation3 + $0x90] sm:$0xf]  ;;  %v7618_v59 = vcombine.low %v7603_v48, %v2634_v26  ;;  %v6380_v17 = vld [vmem:[%s9055_s4 + $0x60] sm:$0xff]  }
 0x326   :  { %v2617_v42 = vsel %vm6808_vm6, %v2489_v52, %v2616_v29  ;;  %v2620_v16 = vsel %vm6814_vm7, %v2490_v61, %v2619_v38  ;;  %v2470_v40 = vrot.slane %v2468_v55, 7  ;;  %v2625_v45 = vld [vmem:[#allocation3 + $0x94] sm:$0x1]  ;;  %v2495_v12 = vshll.u32 %v5845_v15, 16  ;;  %v7621_v34 = vld [vmem:[#allocation3 + $0x28] sm:$0xf]  ;;  %6032 = vmatprep.subr.bf16.mxu0 %v6380_v17 }
 0x327   :  { %2618 = vst [vmem:[#allocation3 + $0x88] sm:$0xf] %v2617_v42  ;;  %2621 = vst [vmem:[#allocation3 + $0x8c] sm:$0x1] %v2620_v16  ;;  %v2494_v2 = vrot.slane %v2492_v27, 7  ;;  %v5843_v37 = vpack.c.bf16 %v2304_v21, %v2304_v21  ;;  %v2894_v47 = vrot.slane %v7611_v19, 1  ;;  %v7629_v41 = vcombine.low %v7607_v60, %v2638_v6 }
 0x328   :  { %v7623_v54 = vld [vmem:[#allocation3 + $0x38] sm:$0xf]  ;;  %v2644_v22 = vld [vmem:[#allocation3 + $0x3c] sm:$0x1]  ;;  %v2473_v5 = vor.u32 %v2471_v63, %v2470_v40  ;;  %v2474_v14 = vrot.slane %v2470_v40, 4  ;;  %v7626_v57 = vrot.slane %v7618_v59, 1  ;;  %v5639_v33 = vcombine.low %v7607_v60, %v7607_v60 }
 0x329   :  { %v2640_v10 = vld [vmem:[#allocation3 + $0x2c] sm:$0x1]  ;;  %v2497_v51 = vor.u32 %v2495_v12, %v2494_v2  ;;  %v2498_v49 = vrot.slane %v2494_v2, 4  ;;  %v2476_v32 = vshrl.u32 %v5843_v37, 16  ;;  %3019 = vrot.lane.b32.xlu0 %v7591_v39, %s6458_s24  ;;  %2911 = vrot.lane.b32.xlu1 %v2894_v47, %s6457_s0  ;;  %v7639_v0 = vld [vmem:[#allocation3 + $0x30] sm:$0xf]  ;;  %v7668_v44 = vcombine.low %v7623_v54, %v2644_v22 }
 0x32a   :  { %v2642_v24 = vld [vmem:[#allocation3 + $0x34] sm:$0x1]  ;;  %v2605_v4 = vsel %vm6808_vm6, %v2473_v5, %v2604_v9  ;;  %v2608_v3 = vsel %vm6814_vm7, %v2474_v14, %v2607_v43  ;;  %v2479_v36 = vshll.u32 %v5843_v37, 16  ;;  %v2610_v28 = vld [vmem:[#allocation3 + $0x80] sm:$0xf]  ;;  %v5661_v50 = vcombine.low %v7626_v57, %v7591_v39 }
 0x32b   :  { %v2613_v1 = vld [vmem:[#allocation3 + $0x84] sm:$0x1]  ;;  %v7647_v13 = vld [vmem:[#allocation3 + $0x40] sm:$0xf]  ;;  %2606 = vst [vmem:[#allocation3 + $0x78] sm:$0xf] %v2605_v4  ;;  %v2623_v18 = vsel %vm6808_vm6, %v2497_v51, %v2622_v31  ;;  %v2626_v11 = vsel %vm6814_vm7, %v2498_v49, %v2625_v45  ;;  %v7657_v53 = vcombine.low %v7621_v34, %v2640_v10  ;;  %v7665_v38 = vcombine.low %v7639_v0, %v2642_v24 }
 0x32c   :  { %v6381_v29 = vld [vmem:[%s9055_s4 + $0x20] sm:$0xff]   ;;  %2609 = vst [vmem:[#allocation3 + $0x7c] sm:$0x1] %v2608_v3  ;;  %v2478_v15 = vrot.slane %v2476_v32, 7  ;;  %v7659_v35 = vld [vmem:[#allocation3 + $0x68] sm:$0xf]  ;;  %6198 = vmatprep.mubr.msk.bf16.mxu1 %vm1576_vm8, %v5661_v50  ;;  %v5637_v22 = vcombine.low %v7603_v48, %v7603_v48 }
 0x32d   :  { %v2646_v39 = vld [vmem:[#allocation3 + $0x44] sm:$0x1]  ;;  %9113 = vst [vmem:[#allocation8_spill] sm:$0xff] %v7659_v35  ;;  %2624 = vst [vmem:[#allocation3 + $0x90] sm:$0xf] %v2623_v18  ;;  %v2897_v56 = vrot.slane %v7629_v41, 1  ;;  %6033 = vmatpush3.bf16.msra.mxu0 %v6381_v29  ;;  %2967 = vrot.lane.b32.xlu1 %v5639_v33, %s6459_s25 }
 0x32e   :  { %2627 = vst [vmem:[#allocation3 + $0x94] sm:$0x1] %v2626_v11  ;;  %v2773_v20 = vshll.u32 %v7579_v25, 16  ;;  %v7670_v30 = vld [vmem:[#allocation3 + $0x60] sm:$0xf]  ;;  %v2481_v52 = vor.u32 %v2479_v36, %v2478_v15  ;;  %v2482_v61 = vrot.slane %v2478_v15, 4  ;;  %3015 = vrot.lane.b32.xlu0 %v2894_v47, %s6458_s24  ;;  %v7685_v6 = vcombine.low %v7647_v13, %v2646_v39 }
 0x32f   :  { %9114 = vst [vmem:[#allocation10_spill] sm:$0xff] %v7670_v30  ;;  %v2654_v26 = vld [vmem:[#allocation3 + $0x64] sm:$0x1]  ;;  %v7675_v55 = vrot.slane %v7657_v53, 1  ;;  %v2771_v63 = vshrl.u32 %v7579_v25, 16  ;;  %v7679_v27 = vrot.slane %v7665_v38, 1 }
 0x330   :  { %v2656_v9 = vld [vmem:[#allocation3 + $0x6c] sm:$0x1]  ;;  %v2775_v43 = vrot.slane %v2773_v20, 1  ;;  %v7682_v21 = vrot.slane %v7668_v44, 1  ;;  %v2611_v42 = vsel %vm6808_vm6, %v2481_v52, %v2610_v28  ;;  %v2614_v16 = vsel %vm6814_vm7, %v2482_v61, %v2613_v1  ;;  %v6382_v10 = vld [vmem:[%s9055_s4 + $0x58] sm:$0xff]  }
 0x331   :  { %v5664_v40 = vcombine.low %v2897_v56, %v7675_v55  ;;  %v7693_v25 = vcombine.low %v7670_v30, %v2654_v26  ;;  %2612 = vst [vmem:[#allocation3 + $0x80] sm:$0xf] %v2611_v42  ;;  %2615 = vst [vmem:[#allocation3 + $0x84] sm:$0x1] %v2614_v16  ;;  %v7700_v2 = vcombine.low %v7659_v35, %v2656_v9  ;;  %v3013_v5 = vrot.slane %v7685_v6, 1  ;;  %v6384_v32 = vld [vmem:[%s9055_s4 + $0x18] sm:$0xff]  }
 0x332   :  { %v7695_v31 = vor.u32 %v2775_v43, %v2771_v63  ;;  %v5667_v45 = vcombine.low %v7679_v27, %v7682_v21  ;;  %3057 = vrot.lane.b32.xlu0 %v5639_v33, %s6457_s0  ;;  %v7710_v37 = vld [vmem:[#allocation3 + $0x78] sm:$0xf]  ;;  %v3137_v14 = vrot.slane %v7471_v7, 1  ;;  %v7722_v51 = vld [vmem:[#allocation3 + $0x70] sm:$0xf]  ;;  %6034 = vmatprep.subr.bf16.mxu0 %v6382_v10  ;;  %v2780_v20 = vshll.u32 %v7629_v41, 16 }
 0x333   :  { %6199 = vmatmul.mubr.msk.bf16.vlgmr.msra.gmra.mxu1 %vm1576_vm8, %v5664_v40  ;;  %v7708_v12 = vrot.slane %v7693_v25, 1  ;;  %9115 = vst [vmem:[#allocation9_spill] sm:$0xff] %v7710_v37  ;;  %v2660_v47 = vld [vmem:[#allocation3 + $0x7c] sm:$0x1]  ;;  %v7720_v17 = vrot.slane %v7700_v2, 1  ;;  %9116 = vst [vmem:[#allocation11_spill] sm:$0xff] %v7722_v51  ;;  %6035 = vmatpush3.bf16.msra.mxu0 %v6384_v32  ;;  %v5642_v40 = vcombine.low %v7623_v54, %v7623_v54 }
 0x334   :  { %3107 = vrot.lane.b32.xlu1 %v7695_v31, %s6459_s25  ;;  %6202 = vmatprep.mubr.msk.bf16.mxu1 %vm1576_vm8, %v5667_v45  ;;  %v2658_v49 = vld [vmem:[#allocation3 + $0x74] sm:$0x1]  ;;  %v7729_v33 = vcombine.low %v7710_v37, %v2660_v47  ;;  %v7731_v7 = vld [vmem:[#allocation3 + $0x88] sm:$0xf]  ;;  %v2664_v24 = vld [vmem:[#allocation3 + $0x8c] sm:$0x1]  ;;  %v5670_v3 = vcombine.low %v3013_v5, %v3137_v14 }
 0x335   :  { %9117 = vst [vmem:[#allocation13_spill] sm:$0xff] %v7731_v7  ;;  %v5673_v4 = vcombine.low %v7708_v12, %v7720_v17  ;;  %v7739_v36 = vcombine.low %v7722_v51, %v2658_v49  ;;  %v7747_v29 = vcombine.low %v7731_v7, %v2664_v24  ;;  %v2668_v15 = vld [vmem:[#allocation3 + $0x9c] sm:$0x1]  ;;  %v7763_v26 = vld [vmem:[#allocation3 + $0x90] sm:$0xf]  ;;  %v2759_v61 = vshll.u32 %v7611_v19, 16 }
 0x336   :  { %3053 = vrot.lane.b32.xlu0 %v5637_v22, %s6457_s0  ;;  %v7752_v18 = vrot.slane %v7729_v33, 1  ;;  %v2666_v63 = vld [vmem:[#allocation3 + $0x94] sm:$0x1]  ;;  %v7784_v16 = vcombine.low %v7479_v46, %v2668_v15  ;;  %v2782_v45 = vrot.slane %v2780_v20, 1  ;;  %v2778_v14 = vshrl.u32 %v7629_v41, 16  ;;  %v6388_v46 = vld [vmem:[%s9055_s4 + $0x48] sm:$0xff]  }
 0x337   :  { %v7760_v39 = vrot.slane %v7739_v36, 1  ;;  %v7766_v52 = vrot.slane %v7747_v29, 1  ;;  %v6387_v9 = vld [vmem:[%s9055_s4 + $0x10] sm:$0xff]   ;;  %v7789_v47 = vcombine.low %v7763_v26, %v2666_v63  ;;  %v2757_v10 = vshrl.u32 %v7611_v19, 16  ;;  %v6389_v49 = vld [vmem:[%s9055_s4 + $0x8] sm:$0xff]  }
 0x338   :  { %2963 = vrot.lane.b32.xlu1 %v5637_v22, %s6459_s25  ;;  %v7741_v28 = vld [vmem:[#allocation3 + $0x80] sm:$0xf]  ;;  %v2662_v1 = vld [vmem:[#allocation3 + $0x84] sm:$0x1]  ;;  %v2761_v22 = vrot.slane %v2759_v61, 1  ;;  %v7804_v32 = vor.u32 %v2782_v45, %v2778_v14  ;;  %v3138_v41 = vrot.slane %v7784_v16, 1  ;;  %v5646_v45 = vcombine.low %v7659_v35, %v7659_v35 }
 0x339   :  { %9118 = vst [vmem:[#allocation12_spill] sm:$0xff] %v7741_v28  ;;  %v7744_v50 = vcombine.low %v7741_v28, %v2662_v1  ;;  %v5676_v43 = vcombine.low %v7760_v39, %v7752_v18  ;;  %v9074_v24 = vrot.slane %v7789_v47, 1  ;;  %v5640_v1 = vcombine.low %v7621_v34, %v7621_v34 }
 0x33a   :  { %2917 = vrot.lane.b32.xlu0 %v2897_v56, %s6457_s0  ;;  %v2766_v15 = vshll.u32 %v7618_v59, 16  ;;  %v2764_v61 = vshrl.u32 %v7618_v59, 16  ;;  %v2799_v59 = vshrl.u32 %v7668_v44, 16 }
 0x33b   :  { %6203 = vmatmul.mubr.msk.bf16.gmra.mxu1 %vm1576_vm8, %v5670_v3  ;;  %v7757_v11 = vrot.slane %v7744_v50, 1  ;;  %v5682_v19 = vcombine.low %v9074_v24, %v3138_v41  ;;  %v6391_v3 = vld [vmem:[%s9055_s4] sm:$0xff]   ;;  %v2792_v41 = vshrl.u32 %v7665_v38, 16 }
 0x33c   :  { %3021 = vrot.lane.b32.xlu1 %v2897_v56, %s6458_s24  ;;  %6206 = vmatprep.mubr.msk.bf16.mxu1 %vm1576_vm8, %v5673_v4  ;;  %v6386_v56 = vld [vmem:[%s9055_s4 + $0x50] sm:$0xff]   ;;  %v7808_v4 = vor.u32 %v2761_v22, %v2757_v10  ;;  %v2768_v20 = vrot.slane %v2766_v15, 1  ;;  %v7880_v10 = vld [vmem:[#allocation3 + $0x58] sm:$0xf] }
 0x33d   :  { %v5679_v42 = vcombine.low %v7757_v11, %v7766_v52  ;;  %6036 = vmatprep.subr.bf16.mxu0 %v6386_v56  ;;  %v2801_v56 = vshll.u32 %v7668_v44, 16  ;;  %v3002_v44 = vshll.u32 %v7685_v6, 16 }
 0x33e   :  { %2913 = vrot.lane.b32.xlu0 %v7626_v57, %s6457_s0  ;;  %6037 = vmatpush3.bf16.msra.mxu0 %v6387_v9  ;;  %v7836_v63 = vor.u32 %v2768_v20, %v2764_v61  ;;  %v5643_v9 = vcombine.low %v7647_v13, %v7647_v13  ;;  %v2787_v13 = vshll.u32 %v7657_v53, 16  ;;  %v2829_v20 = vshll.u32 %v7700_v2, 16 }
 0x33f   :  { %6038 = vmatprep.subr.bf16.mxu0 %v6388_v46  ;;  %v3004_v22 = vrot.slane %v3002_v44, 1  ;;  %v5647_v61 = vcombine.low %v7722_v51, %v7722_v51 }
 0x340   :  { %2867 = vrot.lane.b32.xlu1 %v7695_v31, %s6458_s24 }
 0x342   :  { %2973 = vrot.lane.b32.xlu0 %v5642_v40, %s6459_s25  ;;  %6039 = vmatpush3.bf16.msra.mxu0 %v6389_v49  ;;  %v2794_v49 = vshll.u32 %v7665_v38, 16 }
 0x343   :  { %6207 = vmatmul.mubr.msk.bf16.gmra.mxu1 %vm1576_vm8, %v5676_v43  ;;  %v2803_v43 = vrot.slane %v2801_v56, 1  ;;  %v2831_v56 = vrot.slane %v2829_v20, 1 }
 0x344   :  { %3017 = vrot.lane.b32.xlu1 %v7626_v57, %s6458_s24  ;;  %6210 = vmatprep.mubr.msk.bf16.mxu1 %vm1576_vm8, %v5679_v42  ;;  %v6390_v57 = vld [vmem:[%s9055_s4 + $0x40] sm:$0xff]   ;;  %v5641_v42 = vcombine.low %v7639_v0, %v7639_v0 }
 0x345   :  { %6040 = vmatprep.subr.bf16.mxu0 %v6390_v57  ;;  %v7895_v57 = vpop.permute.xlu0 %2861 }
 0x346   :  { %3109 = vrot.lane.b32.xlu0 %v7804_v32, %s6459_s25  ;;  %6041 = vmatpush3.bf16.msra.mxu0 %v6391_v3 }
 0x348   :  { %2863 = vrot.lane.b32.xlu1 %v7808_v4, %s6458_s24 }
 0x349   :  { %v7907_v15 = vpop.permute.xlu0 %2909 }
 0x34a   :  { %2869 = vrot.lane.b32.xlu0 %v7804_v32, %s6458_s24 }
 0x34b   :  { %6211 = vmatmul.mubr.msk.bf16.gmra.mxu1 %vm1576_vm8, %v5682_v19  ;;  %v2652_v19 = vld [vmem:[#allocation3 + $0x5c] sm:$0x1] }
 0x34c   :  { %3063 = vrot.lane.b32.xlu1 %v5642_v40, %s6457_s0  ;;  %v2785_v40 = vshrl.u32 %v7657_v53, 16  ;;  %v5644_v53 = vcombine.low %v7880_v10, %v7880_v10  ;;  %v5629_v3 = vcombine.low %v7880_v10, %v2652_v19 }
 0x34e   :  { %2969 = vrot.lane.b32.xlu0 %v5640_v1, %s6459_s25  ;;  %v2902_v38 = vrot.slane %v5629_v3, 1 }
 0x350   :  { %3059 = vrot.lane.b32.xlu1 %v5640_v1, %s6457_s0  ;;  %v7905_v1 = vpop.permute.xlu1 %3067 }
 0x352   :  { %3027 = vrot.lane.b32.xlu0 %v7682_v21, %s6458_s24 }
 0x354   :  { %2923 = vrot.lane.b32.xlu1 %v7682_v21, %s6457_s0  ;;  %v7849_v21 = vor.u32 %v2803_v43, %v2799_v59  ;;  %v2827_v43 = vshrl.u32 %v7700_v2, 16  ;;  %v2836_v2 = vshll.u32 %v7739_v36, 16 }
 0x356   :  { %3105 = vrot.lane.b32.xlu0 %v7836_v63, %s6459_s25  ;;  %v7922_v59 = vor.u32 %v2831_v56, %v2827_v43  ;;  %v7978_v56 = vcombine.low %v7731_v7, %v7731_v7  ;;  %v9123_v7 = vrot.slane %v7789_v47, 1 }
 0x358   :  { %2919 = vrot.lane.b32.xlu1 %v7675_v55, %s6457_s0  ;;  %9119 = vst [vmem:[#allocation5_spill] sm:$0xff] %v7922_v59 }
 0x35a   :  { %2865 = vrot.lane.b32.xlu0 %v7836_v63, %s6458_s24 }
 0x35c   :  { %2975 = vrot.lane.b32.xlu1 %v5643_v9, %s6459_s25 }
 0x35e   :  { %3023 = vrot.lane.b32.xlu0 %v7675_v55, %s6458_s24  ;;  %v2789_v55 = vrot.slane %v2787_v13, 1  ;;  %v5645_v13 = vcombine.low %v7670_v30, %v7670_v30 }
 0x360   :  { %3115 = vrot.lane.b32.xlu1 %v7849_v21, %s6459_s25  ;;  %v7872_v14 = vor.u32 %v2789_v55, %v2785_v40 }
 0x362   :  { %3065 = vrot.lane.b32.xlu0 %v5643_v9, %s6457_s0  ;;  %v7915_v9 = vpop.permute.xlu1 %3119 }
 0x364   :  { %2971 = vrot.lane.b32.xlu1 %v5641_v42, %s6459_s25 }
 0x366   :  { %3061 = vrot.lane.b32.xlu0 %v5641_v42, %s6457_s0  ;;  %v7927_v42 = vpop.permute.xlu1 %3083 }
 0x367   :  { %9120 = vst [vmem:[#allocation14_spill] sm:$0xff] %v7927_v42 }
 0x368   :  { %3029 = vrot.lane.b32.xlu1 %v3013_v5, %s6458_s24  ;;  %v3000_v5 = vshrl.u32 %v7685_v6, 16  ;;  %v2796_v6 = vrot.slane %v2794_v49, 1 }
 0x36a   :  { %2921 = vrot.lane.b32.xlu0 %v7679_v27, %s6457_s0  ;;  %v7878_v46 = vor.u32 %v3004_v22, %v3000_v5  ;;  %v2815_v22 = vshll.u32 %v5629_v3, 16  ;;  %v2834_v5 = vshrl.u32 %v7739_v36, 16 }
 0x36c   :  { %2875 = vrot.lane.b32.xlu1 %v7849_v21, %s6458_s24 }
 0x36e   :  { %2981 = vrot.lane.b32.xlu0 %v5646_v45, %s6459_s25 }
 0x370   :  { %3111 = vrot.lane.b32.xlu1 %v7872_v14, %s6459_s25 }
 0x372   :  { %3117 = vrot.lane.b32.xlu0 %v7878_v46, %s6459_s25 }
 0x374   :  { %3025 = vrot.lane.b32.xlu1 %v7679_v27, %s6458_s24  ;;  %v7898_v27 = vor.u32 %v2796_v6, %v2792_v41  ;;  %v2817_v41 = vrot.slane %v2815_v22, 1  ;;  %v2820_v22 = vshrl.u32 %v7693_v25, 16 }
 0x376   :  { %2977 = vrot.lane.b32.xlu0 %v5644_v53, %s6459_s25 }
 0x378   :  { %2871 = vrot.lane.b32.xlu1 %v7872_v14, %s6458_s24 }
 0x37a   :  { %3035 = vrot.lane.b32.xlu0 %v7720_v17, %s6458_s24 }
 0x37c   :  { %3071 = vrot.lane.b32.xlu1 %v5646_v45, %s6457_s0  ;;  %v2838_v45 = vrot.slane %v2836_v2, 1 }
 0x37e   :  { %3113 = vrot.lane.b32.xlu0 %v7898_v27, %s6459_s25  ;;  %v7953_v6 = vor.u32 %v2838_v45, %v2834_v5  ;;  %v2857_v45 = vshll.u32 %v7747_v29, 16 }
 0x380   :  { %2931 = vrot.lane.b32.xlu1 %v7720_v17, %s6457_s0  ;;  %v7918_v17 = vpop.permute.xlu0 %2877  ;;  %9121 = vst [vmem:[#allocation15_spill] sm:$0xff] %v7953_v6  ;;  %v2859_v24 = vrot.slane %v2857_v45, 1  ;;  %v5649_v45 = vcombine.low %v7741_v28, %v7741_v28 }
 0x382   :  { %2873 = vrot.lane.b32.xlu0 %v7898_v27, %s6458_s24 }
 0x384   :  { %2927 = vrot.lane.b32.xlu1 %v2902_v38, %s6457_s0  ;;  %v7931_v44 = vpop.permute.xlu0 %2925 }
 0x386   :  { %3031 = vrot.lane.b32.xlu0 %v2902_v38, %s6458_s24 }
 0x388   :  { %2983 = vrot.lane.b32.xlu1 %v5647_v61, %s6459_s25 }
 0x38a   :  { %3073 = vrot.lane.b32.xlu0 %v5647_v61, %s6457_s0 }
 0x38c   :  { %3123 = vrot.lane.b32.xlu1 %v7922_v59, %s6459_s25 }
 0x38e   :  { %3069 = vrot.lane.b32.xlu0 %v5645_v13, %s6457_s0  ;;  %v7936_v55 = vpop.permute.xlu1 %3055  ;;  %v7940_v40 = vpop.permute.xlu0 %2965 }
 0x390   :  { %2979 = vrot.lane.b32.xlu1 %v5645_v13, %s6459_s25 }
 0x392   :  { %2933 = vrot.lane.b32.xlu0 %v7760_v39, %s6457_s0 }
 0x394   :  { %3037 = vrot.lane.b32.xlu1 %v7760_v39, %s6458_s24  ;;  %v2813_v39 = vshrl.u32 %v5629_v3, 16  ;;  %v2822_v3 = vshll.u32 %v7693_v25, 16 }
 0x396   :  { %2929 = vrot.lane.b32.xlu0 %v7708_v12, %s6457_s0  ;;  %v7949_v53 = vpop.permute.xlu1 %2915  ;;  %v7963_v38 = vor.u32 %v2817_v41, %v2813_v39  ;;  %v2824_v13 = vrot.slane %v2822_v3, 1  ;;  %v2855_v3 = vshrl.u32 %v7747_v29, 16 }
 0x397   :  { %v7951_v49 = vpop.permute.xlu0 %2961 }
 0x398   :  { %2883 = vrot.lane.b32.xlu1 %v7922_v59, %s6458_s24  ;;  %v7992_v41 = vor.u32 %v2824_v13, %v2820_v22  ;;  %v8003_v25 = vor.u32 %v2859_v24, %v2855_v3  ;;  %v5651_v24 = vcombine.low %v7763_v26, %v7763_v26  ;;  %v2843_v3 = vshll.u32 %v7729_v33, 16 }
 0x399   :  { %v2841_v26 = vshrl.u32 %v7729_v33, 16  ;;  %v3009_v59 = vshll.u32 %v7789_v47, 16 }
 0x39a   :  { %3125 = vrot.lane.b32.xlu0 %v7953_v6, %s6459_s25  ;;  %9122 = vst [vmem:[#allocation16_spill] sm:$0xff] %v8003_v25 }
 0x39b   :  { %v7959_v19 = vpop.permute.xlu0 %3019  ;;  %v7961_v36 = vpop.permute.xlu1 %2911 }
 0x39c   :  { %3033 = vrot.lane.b32.xlu1 %v7708_v12, %s6458_s24  ;;  %v5648_v12 = vcombine.low %v7710_v37, %v7710_v37  ;;  %v2845_v37 = vrot.slane %v2843_v3, 1  ;;  %v2848_v3 = vshrl.u32 %v7744_v50, 16 }
 0x39e   :  { %2885 = vrot.lane.b32.xlu0 %v7953_v6, %s6458_s24 }
 0x39f   :  { %v7969_v20 = vpop.permute.xlu1 %2967 }
 0x3a0   :  { %2879 = vrot.lane.b32.xlu1 %v7963_v38, %s6458_s24  ;;  %v7971_v61 = vpop.permute.xlu0 %3015 }
 0x3a2   :  { %2985 = vrot.lane.b32.xlu0 %v5648_v12, %s6459_s25 }
 0x3a4   :  { %3079 = vrot.lane.b32.xlu1 %v7978_v56, %s6457_s0  ;;  %v7983_v43 = vpop.permute.xlu0 %3057 }
 0x3a6   :  { %v7985_v2 = vpop.permute.xlu1 %3107  ;;  %3043 = vrot.lane.b32.xlu0 %v7766_v52, %s6458_s24 }
 0x3a8   :  { %3075 = vrot.lane.b32.xlu1 %v5648_v12, %s6457_s0  ;;  %v3054_v5 = vpop.permute.xlu0 %3053 }
 0x3aa   :  { %v2964_v39 = vpop.permute.xlu1 %2963  ;;  %3121 = vrot.lane.b32.xlu0 %v7992_v41, %s6459_s25 }
 0x3ac   :  { %2935 = vrot.lane.b32.xlu1 %v7752_v18, %s6457_s0  ;;  %v7999_v58 = vpop.permute.xlu0 %2917 }
 0x3ae   :  { %v8001_v23 = vpop.permute.xlu1 %3021  ;;  %2881 = vrot.lane.b32.xlu0 %v7992_v41, %s6458_s24 }
 0x3b0   :  { %3131 = vrot.lane.b32.xlu1 %v8003_v25, %s6459_s25  ;;  %v8009_v12 = vpop.permute.xlu0 %2913 }
 0x3b2   :  { %v8011_v13 = vpop.permute.xlu1 %2867  ;;  %3039 = vrot.lane.b32.xlu0 %v7752_v18, %s6458_s24  ;;  %v2850_v18 = vshll.u32 %v7744_v50, 16 }
 0x3b4   :  { %2987 = vrot.lane.b32.xlu1 %v5649_v45, %s6459_s25  ;;  %v8018_v29 = vpop.permute.xlu0 %2973  ;;  %v2852_v6 = vrot.slane %v2850_v18, 1 }
 0x3b6   :  { %v3018_v22 = vpop.permute.xlu1 %3017  ;;  %3081 = vrot.lane.b32.xlu0 %v5651_v24, %s6457_s0  ;;  %v8048_v33 = vor.u32 %v2852_v6, %v2848_v3  ;;  %v6450_v3 = vld [vmem:[#allocation3] sm:$0xf] }
 0x3b7   :  { %v3256_v50 = vsel %vm1576_vm8, %v7836_v63, %v3018_v22 }
 0x3b8   :  { %3045 = vrot.lane.b32.xlu1 %v9123_v7, %s6458_s24  ;;  %v8027_v28 = vpop.permute.xlu0 %3109  ;;  %v8039_v7 = vor.u32 %v2845_v37, %v2841_v26  ;;  %v3007_v37 = vshrl.u32 %v7789_v47, 16  ;;  %v3101_v26 = vshll.u32 %v7784_v16, 16  ;;  %v3141_v47 = vsel %vm1576_vm8, %v6450_v3, %v7895_v57 }
 0x3b9   :  { %v3302_v63 = vsel %vm1625_vm9, %v3256_v50, %v7936_v55  ;;  %v3188_v55 = vsel %vm1625_vm9, %v3141_v47, %v7907_v15 }
 0x3ba   :  { %v2864_v42 = vpop.permute.xlu1 %2863  ;;  %3077 = vrot.lane.b32.xlu0 %v5649_v45, %s6457_s0 }
 0x3bb   :  { %v3144_v30 = vsel %vm1576_vm8, %v7581_v8, %v2864_v42 }
 0x3bc   :  { %2891 = vrot.lane.b32.xlu1 %v8003_v25, %s6458_s24  ;;  %v8034_v51 = vpop.permute.xlu0 %2869  ;;  %v3011_v25 = vrot.slane %v3009_v59, 1  ;;  %v3190_v8 = vsel %vm1625_vm9, %v3144_v30, %v7961_v36  ;;  %v3099_v30 = vshrl.u32 %v7784_v16, 16  ;;  %v3103_v36 = vrot.slane %v3101_v26, 1 }
 0x3bd   :  { %v3222_v57 = vsel %vm1658_vm10, %v3190_v8, %v2964_v39 }
 0x3be   :  { %v8037_v35 = vpop.permute.xlu1 %3063  ;;  %2937 = vrot.lane.b32.xlu0 %v7757_v11, %s6457_s0  ;;  %v8062_v59 = vor.u32 %v3011_v25, %v3007_v37  ;;  %v3334_v37 = vsel %vm1658_vm10, %v3302_v63, %v7985_v2 }
 0x3c0   :  { %3127 = vrot.lane.b32.xlu1 %v8039_v7, %s6459_s25  ;;  %v8046_v45 = vpop.permute.xlu0 %2969 }
 0x3c2   :  { %v3060_v18 = vpop.permute.xlu1 %3059  ;;  %3129 = vrot.lane.b32.xlu0 %v8048_v33, %s6459_s25 }
 0x3c4   :  { %3041 = vrot.lane.b32.xlu1 %v7757_v11, %s6458_s24  ;;  %v8060_v6 = vpop.permute.xlu0 %3027  ;;  %v3253_v11 = vsel %vm1576_vm8, %v7808_v4, %v7971_v61  ;;  %v3220_v61 = vsel %vm1658_vm10, %v3188_v55, %v7951_v49 }
 0x3c5   :  { %v3300_v25 = vsel %vm1625_vm9, %v3253_v11, %v3054_v5  ;;  %v5659_v16 = vcombine.low %v3220_v61, %v3222_v57  ;;  %v3104_v5 = vor.u32 %v3103_v36, %v3099_v30  ;;  %v3150_v30 = vsel %vm1576_vm8, %v7551_v62, %v8011_v13 }
 0x3c6   :  { %v8066_v42 = vpop.permute.xlu1 %2923  ;;  %3133 = vrot.lane.b32.xlu0 %v8062_v59, %s6459_s25 }
 0x3c8   :  { %2887 = vrot.lane.b32.xlu1 %v8039_v7, %s6458_s24  ;;  %v3106_v22 = vpop.permute.xlu0 %3105 }
 0x3c9   :  { %v3332_v50 = vsel %vm1658_vm10, %v3300_v25, %v3106_v22  ;;  %v3262_v25 = vsel %vm1576_vm8, %v7804_v32, %v8001_v23 }
 0x3ca   :  { %v2920_v4 = vpop.permute.xlu1 %2919  ;;  %v5660_v3 = vcombine.low %v3332_v50, %v3334_v37  ;;  %2889 = vrot.lane.b32.xlu0 %v8048_v33, %s6458_s24  ;;  %v3306_v13 = vsel %vm1625_vm9, %v3262_v25, %v3060_v18 }
 0x3cc   :  { %2939 = vrot.lane.b32.xlu1 %v7766_v52, %s6457_s0  ;;  %v2866_v39 = vpop.permute.xlu0 %2865  ;;  %3689 = vmatprep.mubr.bf16.mxu0 %v5660_v3 }
 0x3cd   :  { %3690 = vmatmul.mubr.bf16.vlgmr.msra.gmra.mxu0 %v5659_v16  ;;  %v3147_v52 = vsel %vm1576_vm8, %v7603_v48, %v2866_v39  ;;  %v3194_v48 = vsel %vm1625_vm9, %v3150_v30, %v7949_v53  ;;  %v3153_v16 = vsel %vm1576_vm8, %v7607_v60, %v8034_v51 }
 0x3ce   :  { %v8093_v15 = vpop.permute.xlu1 %2975  ;;  %2989 = vrot.lane.b32.xlu0 %v7978_v56, %s6459_s25  ;;  %v3192_v56 = vsel %vm1625_vm9, %v3147_v52, %v8009_v12  ;;  %v3226_v32 = vsel %vm1658_vm10, %v3194_v48, %v7969_v20 }
 0x3cf   :  { %v3224_v12 = vsel %vm1658_vm10, %v3192_v56, %v7940_v40 }
 0x3d0   :  { %3135 = vrot.lane.b32.xlu1 %v3104_v5, %s6459_s25  ;;  %v3024_v49 = vpop.permute.xlu0 %3023  ;;  %v5662_v55 = vcombine.low %v3224_v12, %v3226_v32 }
 0x3d2   :  { %v3116_v2 = vpop.permute.xlu1 %3115 }
 0x3d4   :  { %2991 = vrot.lane.b32.xlu1 %v5651_v24, %s6459_s25  ;;  %v3066_v26 = vpop.permute.xlu0 %3065  ;;  %v3259_v24 = vsel %vm1576_vm8, %v7695_v31, %v7959_v19 }
 0x3d5   :  { %v3304_v62 = vsel %vm1625_vm9, %v3259_v24, %v7983_v43 }
 0x3d6   :  { %v2972_v8 = vpop.permute.xlu1 %2971  ;;  %v3336_v31 = vsel %vm1658_vm10, %v3304_v62, %v8027_v28 }
 0x3d8   :  { %v3062_v47 = vpop.permute.xlu0 %3061 }
 0x3da   :  { %v3030_v63 = vpop.permute.xlu1 %3029 }
 0x3db   :  { %v3274_v61 = vsel %vm1576_vm8, %v7878_v46, %v3030_v63 }
 0x3dc   :  { %v2922_v11 = vpop.permute.xlu0 %2921 }
 0x3de   :  { %v2876_v36 = vpop.permute.xlu1 %2875 }
 0x3e0   :  { %v8114_v57 = vpop.permute.xlu0 %2981 }
 0x3e2   :  { %v3112_v22 = vpop.permute.xlu1 %3111 }
 0x3e3   :  { %v3338_v19 = vsel %vm1658_vm10, %v3306_v13, %v3112_v22 }
 0x3e4   :  { %v5663_v23 = vcombine.low %v3336_v31, %v3338_v19  ;;  %v3118_v53 = vpop.permute.xlu0 %3117 }
 0x3e6   :  { %v3026_v37 = vpop.permute.xlu1 %3025  ;;  %3697 = vmatprep.mubr.bf16.mxu0 %v5663_v23 }
 0x3e7   :  { %3698 = vmatmul.mubr.bf16.gmra.mxu0 %v5662_v55  ;;  %v3268_v28 = vsel %vm1576_vm8, %v7898_v27, %v3026_v37  ;;  %v3265_v27 = vsel %vm1576_vm8, %v7872_v14, %v3024_v49 }
 0x3e8   :  { %v8126_v43 = vpop.permute.xlu0 %2977  ;;  %v3310_v5 = vsel %vm1625_vm9, %v3268_v28, %v8037_v35  ;;  %v3308_v46 = vsel %vm1625_vm9, %v3265_v27, %v3062_v47  ;;  %v3196_v35 = vsel %vm1625_vm9, %v3153_v16, %v7999_v58  ;;  %v6451_v28 = vld [vmem:[#allocation3 + $0x50] sm:$0xf] }
 0x3e9   :  { %v3228_v49 = vsel %vm1658_vm10, %v3196_v35, %v8046_v45  ;;  %v4189_v35 = vld [vmem:[#allocation2 + $0x4] sm:$0x1] }
 0x3ea   :  { %v2872_v18 = vpop.permute.xlu1 %2871 }
 0x3eb   :  { %v3156_v40 = vsel %vm1576_vm8, %v7621_v34, %v2872_v18  ;;  %v3271_v34 = vsel %vm1576_vm8, %v7849_v21, %v8060_v6  ;;  %v3342_v6 = vsel %vm1658_vm10, %v3310_v5, %v3116_v2 }
 0x3ec   :  { %v8132_v50 = vpop.permute.xlu0 %3035  ;;  %v3198_v20 = vsel %vm1625_vm9, %v3156_v40, %v2920_v4  ;;  %v3312_v39 = vsel %vm1625_vm9, %v3271_v34, %v3066_v26  ;;  %v3314_v4 = vsel %vm1625_vm9, %v3274_v61, %v7905_v1  ;;  %v3165_v61 = vsel %vm1576_vm8, %v6451_v28, %v7918_v17 }
 0x3ed   :  { %v3230_v60 = vsel %vm1658_vm10, %v3198_v20, %v2972_v8  ;;  %v3344_v51 = vsel %vm1658_vm10, %v3312_v39, %v3118_v53  ;;  %v3346_v1 = vsel %vm1658_vm10, %v3314_v4, %v7915_v9  ;;  %v3162_v8 = vsel %vm1576_vm8, %v7623_v54, %v2876_v36 }
 0x3ee   :  { %v3072_v3 = vpop.permute.xlu1 %3071  ;;  %v5665_v47 = vcombine.low %v3228_v49, %v3230_v60  ;;  %v5669_v58 = vcombine.low %v3344_v51, %v3346_v1  ;;  %v3202_v45 = vsel %vm1625_vm9, %v3162_v8, %v8066_v42  ;;  %v3204_v34 = vsel %vm1625_vm9, %v3165_v61, %v7931_v44  ;;  %v4188_v60 = vld [vmem:[#allocation2] sm:$0xf]  ;;  %v4207_v49 = vld [vmem:[#allocation2 + $0x4c] sm:$0x1] }
 0x3ef   :  { %v3234_v54 = vsel %vm1658_vm10, %v3202_v45, %v8093_v15  ;;  %v3236_v17 = vsel %vm1658_vm10, %v3204_v34, %v8126_v43  ;;  %v5725_v44 = vcombine.low %v4188_v60, %v4189_v35 }
 0x3f0   :  { %v3114_v63 = vpop.permute.xlu0 %3113 }
 0x3f1   :  { %v3340_v21 = vsel %vm1658_vm10, %v3308_v46, %v3114_v63  ;;  %v4309_v1 = vshrl.u32 %v5725_v44, 16 }
 0x3f2   :  { %v8157_v14 = vpop.permute.xlu1 %2931  ;;  %v5666_v26 = vcombine.low %v3340_v21, %v3342_v6  ;;  %v4206_v6 = vld [vmem:[#allocation2 + $0x48] sm:$0xf] }
 0x3f3   :  { %v5759_v8 = vcombine.low %v4206_v6, %v4206_v6  ;;  %v8220_v43 = vcombine.low %v4206_v6, %v4207_v49 }
 0x3f4   :  { %v2874_v52 = vpop.permute.xlu0 %2873  ;;  %3705 = vmatprep.mubr.bf16.mxu0 %v5666_v26  ;;  %v4208_v26 = vld [vmem:[#allocation2 + $0x50] sm:$0xf] }
 0x3f5   :  { %v3159_v30 = vsel %vm1576_vm8, %v7639_v0, %v2874_v52  ;;  %3706 = vmatmul.mubr.bf16.gmra.mxu0 %v5665_v47  ;;  %v4311_v47 = vshll.u32 %v5725_v44, 16  ;;  %4626 = vrot.lane.b32.xlu1 %v5759_v8, %s6457_s0  ;;  %v4653_v45 = vshll.u32 %v8220_v43, 16 }
 0x3f6   :  { %v2928_v2 = vpop.permute.xlu1 %2927  ;;  %v3200_v56 = vsel %vm1625_vm9, %v3159_v30, %v2922_v11  ;;  %3713 = vmatprep.mubr.bf16.mxu0 %v5669_v58  ;;  %v4209_v58 = vld [vmem:[#allocation2 + $0x54] sm:$0x1] }
 0x3f7   :  { %v3232_v9 = vsel %vm1658_vm10, %v3200_v56, %v8018_v29  ;;  %v5733_v52 = vcombine.low %v4208_v26, %v4209_v58  ;;  %v4651_v56 = vshrl.u32 %v8220_v43, 16  ;;  %v9128_v58 = vld [vmem:[#allocation11_spill] sm:$0xff] }
 0x3f8   :  { %v3032_v24 = vpop.permute.xlu0 %3031  ;;  %v5668_v36 = vcombine.low %v3232_v9, %v3234_v54 }
 0x3f9   :  { %v3277_v16 = vsel %vm1576_vm8, %v7963_v38, %v3032_v24  ;;  %v4367_v9 = vshll.u32 %v5733_v52, 16 }
 0x3fa   :  { %v8172_v25 = vpop.permute.xlu1 %2983 }
 0x3fc   :  { %v8176_v48 = vpop.permute.xlu0 %3073 }
 0x3fd   :  { %3714 = vmatmul.mubr.bf16.gmra.mxu0 %v5668_v36  ;;  %v4655_v36 = vrot.slane %v4653_v45, 1 }
 0x3fe   :  { %v3124_v0 = vpop.permute.xlu1 %3123 }
 0x400   :  { %v3070_v62 = vpop.permute.xlu0 %3069 }
 0x402   :  { %v2980_v11 = vpop.permute.xlu1 %2979 }
 0x404   :  { %v8178_v13 = vpop.permute.xlu0 %2933 }
 0x406   :  { %v8180_v22 = vpop.permute.xlu1 %3037 }
 0x408   :  { %v8182_v42 = vpop.permute.xlu0 %2929 }
 0x40a   :  { %v2884_v12 = vpop.permute.xlu1 %2883 }
 0x40c   :  { %v8184_v29 = vpop.permute.xlu0 %3125 }
 0x40e   :  { %v3034_v31 = vpop.permute.xlu1 %3033 }
 0x40f   :  { %v3280_v55 = vsel %vm1576_vm8, %v7992_v41, %v3034_v31  ;;  %v4452_v31 = vrot.slane %v5725_v44, 1 }
 0x410   :  { %v8186_v19 = vpop.permute.xlu0 %2885  ;;  %v3318_v20 = vsel %vm1625_vm9, %v3280_v55, %v3072_v3  ;;  %v4369_v55 = vrot.slane %v4367_v9, 1  ;;  %v9129_v9 = vld [vmem:[#allocation9_spill] sm:$0xff] }
 0x411   :  { %v3350_v39 = vsel %vm1658_vm10, %v3318_v20, %v3124_v0  ;;  %v9124_v0 = vld [vmem:[#allocation10_spill] sm:$0xff]  ;;  %v4226_v20 = vld [vmem:[#allocation2 + $0x98] sm:$0xf] }
 0x412   :  { %v2880_v15 = vpop.permute.xlu1 %2879 }
 0x413   :  { %v3168_v53 = vsel %vm1576_vm8, %v7880_v10, %v2880_v15  ;;  %v3316_v10 = vsel %vm1625_vm9, %v3277_v16, %v3070_v62  ;;  %v4656_v15 = vor.u32 %v4655_v36, %v4651_v56  ;;  %v4227_v16 = vld [vmem:[#allocation2 + $0x9c] sm:$0x1] }
 0x414   :  { %v8188_v23 = vpop.permute.xlu0 %2985  ;;  %v3206_v18 = vsel %vm1625_vm9, %v3168_v53, %v2928_v2  ;;  %v4313_v2 = vrot.slane %v4311_v47, 1  ;;  %v4365_v53 = vshrl.u32 %v5733_v52, 16 }
 0x415   :  { %v3238_v41 = vsel %vm1658_vm10, %v3206_v18, %v2980_v11  ;;  %v9125_v18 = vld [vmem:[#allocation8_spill] sm:$0xff]  ;;  %4678 = vrot.lane.b32.xlu1 %v4656_v15, %s6459_s25 }
 0x416   :  { %v8190_v32 = vpop.permute.xlu1 %3079  ;;  %v5671_v4 = vcombine.low %v3236_v17, %v3238_v41  ;;  %v4314_v54 = vor.u32 %v4313_v2, %v4309_v1  ;;  %v3174_v28 = vsel %vm1576_vm8, %v9125_v18, %v2884_v12  ;;  %v9126_v41 = vld [vmem:[#allocation5_spill] sm:$0xff]  ;;  %v9132_v18 = vld [vmem:[#allocation12_spill] sm:$0xff] }
 0x417   :  { %v3283_v34 = vsel %vm1576_vm8, %v9126_v41, %v8132_v50  ;;  %v3210_v12 = vsel %vm1625_vm9, %v3174_v28, %v8157_v14 }
 0x418   :  { %v8196_v37 = vpop.permute.xlu0 %3043  ;;  %4420 = vrot.lane.b32.xlu0 %v4314_v54, %s6458_s24  ;;  %v3242_v44 = vsel %vm1658_vm10, %v3210_v12, %v8172_v25  ;;  %v6200_v12 = vpop.f32.mrf.mxu1 }
 0x41a   :  { %v8199_v40 = vpop.permute.xlu1 %3075 }
 0x41c   :  { %v3122_v5 = vpop.permute.xlu0 %3121  ;;  %4468 = vrot.lane.b32.xlu0 %v4452_v31, %s6457_s0 }
 0x41d   :  { %v3348_v27 = vsel %vm1658_vm10, %v3316_v10, %v3122_v5  ;;  %v5760_v5 = vcombine.low %v4226_v20, %v4226_v20 }
 0x41e   :  { %v8212_v46 = vpop.permute.xlu1 %2935  ;;  %v5672_v3 = vcombine.low %v3348_v27, %v3350_v39  ;;  %v9127_v27 = vld [vmem:[#allocation15_spill] sm:$0xff] }
 0x41f   :  { %v3286_v39 = vsel %vm1576_vm8, %v9127_v27, %v8180_v22  ;;  %4642 = vrot.lane.b32.xlu1 %v5760_v5, %s6457_s0 }
 0x420   :  { %v2882_v38 = vpop.permute.xlu0 %2881  ;;  %3721 = vmatprep.mubr.bf16.mxu0 %v5672_v3  ;;  %v4370_v3 = vor.u32 %v4369_v55, %v4365_v53  ;;  %v9131_v53 = vld [vmem:[#allocation14_spill] sm:$0xff] }
 0x421   :  { %3722 = vmatmul.mubr.bf16.gmra.mxu0 %v5671_v4  ;;  %v3171_v62 = vsel %vm1576_vm8, %v9124_v0, %v2882_v38  ;;  %v8248_v4 = vcombine.low %v4226_v20, %v4227_v16  ;;  %v3322_v38 = vsel %vm1625_vm9, %v3286_v39, %v8199_v40  ;;  %v4460_v40 = vrot.slane %v5733_v52, 1  ;;  %v9133_v16 = vld [vmem:[#allocation13_spill] sm:$0xff]  ;;  %v6405_v39 = vld [vmem:[%s9057_s6 + $0x88] sm:$0xff]  }
 0x422   :  { %v8216_v63 = vpop.permute.xlu1 %3131  ;;  %v3208_v10 = vsel %vm1625_vm9, %v3171_v62, %v8182_v42  ;;  %v3320_v42 = vsel %vm1625_vm9, %v3283_v34, %v8176_v48  ;;  %4436 = vrot.lane.b32.xlu0 %v4370_v3, %s6458_s24  ;;  %v3177_v52 = vsel %vm1576_vm8, %v9128_v58, %v8186_v19  ;;  %6214 = vmatprep.subr.bf16.mxu0 %v6405_v39  ;;  %v3788_v3 = vpop.f32.mrf.mxu1 }
 0x423   :  { %v3240_v60 = vsel %vm1658_vm10, %v3208_v10, %v8114_v57  ;;  %v3352_v22 = vsel %vm1658_vm10, %v3320_v42, %v8184_v29  ;;  %v4660_v49 = vshll.u32 %v8248_v4, 16  ;;  %v4658_v1 = vshrl.u32 %v8248_v4, 16  ;;  %6215 = vmatpush3.bf16.msra.mxu0 %v6405_v39  ;;  %v8320_v42 = vld [vmem:[%s9056_s5] ss:$0 sm:$0xff] }
 0x424   :  { %v3040_v51 = vpop.permute.xlu0 %3039  ;;  %v5674_v48 = vcombine.low %v3240_v60, %v3242_v44 }
 0x425   :  { %v3289_v57 = vsel %vm1576_vm8, %v8039_v7, %v3040_v51  ;;  %v4662_v47 = vrot.slane %v4660_v49, 1 }
 0x426   :  { %v8218_v21 = vpop.permute.xlu1 %2987  ;;  %4484 = vrot.lane.b32.xlu0 %v4460_v40, %s6457_s0 }
 0x428   :  { %v8222_v30 = vpop.permute.xlu0 %3081 }
 0x42a   :  { %v8227_v24 = vpop.permute.xlu1 %3045 }
 0x42b   :  { %v3298_v31 = vsel %vm1576_vm8, %v8062_v59, %v8227_v24 }
 0x42c   :  { %v3078_v11 = vpop.permute.xlu0 %3077 }
 0x42d   :  { %v3324_v25 = vsel %vm1625_vm9, %v3289_v57, %v3078_v11 }
 0x42e   :  { %v8234_v61 = vpop.permute.xlu1 %2891 }
 0x430   :  { %v2938_v17 = vpop.permute.xlu0 %2937 }
 0x432   :  { %v3128_v50 = vpop.permute.xlu1 %3127 }
 0x433   :  { %v3354_v14 = vsel %vm1658_vm10, %v3322_v38, %v3128_v50 }
 0x434   :  { %v5675_v35 = vcombine.low %v3352_v22, %v3354_v14  ;;  %v3130_v6 = vpop.permute.xlu0 %3129  ;;  %v8323_v14 = vpop.f32.mrf.mxu1 }
 0x435   :  { %v3356_v2 = vsel %vm1658_vm10, %v3324_v25, %v3130_v6 }
 0x436   :  { %v3042_v26 = vpop.permute.xlu1 %3041  ;;  %3729 = vmatprep.mubr.bf16.mxu0 %v5675_v35  ;;  %v3791_v49 = vpop.f32.mrf.mxu1 }
 0x437   :  { %v3292_v29 = vsel %vm1576_vm8, %v8048_v33, %v3042_v26  ;;  %3730 = vmatmul.mubr.bf16.gmra.mxu0 %v5674_v48  ;;  %v4663_v33 = vor.u32 %v4662_v47, %v4658_v1 }
 0x438   :  { %v3326_v8 = vsel %vm1625_vm9, %v3292_v29, %v8190_v32  ;;  %v3134_v56 = vpop.permute.xlu0 %3133  ;;  %v3212_v32 = vsel %vm1625_vm9, %v3177_v52, %v8178_v13  ;;  %v9130_v13 = vld [vmem:[#allocation16_spill] sm:$0xff] }
 0x439   :  { %v3358_v7 = vsel %vm1658_vm10, %v3326_v8, %v8216_v63  ;;  %4694 = vrot.lane.b32.xlu1 %v4663_v33, %s6459_s25  ;;  %v3244_v63 = vsel %vm1658_vm10, %v3212_v32, %v8188_v23  ;;  %v3295_v15 = vsel %vm1576_vm8, %v9130_v13, %v8196_v37  ;;  %v3330_v23 = vsel %vm1625_vm9, %v3298_v31, %v9131_v53  ;;  %v6425_v13 = vld [vmem:[%s9057_s6 + $0x78] sm:$0xff]  }
 0x43a   :  { %v2888_v51 = vpop.permute.xlu1 %2887  ;;  %v5678_v45 = vcombine.low %v3356_v2, %v3358_v7  ;;  %v3186_v37 = vsel %vm1576_vm8, %v9133_v16, %v8234_v61  ;;  %v6406_v61 = vld [vmem:[%s9057_s6 + $0x80] sm:$0xff]   ;;  %v4094_v7 = vld [vmem:[#allocation2 + $0xc] sm:$0x1]  ;;  %6100 = vmatprep.subr.bf16.mxu1 %v6425_v13 }
 0x43b   :  { %v3180_v54 = vsel %vm1576_vm8, %v9129_v9, %v2888_v51  ;;  %6216 = vmatprep.subr.bf16.mxu0 %v6406_v61  ;;  %v4109_v13 = vld [vmem:[#allocation2 + $0x20] sm:$0xf] }
 0x43c   :  { %v3214_v19 = vsel %vm1625_vm9, %v3180_v54, %v8212_v46  ;;  %3737 = vmatprep.mubr.bf16.mxu0 %v5678_v45  ;;  %v2890_v0 = vpop.permute.xlu0 %2889  ;;  %v3328_v46 = vsel %vm1625_vm9, %v3295_v15, %v8222_v30  ;;  %6217 = vmatpush3.bf16.msra.mxu0 %v6406_v61  ;;  %v6426_v15 = vld [vmem:[%s9057_s6 + $0x38] sm:$0xff]  }
 0x43d   :  { %v3246_v36 = vsel %vm1658_vm10, %v3214_v19, %v8218_v21  ;;  %v3360_v21 = vsel %vm1658_vm10, %v3328_v46, %v3134_v56  ;;  %v3183_v28 = vsel %vm1576_vm8, %v9132_v18, %v2890_v0  ;;  %v4091_v56 = vld [vmem:[#allocation2 + $0x8] sm:$0xf]  ;;  %v4100_v0 = vld [vmem:[#allocation2 + $0x14] sm:$0x1]  ;;  %6101 = vmatpush3.bf16.msra.mxu1 %v6426_v15 }
 0x43e   :  { %v2940_v62 = vpop.permute.xlu1 %2939  ;;  %v5677_v11 = vcombine.low %v3244_v63, %v3246_v36  ;;  %v3216_v30 = vsel %vm1625_vm9, %v3183_v28, %v2938_v17  ;;  %v4097_v36 = vld [vmem:[#allocation2 + $0x10] sm:$0xf] }
 0x43f   :  { %v3218_v10 = vsel %vm1625_vm9, %v3186_v37, %v2940_v62 }
 0x440   :  { %3738 = vmatmul.mubr.bf16.gmra.mxu0 %v5677_v11  ;;  %v2990_v59 = vpop.permute.xlu0 %2989 }
 0x441   :  { %v3248_v41 = vsel %vm1658_vm10, %v3216_v30, %v2990_v59  ;;  %v6430_v30 = vld [vmem:[%s9057_s6 + $0x30] sm:$0xff]  }
 0x442   :  { %v3136_v55 = vpop.permute.xlu1 %3135 }
 0x443   :  { %v3362_v20 = vsel %vm1658_vm10, %v3330_v23, %v3136_v55 }
 0x444   :  { %v5681_v24 = vcombine.low %v3360_v21, %v3362_v20  ;;  %v6427_v20 = vld [vmem:[%s9057_s6 + $0x70] sm:$0xff]  }
 0x445   :  { %6102 = vmatprep.subr.bf16.mxu1 %v6427_v20 }
 0x446   :  { %v2992_v5 = vpop.permute.xlu1 %2991  ;;  %3745 = vmatprep.mubr.bf16.mxu0 %v5681_v24  ;;  %6103 = vmatpush3.bf16.msra.mxu1 %v6430_v30 }
 0x447   :  { %v3250_v34 = vsel %vm1658_vm10, %v3218_v10, %v2992_v5 }
 0x448   :  { %v5680_v27 = vcombine.low %v3248_v41, %v3250_v34 }
 0x44a   :  { %3746 = vmatmul.mubr.bf16.gmra.mxu0 %v5680_v27 }
 0x48d   :  { %v6042_v17 = vpop.f32.mrf.mxu0 }
 0x48f   :  { %v6043_v38 = vpop.f32.mrf.mxu0 }
 0x490   :  { %v6044_v50 = vadd.f32 %v6043_v38, %v6042_v17 }
 0x491   :  { %v6045_v60 = vpop.f32.mrf.mxu0 }
 0x492   :  { %v3692_v22 = vadd.f32 %v6044_v50, %v8320_v42 }
 0x493   :  { %v6046_v35 = vpop.f32.mrf.mxu0 }
 0x494   :  { %v3789_v44 = vadd.f32 %v3788_v3, %v3692_v22  ;;  %v6047_v6 = vadd.f32 %v6046_v35, %v6045_v60  ;;  %v6431_v3 = vld [vmem:[%s9057_s6 + $0x68] sm:$0xff]   ;;  %v6434_v60 = vld [vmem:[%s9057_s6 + $0x60] sm:$0xff]   ;;  %v8367_v35 = vpop.f32.mrf.mxu1 }
 0x495   :  { %6104 = vmatprep.subr.bf16.mxu1 %v6431_v3  ;;  %v6435_v22 = vld [vmem:[%s9057_s6 + $0x20] sm:$0xff]  }
 0x496   :  { %v3851_v48 = vmax.f32 %v3789_v44, 0.0  ;;  %v3695_v40 = vadd.f32 %v6047_v6, %v8320_v42 }
 0x498   :  { %v5846_v26 = vpack.c.bf16 %v3851_v48, %v3851_v48  ;;  %v3792_v57 = vadd.f32 %v3791_v49, %v3695_v40 }
 0x49a   :  { %v3932_v29 = vshrl.u32 %v5846_v26, 16  ;;  %v3852_v1 = vmax.f32 %v3792_v57, 0.0  ;;  %v3935_v25 = vshll.u32 %v5846_v26, 16 }
 0x49c   :  { %v3934_v47 = vrot.slane %v3932_v29, 7  ;;  %v5847_v8 = vpack.c.bf16 %v3852_v1, %v3852_v1  ;;  %v3804_v1 = vpop.f32.mrf.mxu1 }
 0x49e   :  { %v3937_v58 = vor.u32 %v3935_v25, %v3934_v47  ;;  %v3938_v52 = vrot.slane %v3934_v47, 4  ;;  %v3940_v2 = vshrl.u32 %v5847_v8, 16  ;;  %v3943_v32 = vshll.u32 %v5847_v8, 16  ;;  %v4103_v8 = vld [vmem:[#allocation2 + $0x18] sm:$0xf] }
 0x4a0   :  { %v4092_v51 = vsel %vm6808_vm6, %v3937_v58, %v4091_v56  ;;  %v4095_v9 = vsel %vm6814_vm7, %v3938_v52, %v4094_v7  ;;  %v3942_v54 = vrot.slane %v3940_v2, 7  ;;  %v4106_v56 = vld [vmem:[#allocation2 + $0x1c] sm:$0x1] }
 0x4a1   :  { %4093 = vst [vmem:[#allocation2 + $0x8] sm:$0xf] %v4092_v51  ;;  %4096 = vst [vmem:[#allocation2 + $0xc] sm:$0x1] %v4095_v9  ;;  %v6437_v51 = vld [vmem:[%s9057_s6 + $0x58] sm:$0xff]  }
 0x4a2   :  { %v3945_v19 = vor.u32 %v3943_v32, %v3942_v54  ;;  %v3946_v63 = vrot.slane %v3942_v54, 4  ;;  %v6438_v9 = vld [vmem:[%s9057_s6 + $0x18] sm:$0xff]  }
 0x4a4   :  { %v4098_v62 = vsel %vm6808_vm6, %v3945_v19, %v4097_v36  ;;  %v4101_v11 = vsel %vm6814_vm7, %v3946_v63, %v4100_v0 }
 0x4a5   :  { %4099 = vst [vmem:[#allocation2 + $0x10] sm:$0xf] %v4098_v62  ;;  %4102 = vst [vmem:[#allocation2 + $0x14] sm:$0x1] %v4101_v11  ;;  %v8392_v62 = vpop.f32.mrf.mxu1 }
 0x4a7   :  { %v6048_v31 = vpop.f32.mrf.mxu0 }
 0x4a8   :  { %v4190_v53 = vld [vmem:[#allocation2 + $0x8] sm:$0xf]  ;;  %v4191_v23 = vld [vmem:[#allocation2 + $0xc] sm:$0x1] }
 0x4a9   :  { %v6049_v46 = vpop.f32.mrf.mxu0  ;;  %v5741_v21 = vcombine.low %v4190_v53, %v4190_v53  ;;  %v5726_v18 = vcombine.low %v4190_v53, %v4191_v23 }
 0x4aa   :  { %v6050_v55 = vadd.f32 %v6049_v46, %v6048_v31  ;;  %v4112_v46 = vld [vmem:[#allocation2 + $0x24] sm:$0x1] }
 0x4ab   :  { %v6051_v28 = vpop.f32.mrf.mxu0  ;;  %4520 = vrot.lane.b32.xlu0 %v5741_v21, %s6459_s25  ;;  %v4453_v24 = vrot.slane %v5726_v18, 1  ;;  %v4318_v34 = vshll.u32 %v5726_v18, 16  ;;  %v4316_v29 = vshrl.u32 %v5726_v18, 16  ;;  %v6440_v21 = vld [vmem:[%s9057_s6 + $0x10] sm:$0xff]  }
 0x4ac   :  { %v3700_v59 = vadd.f32 %v6050_v55, %v8320_v42  ;;  %v4192_v37 = vld [vmem:[#allocation2 + $0x10] sm:$0xf]  ;;  %v4193_v10 = vld [vmem:[#allocation2 + $0x14] sm:$0x1] }
 0x4ad   :  { %v6052_v16 = vpop.f32.mrf.mxu0  ;;  %4470 = vrot.lane.b32.xlu1 %v4453_v24, %s6457_s0  ;;  %v5742_v61 = vcombine.low %v4192_v37, %v4192_v37  ;;  %v8351_v17 = vcombine.low %v4192_v37, %v4193_v10  ;;  %v4320_v48 = vrot.slane %v4318_v34, 1  ;;  %v6439_v55 = vld [vmem:[%s9057_s6 + $0x50] sm:$0xff]   ;;  %v3807_v37 = vpop.f32.mrf.mxu1  ;;  %v6442_v34 = vld [vmem:[%s9057_s6 + $0x48] sm:$0xff]  }
 0x4ae   :  { %v3797_v5 = vadd.f32 %v6200_v12, %v3700_v59  ;;  %v6053_v41 = vadd.f32 %v6052_v16, %v6051_v28  ;;  %v6433_v12 = vld [vmem:[%s9057_s6 + $0x28] sm:$0xff]  }
 0x4af   :  { %4574 = vrot.lane.b32.xlu0 %v4453_v24, %s6458_s24  ;;  %6105 = vmatpush3.bf16.msra.mxu1 %v6433_v12  ;;  %v8377_v2 = vor.u32 %v4320_v48, %v4316_v29  ;;  %v4325_v16 = vshll.u32 %v8351_v17, 16 }
 0x4b0   :  { %v3853_v27 = vmax.f32 %v3797_v5, 0.0  ;;  %v3703_v39 = vadd.f32 %v6053_v41, %v8320_v42  ;;  %6106 = vmatprep.subr.bf16.mxu1 %v6434_v60 }
 0x4b1   :  { %4522 = vrot.lane.b32.xlu1 %v5742_v61, %s6459_s25  ;;  %v4327_v60 = vrot.slane %v4325_v16, 1 }
 0x4b2   :  { %v5848_v38 = vpack.c.bf16 %v3853_v27, %v3853_v27  ;;  %v3800_v50 = vadd.f32 %v8323_v14, %v3703_v39  ;;  %v8371_v14 = vrot.slane %v8351_v17, 1  ;;  %v6443_v27 = vld [vmem:[%s9057_s6 + $0x8] sm:$0xff]  }
 0x4b3   :  { %4612 = vrot.lane.b32.xlu0 %v5742_v61, %s6457_s0  ;;  %6107 = vmatpush3.bf16.msra.mxu1 %v6435_v22 }
 0x4b4   :  { %v3948_v44 = vshrl.u32 %v5848_v38, 16  ;;  %v3854_v6 = vmax.f32 %v3800_v50, 0.0  ;;  %v3951_v49 = vshll.u32 %v5848_v38, 16  ;;  %6108 = vmatprep.subr.bf16.mxu1 %v6437_v51 }
 0x4b5   :  { %v6054_v57 = vpop.f32.mrf.mxu0  ;;  %4576 = vrot.lane.b32.xlu1 %v8371_v14, %s6458_s24 }
 0x4b6   :  { %v3950_v40 = vrot.slane %v3948_v44, 7  ;;  %v5849_v26 = vpack.c.bf16 %v3854_v6, %v3854_v6 }
 0x4b7   :  { %v6055_v52 = vpop.f32.mrf.mxu0  ;;  %4472 = vrot.lane.b32.xlu0 %v8371_v14, %s6457_s0  ;;  %6109 = vmatpush3.bf16.msra.mxu1 %v6438_v9 }
 0x4b8   :  { %v3953_v47 = vor.u32 %v3951_v49, %v3950_v40  ;;  %v3954_v25 = vrot.slane %v3950_v40, 4  ;;  %v3956_v58 = vshrl.u32 %v5849_v26, 16  ;;  %v6056_v7 = vadd.f32 %v6055_v52, %v6054_v57  ;;  %6110 = vmatprep.subr.bf16.mxu1 %v6439_v55 }
 0x4b9   :  { %v3959_v63 = vshll.u32 %v5849_v26, 16  ;;  %v6057_v36 = vpop.f32.mrf.mxu0  ;;  %4422 = vrot.lane.b32.xlu1 %v8377_v2, %s6458_s24  ;;  %v4323_v40 = vshrl.u32 %v8351_v17, 16  ;;  %v6444_v17 = vld [vmem:[%s9057_s6 + $0x40] sm:$0xff]  }
 0x4ba   :  { %v4104_v54 = vsel %vm6808_vm6, %v3953_v47, %v4103_v8  ;;  %v4107_v32 = vsel %vm6814_vm7, %v3954_v25, %v4106_v56  ;;  %v3958_v19 = vrot.slane %v3956_v58, 7  ;;  %v3708_v0 = vadd.f32 %v6056_v7, %v8320_v42  ;;  %v4115_v8 = vld [vmem:[#allocation2 + $0x28] sm:$0xf]  ;;  %v4118_v56 = vld [vmem:[#allocation2 + $0x2c] sm:$0x1] }
 0x4bb   :  { %4105 = vst [vmem:[#allocation2 + $0x18] sm:$0xf] %v4104_v54  ;;  %4108 = vst [vmem:[#allocation2 + $0x1c] sm:$0x1] %v4107_v32  ;;  %v6058_v15 = vpop.f32.mrf.mxu0  ;;  %6111 = vmatpush3.bf16.msra.mxu1 %v6440_v21  ;;  %v8425_v52 = vor.u32 %v4327_v60, %v4323_v40  ;;  %v6445_v54 = vld [vmem:[%s9057_s6] sm:$0xff]  }
 0x4bc   :  { %v3961_v11 = vor.u32 %v3959_v63, %v3958_v19  ;;  %v3962_v31 = vrot.slane %v3958_v19, 4  ;;  %v3805_v53 = vadd.f32 %v3804_v1, %v3708_v0  ;;  %v6059_v23 = vadd.f32 %v6058_v15, %v6057_v36  ;;  %6112 = vmatprep.subr.bf16.mxu1 %v6442_v34  ;;  %v4121_v15 = vld [vmem:[#allocation2 + $0x30] sm:$0xf] }
 0x4bd   :  { %v6060_v20 = vpop.f32.mrf.mxu0 }
 0x4be   :  { %v4110_v18 = vsel %vm6808_vm6, %v3961_v11, %v4109_v13  ;;  %v4113_v28 = vsel %vm6814_vm7, %v3962_v31, %v4112_v46  ;;  %v3855_v59 = vmax.f32 %v3805_v53, 0.0  ;;  %v3711_v24 = vadd.f32 %v6059_v23, %v8320_v42  ;;  %v4124_v46 = vld [vmem:[#allocation2 + $0x34] sm:$0x1] }
 0x4bf   :  { %4111 = vst [vmem:[#allocation2 + $0x20] sm:$0xf] %v4110_v18  ;;  %4114 = vst [vmem:[#allocation2 + $0x24] sm:$0x1] %v4113_v28  ;;  %v6061_v10 = vpop.f32.mrf.mxu0  ;;  %6113 = vmatpush3.bf16.msra.mxu1 %v6443_v27 }
 0x4c0   :  { %v5850_v30 = vpack.c.bf16 %v3855_v59, %v3855_v59  ;;  %v3808_v5 = vadd.f32 %v3807_v37, %v3711_v24  ;;  %v6062_v41 = vadd.f32 %v6061_v10, %v6060_v20  ;;  %6114 = vmatprep.subr.bf16.mxu1 %v6444_v17 }
 0x4c1   :  { %v6063_v39 = vpop.f32.mrf.mxu0 }
 0x4c2   :  { %v8412_v61 = vld [vmem:[#allocation2 + $0x18] sm:$0xf]  ;;  %v4195_v3 = vld [vmem:[#allocation2 + $0x1c] sm:$0x1]  ;;  %v3964_v12 = vshrl.u32 %v5850_v30, 16  ;;  %v3856_v38 = vmax.f32 %v3808_v5, 0.0  ;;  %v3716_v50 = vadd.f32 %v6062_v41, %v8320_v42 }
 0x4c3   :  { %v3967_v22 = vshll.u32 %v5850_v30, 16  ;;  %v6064_v44 = vpop.f32.mrf.mxu0  ;;  %v8416_v6 = vcombine.low %v8412_v61, %v4195_v3  ;;  %v5743_v48 = vcombine.low %v8412_v61, %v8412_v61  ;;  %6115 = vmatpush3.bf16.msra.mxu1 %v6445_v54  ;;  %v4127_v30 = vld [vmem:[#allocation2 + $0x38] sm:$0xf]  ;;  %v4130_v5 = vld [vmem:[#allocation2 + $0x3c] sm:$0x1] }
 0x4c4   :  { %v3966_v49 = vrot.slane %v3964_v12, 7  ;;  %v5851_v26 = vpack.c.bf16 %v3856_v38, %v3856_v38  ;;  %v3813_v57 = vadd.f32 %v8367_v35, %v3716_v50  ;;  %v6065_v29 = vadd.f32 %v6064_v44, %v6063_v39 }
 0x4c5   :  { %4524 = vrot.lane.b32.xlu0 %v5743_v48, %s6459_s25  ;;  %4614 = vrot.lane.b32.xlu1 %v5743_v48, %s6457_s0  ;;  %v4455_v1 = vrot.slane %v8416_v6, 1  ;;  %v4332_v9 = vshll.u32 %v8416_v6, 16  ;;  %v4330_v16 = vshrl.u32 %v8416_v6, 16 }
 0x4c6   :  { %v3969_v47 = vor.u32 %v3967_v22, %v3966_v49  ;;  %v3970_v25 = vrot.slane %v3966_v49, 4  ;;  %v3972_v58 = vshrl.u32 %v5851_v26, 16  ;;  %v3857_v7 = vmax.f32 %v3813_v57, 0.0  ;;  %v8444_v11 = vld [vmem:[#allocation2 + $0x20] sm:$0xf] }
 0x4c7   :  { %v3719_v35 = vadd.f32 %v6065_v29, %v8320_v42  ;;  %v5766_v51 = vcombine.low %v8371_v14, %v4455_v1  ;;  %v3975_v36 = vshll.u32 %v5851_v26, 16  ;;  %v5744_v21 = vcombine.low %v8444_v11, %v8444_v11  ;;  %v4197_v28 = vld [vmem:[#allocation2 + $0x24] sm:$0x1]  ;;  %v4133_v49 = vld [vmem:[#allocation2 + $0x40] sm:$0xf] }
 0x4c8   :  { %v4116_v32 = vsel %vm6808_vm6, %v3969_v47, %v4115_v8  ;;  %v4119_v19 = vsel %vm6814_vm7, %v3970_v25, %v4118_v56  ;;  %v3974_v63 = vrot.slane %v3972_v58, 7  ;;  %v5852_v0 = vpack.c.bf16 %v3857_v7, %v3857_v7  ;;  %v4136_v26 = vld [vmem:[#allocation2 + $0x44] sm:$0x1] }
 0x4c9   :  { %4117 = vst [vmem:[#allocation2 + $0x28] sm:$0xf] %v4116_v32  ;;  %4120 = vst [vmem:[#allocation2 + $0x2c] sm:$0x1] %v4119_v19  ;;  %v3816_v14 = vadd.f32 %v8392_v62, %v3719_v35  ;;  %6218 = vmatprep.mubr.msk.bf16.mxu0 %vm1576_vm8, %v5766_v51  ;;  %4664 = vrot.lane.b32.xlu0 %v8425_v52, %s6459_s25  ;;  %v4334_v18 = vrot.slane %v4332_v9, 1  ;;  %v5729_v34 = vcombine.low %v8444_v11, %v4197_v28 }
 0x4ca   :  { %v3977_v31 = vor.u32 %v3975_v36, %v3974_v63  ;;  %v3978_v13 = vrot.slane %v3974_v63, 4  ;;  %4474 = vrot.lane.b32.xlu1 %v4455_v1, %s6457_s0  ;;  %v3980_v53 = vshrl.u32 %v5852_v0, 16  ;;  %v3983_v59 = vshll.u32 %v5852_v0, 16 }
 0x4cb   :  { %v3858_v23 = vmax.f32 %v3816_v14, 0.0  ;;  %v8457_v39 = vor.u32 %v4334_v18, %v4330_v16  ;;  %v4456_v48 = vrot.slane %v5729_v34, 1  ;;  %v4339_v8 = vshll.u32 %v5729_v34, 16 }
 0x4cc   :  { %v4122_v55 = vsel %vm6808_vm6, %v3977_v31, %v4121_v15  ;;  %v4125_v62 = vsel %vm6814_vm7, %v3978_v13, %v4124_v46  ;;  %v3982_v20 = vrot.slane %v3980_v53, 7  ;;  %v4337_v32 = vshrl.u32 %v5729_v34, 16  ;;  %v8508_v31 = vpop.f32.mrf.mxu1 }
 0x4cd   :  { %4123 = vst [vmem:[#allocation2 + $0x30] sm:$0xf] %v4122_v55  ;;  %4126 = vst [vmem:[#allocation2 + $0x34] sm:$0x1] %v4125_v62  ;;  %v5853_v24 = vpack.c.bf16 %v3858_v23, %v3858_v23  ;;  %4578 = vrot.lane.b32.xlu0 %v4455_v1, %s6458_s24  ;;  %v4341_v51 = vrot.slane %v4339_v8, 1  ;;  %v4696_v14 = vrot.slane %v8220_v43, 1 }
 0x4ce   :  { %4526 = vrot.lane.b32.xlu1 %v5744_v21, %s6459_s25  ;;  %v3985_v37 = vor.u32 %v3983_v59, %v3982_v20  ;;  %v3986_v10 = vrot.slane %v3982_v20, 4  ;;  %v3820_v43 = vpop.f32.mrf.mxu1 }
 0x4cf   :  { %v3988_v41 = vshrl.u32 %v5853_v24, 16  ;;  %v3991_v27 = vshll.u32 %v5853_v24, 16  ;;  %v8510_v13 = vor.u32 %v4341_v51, %v4337_v32 }
 0x4d0   :  { %v8459_v3 = vld [vmem:[#allocation2 + $0x28] sm:$0xf]  ;;  %v4199_v12 = vld [vmem:[#allocation2 + $0x2c] sm:$0x1]  ;;  %v4128_v38 = vsel %vm6808_vm6, %v3985_v37, %v4127_v30  ;;  %v4131_v50 = vsel %vm6814_vm7, %v3986_v10, %v4130_v5  ;;  %v8527_v24 = vpop.f32.mrf.mxu1 }
 0x4d1   :  { %v3990_v60 = vrot.slane %v3988_v41, 7  ;;  %4424 = vrot.lane.b32.xlu0 %v8425_v52, %s6458_s24  ;;  %v8468_v22 = vcombine.low %v8459_v3, %v4199_v12  ;;  %4129 = vst [vmem:[#allocation2 + $0x38] sm:$0xf] %v4128_v38  ;;  %4132 = vst [vmem:[#allocation2 + $0x3c] sm:$0x1] %v4131_v50  ;;  %v5745_v35 = vcombine.low %v8459_v3, %v8459_v3 }
 0x4d2   :  { %4666 = vrot.lane.b32.xlu1 %v8457_v39, %s6459_s25  ;;  %v3823_v34 = vpop.f32.mrf.mxu1 }
 0x4d3   :  { %v3993_v44 = vor.u32 %v3991_v27, %v3990_v60  ;;  %v3994_v6 = vrot.slane %v3990_v60, 4  ;;  %v4457_v40 = vrot.slane %v8468_v22, 1  ;;  %v4346_v46 = vshll.u32 %v8468_v22, 16 }
 0x4d4   :  { %v8478_v47 = vld [vmem:[#allocation2 + $0x30] sm:$0xf]  ;;  %v4201_v25 = vld [vmem:[#allocation2 + $0x34] sm:$0x1]  ;;  %v4344_v59 = vshrl.u32 %v8468_v22, 16 }
 0x4d5   :  { %v4134_v57 = vsel %vm6808_vm6, %v3993_v44, %v4133_v49  ;;  %v4137_v29 = vsel %vm6814_vm7, %v3994_v6, %v4136_v26  ;;  %4616 = vrot.lane.b32.xlu0 %v5744_v21, %s6457_s0  ;;  %v5769_v1 = vcombine.low %v4456_v48, %v4457_v40  ;;  %v8483_v58 = vcombine.low %v8478_v47, %v4201_v25  ;;  %v4139_v26 = vld [vmem:[#allocation2 + $0x58] sm:$0xf] }
 0x4d6   :  { %4135 = vst [vmem:[#allocation2 + $0x40] sm:$0xf] %v4134_v57  ;;  %4138 = vst [vmem:[#allocation2 + $0x44] sm:$0x1] %v4137_v29  ;;  %4580 = vrot.lane.b32.xlu1 %v4456_v48, %s6458_s24  ;;  %v5746_v21 = vcombine.low %v8478_v47, %v8478_v47  ;;  %v4348_v18 = vrot.slane %v4346_v46, 1 }
 0x4d7   :  { %6219 = vmatmul.mubr.msk.bf16.vlgmr.msra.gmra.mxu0 %vm1576_vm8, %v5769_v1  ;;  %v4458_v9 = vrot.slane %v8483_v58, 1  ;;  %v4353_v60 = vshll.u32 %v8483_v58, 16  ;;  %v4142_v57 = vld [vmem:[#allocation2 + $0x5c] sm:$0x1]  ;;  %v4351_v51 = vshrl.u32 %v8483_v58, 16 }
 0x4d8   :  { %v8486_v17 = vld [vmem:[#allocation2 + $0x38] sm:$0xf]  ;;  %v4203_v56 = vld [vmem:[#allocation2 + $0x3c] sm:$0x1]  ;;  %v8529_v30 = vor.u32 %v4348_v18, %v4344_v59  ;;  %v8563_v18 = vpop.f32.mrf.mxu1 }
 0x4d9   :  { %4476 = vrot.lane.b32.xlu0 %v4456_v48, %s6457_s0  ;;  %v8491_v7 = vcombine.low %v8486_v17, %v4203_v56  ;;  %v5747_v29 = vcombine.low %v8486_v17, %v8486_v17  ;;  %v4355_v1 = vrot.slane %v4353_v60, 1 }
 0x4da   :  { %4426 = vrot.lane.b32.xlu1 %v8457_v39, %s6458_s24 }
 0x4db   :  { %v8497_v54 = vrot.slane %v8491_v7, 1  ;;  %v8551_v46 = vor.u32 %v4355_v1, %v4351_v51 }
 0x4dd   :  { %4528 = vrot.lane.b32.xlu0 %v5745_v35, %s6459_s25  ;;  %v8500_v19 = vld [vmem:[#allocation2 + $0x40] sm:$0xf]  ;;  %v4205_v63 = vld [vmem:[#allocation2 + $0x44] sm:$0x1]  ;;  %v5772_v36 = vcombine.low %v4458_v9, %v8497_v54 }
 0x4de   :  { %4618 = vrot.lane.b32.xlu1 %v5745_v35, %s6457_s0  ;;  %v8505_v0 = vcombine.low %v8500_v19, %v4205_v63 }
 0x4df   :  { %6222 = vmatprep.mubr.msk.bf16.mxu0 %vm1576_vm8, %v5772_v36  ;;  %v4145_v36 = vld [vmem:[#allocation2 + $0x60] sm:$0xf] }
 0x4e0   :  { %v4572_v15 = vrot.slane %v8505_v0, 1 }
 0x4e1   :  { %4668 = vrot.lane.b32.xlu0 %v8510_v13, %s6459_s25  ;;  %v6066_v53 = vpop.f32.mrf.mxu0 }
 0x4e2   :  { %4478 = vrot.lane.b32.xlu1 %v4457_v40, %s6457_s0  ;;  %v5775_v23 = vcombine.low %v4572_v15, %v4696_v14  ;;  %v4148_v14 = vld [vmem:[#allocation2 + $0x64] sm:$0x1] }
 0x4e3   :  { %v6067_v55 = vpop.f32.mrf.mxu0 }
 0x4e4   :  { %v6068_v62 = vadd.f32 %v6067_v55, %v6066_v53  ;;  %6223 = vmatmul.mubr.msk.bf16.gmra.mxu0 %vm1576_vm8, %v5775_v23  ;;  %v4360_v55 = vshll.u32 %v8491_v7, 16 }
 0x4e5   :  { %4582 = vrot.lane.b32.xlu0 %v4457_v40, %s6458_s24  ;;  %v6069_v28 = vpop.f32.mrf.mxu0 }
 0x4e6   :  { %v3724_v20 = vadd.f32 %v6068_v62, %v8320_v42  ;;  %4530 = vrot.lane.b32.xlu1 %v5746_v21, %s6459_s25  ;;  %v4362_v59 = vrot.slane %v4360_v55, 1 }
 0x4e7   :  { %v6070_v16 = vpop.f32.mrf.mxu0 }
 0x4e8   :  { %v3821_v37 = vadd.f32 %v3820_v43, %v3724_v20  ;;  %v6071_v10 = vadd.f32 %v6070_v16, %v6069_v28  ;;  %v5748_v20 = vcombine.low %v8500_v19, %v8500_v19 }
 0x4e9   :  { %4428 = vrot.lane.b32.xlu0 %v8510_v13, %s6458_s24 }
 0x4ea   :  { %v3859_v5 = vmax.f32 %v3821_v37, 0.0  ;;  %v3727_v41 = vadd.f32 %v6071_v10, %v8320_v42  ;;  %4670 = vrot.lane.b32.xlu1 %v8529_v30, %s6459_s25  ;;  %v4358_v10 = vshrl.u32 %v8491_v7, 16  ;;  %v4561_v7 = vshll.u32 %v8505_v0, 16 }
 0x4ec   :  { %v5854_v27 = vpack.c.bf16 %v3859_v5, %v3859_v5  ;;  %v3824_v12 = vadd.f32 %v3823_v34, %v3727_v41 }
 0x4ed   :  { %4620 = vrot.lane.b32.xlu0 %v5746_v21, %s6457_s0 }
 0x4ee   :  { %v3996_v38 = vshrl.u32 %v5854_v27, 16  ;;  %v3860_v50 = vmax.f32 %v3824_v12, 0.0  ;;  %4584 = vrot.lane.b32.xlu1 %v4458_v9, %s6458_s24  ;;  %v3999_v44 = vshll.u32 %v5854_v27, 16  ;;  %v3836_v27 = vpop.f32.mrf.mxu1  ;;  %v8573_v12 = vor.u32 %v4362_v59, %v4358_v10  ;;  %v4160_v10 = vld [vmem:[#allocation2 + $0x74] sm:$0x1] }
 0x4f0   :  { %v3998_v22 = vrot.slane %v3996_v38, 7  ;;  %v5855_v6 = vpack.c.bf16 %v3860_v50, %v3860_v50 }
 0x4f1   :  { %4480 = vrot.lane.b32.xlu0 %v4458_v9, %s6457_s0 }
 0x4f2   :  { %v4001_v48 = vor.u32 %v3999_v44, %v3998_v22  ;;  %v4002_v40 = vrot.slane %v3998_v22, 4  ;;  %v4004_v49 = vshrl.u32 %v5855_v6, 16  ;;  %4430 = vrot.lane.b32.xlu1 %v8529_v30, %s6458_s24  ;;  %v4007_v35 = vshll.u32 %v5855_v6, 16  ;;  %v8581_v44 = vpop.f32.mrf.mxu1 }
 0x4f4   :  { %v4140_v25 = vsel %vm6808_vm6, %v4001_v48, %v4139_v26  ;;  %v4143_v8 = vsel %vm6814_vm7, %v4002_v40, %v4142_v57  ;;  %v4006_v56 = vrot.slane %v4004_v49, 7 }
 0x4f5   :  { %4141 = vst [vmem:[#allocation2 + $0x58] sm:$0xf] %v4140_v25  ;;  %4144 = vst [vmem:[#allocation2 + $0x5c] sm:$0x1] %v4143_v8  ;;  %4532 = vrot.lane.b32.xlu0 %v5747_v29, %s6459_s25  ;;  %v4563_v25 = vrot.slane %v4561_v7, 1 }
 0x4f6   :  { %v4009_v9 = vor.u32 %v4007_v35, %v4006_v56  ;;  %v4010_v32 = vrot.slane %v4006_v56, 4  ;;  %4622 = vrot.lane.b32.xlu1 %v5747_v29, %s6457_s0 }
 0x4f7   :  { %v6072_v63 = vpop.f32.mrf.mxu0 }
 0x4f8   :  { %v4146_v53 = vsel %vm6808_vm6, %v4009_v9, %v4145_v36  ;;  %v4149_v23 = vsel %vm6814_vm7, %v4010_v32, %v4148_v14  ;;  %v3839_v9 = vpop.f32.mrf.mxu1  ;;  %v4151_v32 = vld [vmem:[#allocation2 + $0x68] sm:$0xf] }
 0x4f9   :  { %v6073_v43 = vpop.f32.mrf.mxu0  ;;  %4147 = vst [vmem:[#allocation2 + $0x60] sm:$0xf] %v4146_v53  ;;  %4150 = vst [vmem:[#allocation2 + $0x64] sm:$0x1] %v4149_v23  ;;  %4672 = vrot.lane.b32.xlu0 %v8551_v46, %s6459_s25  ;;  %v4559_v53 = vshrl.u32 %v8505_v0, 16 }
 0x4fa   :  { %v6074_v58 = vadd.f32 %v6073_v43, %v6072_v63  ;;  %4482 = vrot.lane.b32.xlu1 %v8497_v54, %s6457_s0  ;;  %v4154_v63 = vld [vmem:[#allocation2 + $0x6c] sm:$0x1] }
 0x4fb   :  { %v6075_v62 = vpop.f32.mrf.mxu0 }
 0x4fc   :  { %v3732_v21 = vadd.f32 %v6074_v58, %v8320_v42  ;;  %v8584_v48 = vld [vmem:[#allocation2 + $0x58] sm:$0xf]  ;;  %v4211_v57 = vld [vmem:[#allocation2 + $0x5c] sm:$0x1] }
 0x4fd   :  { %v6076_v28 = vpop.f32.mrf.mxu0  ;;  %4586 = vrot.lane.b32.xlu0 %v8497_v54, %s6458_s24  ;;  %v5749_v51 = vcombine.low %v8584_v48, %v8584_v48  ;;  %v8595_v23 = vcombine.low %v8584_v48, %v4211_v57 }
 0x4fe   :  { %v3829_v16 = vadd.f32 %v8508_v31, %v3732_v21  ;;  %v6077_v37 = vadd.f32 %v6076_v28, %v6075_v62  ;;  %4534 = vrot.lane.b32.xlu1 %v5748_v20, %s6459_s25  ;;  %v8604_v28 = vpop.permute.xlu1 %4626 }
 0x500   :  { %v3861_v5 = vmax.f32 %v3829_v16, 0.0  ;;  %v3735_v41 = vadd.f32 %v6077_v37, %v8320_v42  ;;  %v6078_v34 = vpop.f32.mrf.mxu0  ;;  %v4157_v37 = vld [vmem:[#allocation2 + $0x70] sm:$0xf] }
 0x501   :  { %4432 = vrot.lane.b32.xlu0 %v8551_v46, %s6458_s24 }
 0x502   :  { %v5856_v38 = vpack.c.bf16 %v3861_v5, %v3861_v5  ;;  %v3832_v19 = vadd.f32 %v8527_v24, %v3735_v41  ;;  %v6079_v31 = vpop.f32.mrf.mxu0  ;;  %4674 = vrot.lane.b32.xlu1 %v8573_v12, %s6459_s25  ;;  %v8608_v41 = vor.u32 %v4563_v25, %v4559_v53 }
 0x503   :  { %v6080_v54 = vadd.f32 %v6079_v31, %v6078_v34  ;;  %v8611_v31 = vld [vmem:[#allocation2 + $0x60] sm:$0xf] }
 0x504   :  { %v4012_v50 = vshrl.u32 %v5856_v38, 16  ;;  %v3862_v60 = vmax.f32 %v3832_v19, 0.0  ;;  %v6081_v22 = vpop.f32.mrf.mxu0  ;;  %v4015_v40 = vshll.u32 %v5856_v38, 16  ;;  %v4461_v19 = vrot.slane %v8595_v23, 1 }
 0x505   :  { %v3740_v6 = vadd.f32 %v6080_v54, %v8320_v42  ;;  %4624 = vrot.lane.b32.xlu0 %v5748_v20, %s6457_s0  ;;  %v5750_v57 = vcombine.low %v8611_v31, %v8611_v31 }
 0x506   :  { %v4014_v24 = vrot.slane %v4012_v50, 7  ;;  %v5857_v49 = vpack.c.bf16 %v3862_v60, %v3862_v60  ;;  %v6082_v26 = vpop.f32.mrf.mxu0  ;;  %4588 = vrot.lane.b32.xlu1 %v4572_v15, %s6458_s24  ;;  %v8597_v15 = vpop.permute.xlu0 %4420  ;;  %v4213_v60 = vld [vmem:[#allocation2 + $0x64] sm:$0x1] }
 0x507   :  { %v3837_v29 = vadd.f32 %v3836_v27, %v3740_v6  ;;  %v6083_v1 = vadd.f32 %v6082_v26, %v6081_v22 }
 0x508   :  { %v4017_v8 = vor.u32 %v4015_v40, %v4014_v24  ;;  %v4018_v56 = vrot.slane %v4014_v24, 4  ;;  %v4020_v35 = vshrl.u32 %v5857_v49, 16  ;;  %v4023_v62 = vshll.u32 %v5857_v49, 16 }
 0x509   :  { %v3863_v36 = vmax.f32 %v3837_v29, 0.0  ;;  %v3743_v14 = vadd.f32 %v6083_v1, %v8320_v42  ;;  %4536 = vrot.lane.b32.xlu0 %v5749_v51, %s6459_s25  ;;  %v8625_v29 = vpop.permute.xlu1 %4678  ;;  %v4374_v1 = vshll.u32 %v8595_v23, 16 }
 0x50a   :  { %v4152_v43 = vsel %vm6808_vm6, %v4017_v8, %v4151_v32  ;;  %v4155_v55 = vsel %vm6814_vm7, %v4018_v56, %v4154_v63  ;;  %v4022_v58 = vrot.slane %v4020_v35, 7  ;;  %v6084_v21 = vpop.f32.mrf.mxu0  ;;  %4434 = vrot.lane.b32.xlu1 %v8573_v12, %s6458_s24  ;;  %v8621_v49 = vpop.permute.xlu0 %4468  ;;  %v4163_v56 = vld [vmem:[#allocation2 + $0x78] sm:$0xf]  ;;  %v4166_v35 = vld [vmem:[#allocation2 + $0x7c] sm:$0x1] }
 0x50b   :  { %4153 = vst [vmem:[#allocation2 + $0x68] sm:$0xf] %v4152_v43  ;;  %4156 = vst [vmem:[#allocation2 + $0x6c] sm:$0x1] %v4155_v55  ;;  %v5858_v0 = vpack.c.bf16 %v3863_v36, %v3863_v36  ;;  %v3840_v20 = vadd.f32 %v3839_v9, %v3743_v14  ;;  %v8629_v9 = vcombine.low %v8611_v31, %v4213_v60 }
 0x50c   :  { %v4025_v59 = vor.u32 %v4023_v62, %v4022_v58  ;;  %v4026_v16 = vrot.slane %v4022_v58, 4  ;;  %v6085_v5 = vpop.f32.mrf.mxu0 }
 0x50d   :  { %v4028_v34 = vshrl.u32 %v5858_v0, 16  ;;  %v3864_v27 = vmax.f32 %v3840_v20, 0.0  ;;  %v6086_v38 = vadd.f32 %v6085_v5, %v6084_v21  ;;  %4676 = vrot.lane.b32.xlu0 %v8608_v41, %s6459_s25  ;;  %v4031_v6 = vshll.u32 %v5858_v0, 16  ;;  %v4172_v5 = vld [vmem:[#allocation2 + $0x84] sm:$0x1] }
 0x50e   :  { %v4158_v54 = vsel %vm6808_vm6, %v4025_v59, %v4157_v37  ;;  %v4161_v7 = vsel %vm6814_vm7, %v4026_v16, %v4160_v10  ;;  %v6087_v50 = vpop.f32.mrf.mxu0  ;;  %4486 = vrot.lane.b32.xlu1 %v4461_v19, %s6457_s0  ;;  %v4376_v0 = vrot.slane %v4374_v1, 1  ;;  %v4462_v16 = vrot.slane %v8629_v9, 1  ;;  %v4169_v10 = vld [vmem:[#allocation2 + $0x80] sm:$0xf] }
 0x50f   :  { %4159 = vst [vmem:[#allocation2 + $0x70] sm:$0xf] %v4158_v54  ;;  %4162 = vst [vmem:[#allocation2 + $0x74] sm:$0x1] %v4161_v7  ;;  %v4030_v22 = vrot.slane %v4028_v34, 7  ;;  %v5859_v24 = vpack.c.bf16 %v3864_v27, %v3864_v27  ;;  %v3748_v40 = vadd.f32 %v6086_v38, %v8320_v42  ;;  %v8650_v38 = vpop.permute.xlu0 %4436 }
 0x510   :  { %v6088_v26 = vpop.f32.mrf.mxu0 }
 0x511   :  { %v4033_v25 = vor.u32 %v4031_v6, %v4030_v22  ;;  %v4034_v8 = vrot.slane %v4030_v22, 4  ;;  %v4036_v51 = vshrl.u32 %v5859_v24, 16  ;;  %v4039_v32 = vshll.u32 %v5859_v24, 16  ;;  %4590 = vrot.lane.b32.xlu0 %v4461_v19, %s6458_s24  ;;  %v8652_v19 = vpop.permute.xlu1 %4642 }
 0x512   :  { %v3845_v63 = vadd.f32 %v8563_v18, %v3748_v40  ;;  %v6089_v36 = vadd.f32 %v6088_v26, %v6087_v50  ;;  %v8633_v14 = vld [vmem:[#allocation2 + $0x68] sm:$0xf]  ;;  %v4215_v53 = vld [vmem:[#allocation2 + $0x6c] sm:$0x1]  ;;  %4538 = vrot.lane.b32.xlu1 %v5750_v57, %s6459_s25 }
 0x513   :  { %v4164_v43 = vsel %vm6808_vm6, %v4033_v25, %v4163_v56  ;;  %v4167_v55 = vsel %vm6814_vm7, %v4034_v8, %v4166_v35  ;;  %v4038_v58 = vrot.slane %v4036_v51, 7  ;;  %v8641_v62 = vcombine.low %v8633_v14, %v4215_v53 }
 0x514   :  { %4165 = vst [vmem:[#allocation2 + $0x78] sm:$0xf] %v4164_v43  ;;  %4168 = vst [vmem:[#allocation2 + $0x7c] sm:$0x1] %v4167_v55  ;;  %v3865_v18 = vmax.f32 %v3845_v63, 0.0  ;;  %v3751_v21 = vadd.f32 %v6089_v36, %v8320_v42  ;;  %v4372_v42 = vshrl.u32 %v8595_v23, 16  ;;  %v8675_v63 = vpop.permute.xlu0 %4484  ;;  %v5751_v53 = vcombine.low %v8633_v14, %v8633_v14 }
 0x515   :  { %v4041_v20 = vor.u32 %v4039_v32, %v4038_v58  ;;  %v4042_v59 = vrot.slane %v4038_v58, 4  ;;  %v8646_v37 = vrot.slane %v8641_v62, 1  ;;  %4628 = vrot.lane.b32.xlu0 %v5750_v57, %s6457_s0  ;;  %v8677_v36 = vpop.permute.xlu1 %4694  ;;  %v4175_v43 = vld [vmem:[#allocation2 + $0x88] sm:$0xf]  ;;  %v4178_v55 = vld [vmem:[#allocation2 + $0x8c] sm:$0x1] }
 0x516   :  { %v5860_v34 = vpack.c.bf16 %v3865_v18, %v3865_v18  ;;  %v3848_v27 = vadd.f32 %v8581_v44, %v3751_v21  ;;  %4592 = vrot.lane.b32.xlu1 %v4462_v16, %s6458_s24  ;;  %v4381_v44 = vshll.u32 %v8629_v9, 16  ;;  %v8662_v6 = vld [vmem:[#allocation2 + $0x70] sm:$0xf]  ;;  %v4217_v24 = vld [vmem:[#allocation2 + $0x74] sm:$0x1]  ;;  %v8665_v23 = vor.u32 %v4376_v0, %v4372_v42 }
 0x517   :  { %v4170_v54 = vsel %vm6808_vm6, %v4041_v20, %v4169_v10  ;;  %v4173_v7 = vsel %vm6814_vm7, %v4042_v59, %v4172_v5  ;;  %v5778_v50 = vcombine.low %v4462_v16, %v8646_v37  ;;  %v8673_v56 = vcombine.low %v8662_v6, %v4217_v24  ;;  %v4184_v42 = vld [vmem:[#allocation2 + $0x94] sm:$0x1] }
 0x518   :  { %4171 = vst [vmem:[#allocation2 + $0x80] sm:$0xf] %v4170_v54  ;;  %4174 = vst [vmem:[#allocation2 + $0x84] sm:$0x1] %v4173_v7  ;;  %v4044_v60 = vshrl.u32 %v5860_v34, 16  ;;  %v3866_v22 = vmax.f32 %v3848_v27, 0.0  ;;  %v5752_v33 = vcombine.low %v8662_v6, %v8662_v6 }
 0x519   :  { %6226 = vmatprep.mubr.msk.bf16.mxu0 %vm1576_vm8, %v5778_v50  ;;  %v4047_v26 = vshll.u32 %v5860_v34, 16  ;;  %4488 = vrot.lane.b32.xlu0 %v4462_v16, %s6457_s0  ;;  %v4383_v1 = vrot.slane %v4381_v44, 1  ;;  %v4379_v58 = vshrl.u32 %v8629_v9, 16  ;;  %v4464_v16 = vrot.slane %v8673_v56, 1  ;;  %v4181_v27 = vld [vmem:[#allocation2 + $0x90] sm:$0xf] }
 0x51a   :  { %v4046_v40 = vrot.slane %v4044_v60, 7  ;;  %v5861_v57 = vpack.c.bf16 %v3866_v22, %v3866_v22  ;;  %4438 = vrot.lane.b32.xlu1 %v8665_v23, %s6458_s24  ;;  %v4388_v7 = vshll.u32 %v8641_v62, 16 }
 0x51b   :  { %v8670_v25 = vld [vmem:[#allocation2 + $0x78] sm:$0xf]  ;;  %v4219_v8 = vld [vmem:[#allocation2 + $0x7c] sm:$0x1]  ;;  %v8695_v34 = vor.u32 %v4383_v1, %v4379_v58 }
 0x51c   :  { %v4049_v35 = vor.u32 %v4047_v26, %v4046_v40  ;;  %v4050_v51 = vrot.slane %v4046_v40, 4  ;;  %v4052_v32 = vshrl.u32 %v5861_v57, 16  ;;  %v8683_v18 = vcombine.low %v8670_v25, %v4219_v8 }
 0x51d   :  { %v4055_v59 = vshll.u32 %v5861_v57, 16  ;;  %4540 = vrot.lane.b32.xlu0 %v5751_v53, %s6459_s25  ;;  %v8703_v60 = vpop.permute.xlu0 %4520  ;;  %v4390_v45 = vrot.slane %v4388_v7, 1  ;;  %v4386_v8 = vshrl.u32 %v8641_v62, 16 }
 0x51e   :  { %v4176_v21 = vsel %vm6808_vm6, %v4049_v35, %v4175_v43  ;;  %v4179_v0 = vsel %vm6814_vm7, %v4050_v51, %v4178_v55  ;;  %v4054_v20 = vrot.slane %v4052_v32, 7  ;;  %4630 = vrot.lane.b32.xlu1 %v5751_v53, %s6457_s0  ;;  %v8693_v9 = vrot.slane %v8683_v18, 1 }
 0x51f   :  { %4177 = vst [vmem:[#allocation2 + $0x88] sm:$0xf] %v4176_v21  ;;  %4180 = vst [vmem:[#allocation2 + $0x8c] sm:$0x1] %v4179_v0  ;;  %v8705_v22 = vpop.permute.xlu1 %4470  ;;  %v8709_v24 = vld [vmem:[#allocation2 + $0x80] sm:$0xf]  ;;  %v8728_v53 = vor.u32 %v4390_v45, %v4386_v8 }
 0x520   :  { %v4057_v10 = vor.u32 %v4055_v59, %v4054_v20  ;;  %v4058_v5 = vrot.slane %v4054_v20, 4  ;;  %v5781_v54 = vcombine.low %v4464_v16, %v8693_v9  ;;  %v4221_v40 = vld [vmem:[#allocation2 + $0x84] sm:$0x1]  ;;  %v4697_v0 = vrot.slane %v8248_v4, 1 }
 0x521   :  { %4680 = vrot.lane.b32.xlu0 %v8695_v34, %s6459_s25  ;;  %v8717_v26 = vcombine.low %v8709_v24, %v4221_v40  ;;  %v4575_v51 = vpop.permute.xlu0 %4574 }
 0x522   :  { %v4182_v50 = vsel %vm6808_vm6, %v4057_v10, %v4181_v27  ;;  %v4185_v44 = vsel %vm6814_vm7, %v4058_v5, %v4184_v42  ;;  %4490 = vrot.lane.b32.xlu1 %v8646_v37, %s6457_s0  ;;  %6227 = vmatmul.mubr.msk.bf16.gmra.mxu0 %vm1576_vm8, %v5781_v54  ;;  %v4395_v27 = vshll.u32 %v8673_v56, 16  ;;  %v5753_v54 = vcombine.low %v8670_v25, %v8670_v25 }
 0x523   :  { %4183 = vst [vmem:[#allocation2 + $0x90] sm:$0xf] %v4182_v50  ;;  %4186 = vst [vmem:[#allocation2 + $0x94] sm:$0x1] %v4185_v44  ;;  %v4523_v32 = vpop.permute.xlu1 %4522  ;;  %v8731_v43 = vrot.slane %v8717_v26, 1  ;;  %v4393_v50 = vshrl.u32 %v8673_v56, 16  ;;  %v5754_v56 = vcombine.low %v8709_v24, %v8709_v24 }
 0x524   :  { %v4397_v7 = vrot.slane %v4395_v27, 1 }
 0x525   :  { %4594 = vrot.lane.b32.xlu0 %v8646_v37, %s6458_s24  ;;  %v4613_v59 = vpop.permute.xlu0 %4612 }
 0x526   :  { %v8721_v57 = vld [vmem:[#allocation2 + $0x88] sm:$0xf]  ;;  %v4223_v1 = vld [vmem:[#allocation2 + $0x8c] sm:$0x1]  ;;  %4542 = vrot.lane.b32.xlu1 %v5752_v33, %s6459_s25 }
 0x527   :  { %v8726_v35 = vcombine.low %v8721_v57, %v4223_v1  ;;  %v4577_v10 = vpop.permute.xlu1 %4576 }
 0x529   :  { %v8734_v55 = vrot.slane %v8726_v35, 1  ;;  %4440 = vrot.lane.b32.xlu0 %v8695_v34, %s6458_s24  ;;  %v8759_v4 = vpop.permute.xlu0 %4472 }
 0x52a   :  { %v8738_v37 = vld [vmem:[#allocation2 + $0x90] sm:$0xf]  ;;  %v4225_v58 = vld [vmem:[#allocation2 + $0x94] sm:$0x1]  ;;  %4682 = vrot.lane.b32.xlu1 %v8728_v53, %s6459_s25 }
 0x52b   :  { %v5784_v62 = vcombine.low %v8731_v43, %v8734_v55  ;;  %v8745_v21 = vcombine.low %v8738_v37, %v4225_v58  ;;  %v4423_v42 = vpop.permute.xlu1 %4422  ;;  %v6452_v58 = vld [vmem:[#allocation2 + $0x8] sm:$0xf] }
 0x52d   :  { %6230 = vmatprep.mubr.msk.bf16.mxu0 %vm1576_vm8, %v5784_v62  ;;  %v4573_v20 = vrot.slane %v8745_v21, 1  ;;  %4632 = vrot.lane.b32.xlu0 %v5752_v33, %s6457_s0  ;;  %v4402_v33 = vshll.u32 %v8683_v18, 16  ;;  %v4703_v62 = vsel %vm1576_vm8, %v6452_v58, %v4423_v42 }
 0x52e   :  { %4596 = vrot.lane.b32.xlu1 %v4464_v16, %s6458_s24 }
 0x52f   :  { %v5787_v5 = vcombine.low %v4573_v20, %v4697_v0  ;;  %v4404_v8 = vrot.slane %v4402_v33, 1  ;;  %v4400_v0 = vshrl.u32 %v8683_v18, 16  ;;  %v4812_v18 = vsel %vm1576_vm8, %v8377_v2, %v4575_v51 }
 0x531   :  { %6231 = vmatmul.mubr.msk.bf16.gmra.mxu0 %vm1576_vm8, %v5787_v5  ;;  %4492 = vrot.lane.b32.xlu0 %v4464_v16, %s6457_s0  ;;  %v8768_v16 = vor.u32 %v4397_v7, %v4393_v50  ;;  %v4749_v7 = vsel %vm1625_vm9, %v4703_v62, %v8705_v22  ;;  %v4815_v50 = vsel %vm1576_vm8, %v8425_v52, %v4577_v10 }
 0x532   :  { %4442 = vrot.lane.b32.xlu1 %v8728_v53, %s6458_s24  ;;  %v4859_v22 = vsel %vm1625_vm9, %v4812_v18, %v4613_v59  ;;  %v4781_v58 = vsel %vm1658_vm10, %v4749_v7, %v4523_v32  ;;  %v5755_v7 = vcombine.low %v8721_v57, %v8721_v57 }
 0x535   :  { %4544 = vrot.lane.b32.xlu0 %v5753_v54, %s6459_s25 }
 0x536   :  { %4634 = vrot.lane.b32.xlu1 %v5753_v54, %s6457_s0  ;;  %v8788_v54 = vor.u32 %v4404_v8, %v4400_v0  ;;  %v4409_v8 = vshll.u32 %v8717_v26, 16 }
 0x537   :  { %v8766_v44 = vpop.permute.xlu0 %4524  ;;  %v4615_v40 = vpop.permute.xlu1 %4614 }
 0x538   :  { %v4861_v62 = vsel %vm1625_vm9, %v4815_v50, %v4615_v40  ;;  %v4411_v10 = vrot.slane %v4409_v8, 1  ;;  %v4414_v50 = vshrl.u32 %v8726_v35, 16 }
 0x539   :  { %4684 = vrot.lane.b32.xlu0 %v8768_v16, %s6459_s25 }
 0x53a   :  { %4494 = vrot.lane.b32.xlu1 %v8693_v9, %s6457_s0 }
 0x53b   :  { %v4665_v45 = vpop.permute.xlu0 %4664 }
 0x53c   :  { %v8775_v1 = vpop.permute.xlu1 %4474 }
 0x53d   :  { %4598 = vrot.lane.b32.xlu0 %v8693_v9, %s6458_s24  ;;  %v6453_v9 = vld [vmem:[#allocation2] sm:$0xf] }
 0x53e   :  { %4546 = vrot.lane.b32.xlu1 %v5754_v56, %s6459_s25  ;;  %v4700_v42 = vsel %vm1576_vm8, %v6453_v9, %v8597_v15  ;;  %v4891_v9 = vsel %vm1658_vm10, %v4859_v22, %v4665_v45  ;;  %v4568_v22 = vshll.u32 %v8745_v21, 16 }
 0x53f   :  { %v8784_v5 = vpop.permute.xlu0 %4578  ;;  %v4747_v15 = vsel %vm1625_vm9, %v4700_v42, %v8621_v49  ;;  %v4407_v49 = vshrl.u32 %v8717_v26, 16  ;;  %v4416_v42 = vshll.u32 %v8726_v35, 16 }
 0x540   :  { %v8786_v27 = vpop.permute.xlu1 %4526  ;;  %v4779_v52 = vsel %vm1658_vm10, %v4747_v15, %v8703_v60  ;;  %v4570_v35 = vrot.slane %v4568_v22, 1 }
 0x541   :  { %4444 = vrot.lane.b32.xlu0 %v8768_v16, %s6458_s24  ;;  %v5764_v32 = vcombine.low %v4779_v52, %v4781_v58  ;;  %v8822_v60 = vor.u32 %v4411_v10, %v4407_v49  ;;  %v4418_v18 = vrot.slane %v4416_v42, 1 }
 0x542   :  { %4686 = vrot.lane.b32.xlu1 %v8788_v54, %s6459_s25 }
 0x543   :  { %v4425_v33 = vpop.permute.xlu0 %4424 }
 0x544   :  { %v4667_v0 = vpop.permute.xlu1 %4666 }
 0x545   :  { %v4893_v2 = vsel %vm1658_vm10, %v4861_v62, %v4667_v0  ;;  %4636 = vrot.lane.b32.xlu0 %v5754_v56, %s6457_s0  ;;  %v8838_v62 = vor.u32 %v4418_v18, %v4414_v50 }
 0x546   :  { %v5765_v51 = vcombine.low %v4891_v9, %v4893_v2  ;;  %4600 = vrot.lane.b32.xlu1 %v8731_v43, %s6458_s24  ;;  %v6454_v9 = vld [vmem:[#allocation2 + $0x10] sm:$0xf] }
 0x547   :  { %v4617_v59 = vpop.permute.xlu0 %4616  ;;  %v4706_v2 = vsel %vm1576_vm8, %v6454_v9, %v4425_v33 }
 0x548   :  { %v4581_v40 = vpop.permute.xlu1 %4580  ;;  %5248 = vmatprep.mubr.bf16.mxu1 %v5765_v51 }
 0x549   :  { %5249 = vmatmul.mubr.bf16.vlgmr.msra.gmra.mxu1 %v5764_v32  ;;  %4496 = vrot.lane.b32.xlu0 %v8731_v43, %s6457_s0  ;;  %v4566_v32 = vshrl.u32 %v8745_v21, 16  ;;  %v4821_v33 = vsel %vm1576_vm8, %v8510_v13, %v4581_v40 }
 0x54a   :  { %4446 = vrot.lane.b32.xlu1 %v8788_v54, %s6458_s24 }
 0x54b   :  { %v8820_v45 = vpop.permute.xlu0 %4476 }
 0x54c   :  { %v4427_v56 = vpop.permute.xlu1 %4426 }
 0x54d   :  { %4688 = vrot.lane.b32.xlu0 %v8822_v60, %s6459_s25  ;;  %v4709_v0 = vsel %vm1576_vm8, %v8412_v61, %v4427_v56  ;;  %v4818_v61 = vsel %vm1576_vm8, %v8457_v39, %v8784_v5 }
 0x54e   :  { %4638 = vrot.lane.b32.xlu1 %v5755_v7, %s6457_s0  ;;  %v4753_v51 = vsel %vm1625_vm9, %v4709_v0, %v8775_v1  ;;  %v8863_v1 = vor.u32 %v4570_v35, %v4566_v32  ;;  %v4863_v49 = vsel %vm1625_vm9, %v4818_v61, %v4617_v59 }
 0x54f   :  { %v8830_v43 = vpop.permute.xlu0 %4528  ;;  %v4785_v21 = vsel %vm1658_vm10, %v4753_v51, %v8786_v27 }
 0x550   :  { %v4619_v26 = vpop.permute.xlu1 %4618 }
 0x551   :  { %4602 = vrot.lane.b32.xlu0 %v8734_v55, %s6458_s24  ;;  %v4865_v56 = vsel %vm1625_vm9, %v4821_v33, %v4619_v26 }
 0x552   :  { %4498 = vrot.lane.b32.xlu1 %v8734_v55, %s6457_s0  ;;  %v5756_v55 = vcombine.low %v8738_v37, %v8738_v37  ;;  %v4751_v37 = vsel %vm1625_vm9, %v4706_v2, %v8759_v4 }
 0x553   :  { %v4669_v8 = vpop.permute.xlu0 %4668  ;;  %v4783_v13 = vsel %vm1658_vm10, %v4751_v37, %v8766_v44 }
 0x554   :  { %v4479_v58 = vpop.permute.xlu1 %4478  ;;  %v5767_v59 = vcombine.low %v4783_v13, %v4785_v21 }
 0x555   :  { %4448 = vrot.lane.b32.xlu0 %v8822_v60, %s6458_s24 }
 0x556   :  { %4690 = vrot.lane.b32.xlu1 %v8838_v62, %s6459_s25 }
 0x557   :  { %v4583_v15 = vpop.permute.xlu0 %4582 }
 0x558   :  { %v4531_v52 = vpop.permute.xlu1 %4530 }
 0x559   :  { %4640 = vrot.lane.b32.xlu0 %v5756_v55, %s6457_s0 }
 0x55a   :  { %4604 = vrot.lane.b32.xlu1 %v4573_v20, %s6458_s24  ;;  %v4895_v20 = vsel %vm1658_vm10, %v4863_v49, %v4669_v8 }
 0x55b   :  { %v4429_v10 = vpop.permute.xlu0 %4428 }
 0x55c   :  { %v4671_v42 = vpop.permute.xlu1 %4670  ;;  %v4712_v44 = vsel %vm1576_vm8, %v8444_v11, %v4429_v10 }
 0x55d   :  { %v4897_v39 = vsel %vm1658_vm10, %v4865_v56, %v4671_v42  ;;  %4692 = vrot.lane.b32.xlu0 %v8863_v1, %s6459_s25 }
 0x55e   :  { %v5768_v4 = vcombine.low %v4895_v20, %v4897_v39  ;;  %4450 = vrot.lane.b32.xlu1 %v8838_v62, %s6458_s24 }
 0x55f   :  { %v4621_v5 = vpop.permute.xlu0 %4620 }
 0x560   :  { %v4585_v40 = vpop.permute.xlu1 %4584  ;;  %5256 = vmatprep.mubr.bf16.mxu1 %v5768_v4 }
 0x561   :  { %5257 = vmatmul.mubr.bf16.gmra.mxu1 %v5767_v59  ;;  %4548 = vrot.lane.b32.xlu0 %v5755_v7, %s6459_s25  ;;  %v4824_v7 = vsel %vm1576_vm8, %v8529_v30, %v4583_v15  ;;  %v4827_v51 = vsel %vm1576_vm8, %v8551_v46, %v4585_v40 }
 0x562   :  { %4550 = vrot.lane.b32.xlu1 %v5756_v55, %s6459_s25  ;;  %v4755_v55 = vsel %vm1625_vm9, %v4712_v44, %v8820_v45  ;;  %v4867_v61 = vsel %vm1625_vm9, %v4824_v7, %v4621_v5 }
 0x563   :  { %v4481_v27 = vpop.permute.xlu0 %4480  ;;  %v4787_v30 = vsel %vm1658_vm10, %v4755_v55, %v8830_v43 }
 0x564   :  { %v4431_v26 = vpop.permute.xlu1 %4430 }
 0x565   :  { %v4715_v0 = vsel %vm1576_vm8, %v8459_v3, %v4431_v26 }
 0x566   :  { %v4757_v2 = vsel %vm1625_vm9, %v4715_v0, %v4479_v58 }
 0x567   :  { %v4533_v18 = vpop.permute.xlu0 %4532  ;;  %v4789_v11 = vsel %vm1658_vm10, %v4757_v2, %v4531_v52 }
 0x568   :  { %v4623_v50 = vpop.permute.xlu1 %4622  ;;  %v5770_v15 = vcombine.low %v4787_v30, %v4789_v11 }
 0x569   :  { %v4869_v3 = vsel %vm1625_vm9, %v4827_v51, %v4623_v50  ;;  %v6455_v51 = vld [vmem:[#allocation2 + $0x50] sm:$0xf] }
 0x56b   :  { %v4673_v8 = vpop.permute.xlu0 %4672 }
 0x56c   :  { %v4483_v22 = vpop.permute.xlu1 %4482  ;;  %v4899_v33 = vsel %vm1658_vm10, %v4867_v61, %v4673_v8 }
 0x56f   :  { %v4587_v35 = vpop.permute.xlu0 %4586 }
 0x570   :  { %v4535_v9 = vpop.permute.xlu1 %4534  ;;  %v4830_v43 = vsel %vm1576_vm8, %v8573_v12, %v4587_v35 }
 0x573   :  { %v4433_v32 = vpop.permute.xlu0 %4432 }
 0x574   :  { %v4675_v37 = vpop.permute.xlu1 %4674  ;;  %v4718_v56 = vsel %vm1576_vm8, %v8478_v47, %v4433_v32  ;;  %v4724_v32 = vsel %vm1576_vm8, %v6455_v51, %v8650_v38 }
 0x575   :  { %v4901_v58 = vsel %vm1658_vm10, %v4869_v3, %v4675_v37  ;;  %v4759_v39 = vsel %vm1625_vm9, %v4718_v56, %v4481_v27 }
 0x576   :  { %v5771_v10 = vcombine.low %v4899_v33, %v4901_v58 }
 0x577   :  { %v4625_v45 = vpop.permute.xlu0 %4624 }
 0x578   :  { %v4589_v49 = vpop.permute.xlu1 %4588  ;;  %5264 = vmatprep.mubr.bf16.mxu1 %v5771_v10  ;;  %v4763_v10 = vsel %vm1625_vm9, %v4724_v32, %v8675_v63 }
 0x579   :  { %5265 = vmatmul.mubr.bf16.gmra.mxu1 %v5770_v15  ;;  %v4833_v46 = vsel %vm1576_vm8, %v8608_v41, %v4589_v49  ;;  %v4871_v41 = vsel %vm1625_vm9, %v4830_v43, %v4625_v45 }
 0x57a   :  { %v4873_v21 = vsel %vm1625_vm9, %v4833_v46, %v8604_v28 }
 0x57b   :  { %v4537_v52 = vpop.permute.xlu0 %4536  ;;  %v4905_v28 = vsel %vm1658_vm10, %v4873_v21, %v8625_v29 }
 0x57c   :  { %v4435_v42 = vpop.permute.xlu1 %4434 }
 0x57d   :  { %v4721_v20 = vsel %vm1576_vm8, %v8486_v17, %v4435_v42  ;;  %v4791_v17 = vsel %vm1658_vm10, %v4759_v39, %v4533_v18 }
 0x57e   :  { %v4761_v4 = vsel %vm1625_vm9, %v4721_v20, %v4483_v22 }
 0x57f   :  { %v4677_v13 = vpop.permute.xlu0 %4676  ;;  %v4793_v47 = vsel %vm1658_vm10, %v4761_v4, %v4535_v9 }
 0x580   :  { %v4903_v5 = vsel %vm1658_vm10, %v4871_v41, %v4677_v13  ;;  %v4487_v59 = vpop.permute.xlu1 %4486  ;;  %v5773_v26 = vcombine.low %v4791_v17, %v4793_v47 }
 0x581   :  { %v5774_v40 = vcombine.low %v4903_v5, %v4905_v28 }
 0x583   :  { %v4591_v12 = vpop.permute.xlu0 %4590  ;;  %5272 = vmatprep.mubr.bf16.mxu1 %v5774_v40 }
 0x584   :  { %v4539_v27 = vpop.permute.xlu1 %4538  ;;  %5273 = vmatmul.mubr.bf16.gmra.mxu1 %v5773_v26  ;;  %v4836_v61 = vsel %vm1576_vm8, %v8665_v23, %v4591_v12  ;;  %v4795_v23 = vsel %vm1658_vm10, %v4763_v10, %v4537_v52 }
 0x587   :  { %v4629_v50 = vpop.permute.xlu0 %4628 }
 0x588   :  { %v4593_v8 = vpop.permute.xlu1 %4592  ;;  %v4875_v11 = vsel %vm1625_vm9, %v4836_v61, %v4629_v50 }
 0x589   :  { %v4839_v3 = vsel %vm1576_vm8, %v8695_v34, %v4593_v8 }
 0x58b   :  { %v4489_v22 = vpop.permute.xlu0 %4488 }
 0x58c   :  { %v4439_v0 = vpop.permute.xlu1 %4438 }
 0x58d   :  { %v4727_v29 = vsel %vm1576_vm8, %v8584_v48, %v4439_v0 }
 0x58e   :  { %v4765_v18 = vsel %vm1625_vm9, %v4727_v29, %v4487_v59 }
 0x58f   :  { %v4541_v35 = vpop.permute.xlu0 %4540  ;;  %v4797_v58 = vsel %vm1658_vm10, %v4765_v18, %v4539_v27 }
 0x590   :  { %v4631_v44 = vpop.permute.xlu1 %4630  ;;  %v5776_v34 = vcombine.low %v4795_v23, %v4797_v58 }
 0x591   :  { %v4877_v33 = vsel %vm1625_vm9, %v4839_v3, %v4631_v44 }
 0x593   :  { %v4681_v9 = vpop.permute.xlu0 %4680 }
 0x594   :  { %v4491_v2 = vpop.permute.xlu1 %4490  ;;  %v4907_v30 = vsel %vm1658_vm10, %v4875_v11, %v4681_v9 }
 0x597   :  { %v4595_v7 = vpop.permute.xlu0 %4594 }
 0x598   :  { %v4543_v55 = vpop.permute.xlu1 %4542  ;;  %v4842_v13 = vsel %vm1576_vm8, %v8728_v53, %v4595_v7 }
 0x59b   :  { %v4441_v37 = vpop.permute.xlu0 %4440 }
 0x59c   :  { %v4683_v48 = vpop.permute.xlu1 %4682  ;;  %v4730_v4 = vsel %vm1576_vm8, %v8611_v31, %v4441_v37 }
 0x59d   :  { %v4909_v38 = vsel %vm1658_vm10, %v4877_v33, %v4683_v48  ;;  %v4767_v47 = vsel %vm1625_vm9, %v4730_v4, %v4489_v22 }
 0x59e   :  { %v5777_v45 = vcombine.low %v4907_v30, %v4909_v38  ;;  %v4799_v53 = vsel %vm1658_vm10, %v4767_v47, %v4541_v35 }
 0x59f   :  { %v4633_v15 = vpop.permute.xlu0 %4632 }
 0x5a0   :  { %v4597_v49 = vpop.permute.xlu1 %4596  ;;  %5280 = vmatprep.mubr.bf16.mxu1 %v5777_v45  ;;  %v4879_v59 = vsel %vm1625_vm9, %v4842_v13, %v4633_v15 }
 0x5a1   :  { %5281 = vmatmul.mubr.bf16.gmra.mxu1 %v5776_v34  ;;  %v4845_v5 = vsel %vm1576_vm8, %v8768_v16, %v4597_v49 }
 0x5a3   :  { %v4493_v46 = vpop.permute.xlu0 %4492 }
 0x5a4   :  { %v4443_v56 = vpop.permute.xlu1 %4442 }
 0x5a5   :  { %v4733_v63 = vsel %vm1576_vm8, %v8633_v14, %v4443_v56 }
 0x5a6   :  { %v4769_v41 = vsel %vm1625_vm9, %v4733_v63, %v4491_v2  ;;  %v6220_v63 = vpop.f32.mrf.mxu0 }
 0x5a7   :  { %v4545_v42 = vpop.permute.xlu0 %4544  ;;  %v4801_v17 = vsel %vm1658_vm10, %v4769_v41, %v4543_v55 }
 0x5a8   :  { %v4635_v21 = vpop.permute.xlu1 %4634  ;;  %v5779_v50 = vcombine.low %v4799_v53, %v4801_v17 }
 0x5a9   :  { %v4881_v14 = vsel %vm1625_vm9, %v4845_v5, %v4635_v21 }
 0x5ab   :  { %v4685_v20 = vpop.permute.xlu0 %4684 }
 0x5ac   :  { %v4495_v43 = vpop.permute.xlu1 %4494  ;;  %v4911_v31 = vsel %vm1658_vm10, %v4879_v59, %v4685_v20 }
 0x5af   :  { %v4599_v39 = vpop.permute.xlu0 %4598 }
 0x5b0   :  { %v4547_v52 = vpop.permute.xlu1 %4546  ;;  %v4848_v35 = vsel %vm1576_vm8, %v8788_v54, %v4599_v39  ;;  %v5347_v39 = vpop.f32.mrf.mxu0 }
 0x5b2   :  { %v6221_v47 = vpop.f32.mrf.mxu0 }
 0x5b3   :  { %v4445_v28 = vpop.permute.xlu0 %4444 }
 0x5b4   :  { %v4687_v40 = vpop.permute.xlu1 %4686  ;;  %v4736_v29 = vsel %vm1576_vm8, %v8662_v6, %v4445_v28 }
 0x5b5   :  { %v4913_v26 = vsel %vm1658_vm10, %v4881_v14, %v4687_v40  ;;  %v4771_v18 = vsel %vm1625_vm9, %v4736_v29, %v4493_v46  ;;  %v5350_v40 = vpop.f32.mrf.mxu0 }
 0x5b6   :  { %v5780_v12 = vcombine.low %v4911_v31, %v4913_v26  ;;  %v4803_v54 = vsel %vm1658_vm10, %v4771_v18, %v4545_v42 }
 0x5b7   :  { %v4637_v27 = vpop.permute.xlu0 %4636 }
 0x5b8   :  { %v4601_v8 = vpop.permute.xlu1 %4600  ;;  %5288 = vmatprep.mubr.bf16.mxu1 %v5780_v12  ;;  %v4883_v61 = vsel %vm1625_vm9, %v4848_v35, %v4637_v27 }
 0x5b9   :  { %5289 = vmatmul.mubr.bf16.gmra.mxu1 %v5779_v50  ;;  %v4851_v51 = vsel %vm1576_vm8, %v8822_v60, %v4601_v8 }
 0x5bb   :  { %v4497_v16 = vpop.permute.xlu0 %4496 }
 0x5bc   :  { %v4447_v22 = vpop.permute.xlu1 %4446 }
 0x5bd   :  { %v4739_v9 = vsel %vm1576_vm8, %v8670_v25, %v4447_v22 }
 0x5be   :  { %v4773_v55 = vsel %vm1625_vm9, %v4739_v9, %v4495_v43 }
 0x5bf   :  { %v4689_v0 = vpop.permute.xlu0 %4688  ;;  %v4805_v37 = vsel %vm1658_vm10, %v4773_v55, %v4547_v52 }
 0x5c0   :  { %v4639_v44 = vpop.permute.xlu1 %4638  ;;  %v4915_v6 = vsel %vm1658_vm10, %v4883_v61, %v4689_v0  ;;  %v5782_v58 = vcombine.low %v4803_v54, %v4805_v37 }
 0x5c1   :  { %v4885_v25 = vsel %vm1625_vm9, %v4851_v51, %v4639_v44  ;;  %v6224_v44 = vpop.f32.mrf.mxu0 }
 0x5c3   :  { %v4603_v2 = vpop.permute.xlu0 %4602 }
 0x5c4   :  { %v4499_v7 = vpop.permute.xlu1 %4498  ;;  %v4854_v30 = vsel %vm1576_vm8, %v8838_v62, %v4603_v2  ;;  %v5363_v2 = vpop.f32.mrf.mxu0 }
 0x5c6   :  { %v6225_v18 = vpop.f32.mrf.mxu0 }
 0x5c7   :  { %v4449_v32 = vpop.permute.xlu0 %4448 }
 0x5c8   :  { %v4691_v3 = vpop.permute.xlu1 %4690  ;;  %v4742_v15 = vsel %vm1576_vm8, %v8709_v24, %v4449_v32 }
 0x5c9   :  { %v4917_v11 = vsel %vm1658_vm10, %v4885_v25, %v4691_v3  ;;  %v4775_v62 = vsel %vm1625_vm9, %v4742_v15, %v4497_v16  ;;  %v5366_v3 = vpop.f32.mrf.mxu0 }
 0x5ca   :  { %v5783_v33 = vcombine.low %v4915_v6, %v4917_v11 }
 0x5cb   :  { %v4641_v48 = vpop.permute.xlu0 %4640 }
 0x5cc   :  { %v4605_v10 = vpop.permute.xlu1 %4604  ;;  %5296 = vmatprep.mubr.bf16.mxu1 %v5783_v33  ;;  %v4887_v23 = vsel %vm1625_vm9, %v4854_v30, %v4641_v48 }
 0x5cd   :  { %v4857_v60 = vsel %vm1576_vm8, %v8863_v1, %v4605_v10  ;;  %5297 = vmatmul.mubr.bf16.gmra.mxu1 %v5782_v58 }
 0x5ce   :  { %v4889_v38 = vsel %vm1625_vm9, %v4857_v60, %v8652_v19 }
 0x5cf   :  { %v4693_v45 = vpop.permute.xlu0 %4692  ;;  %v4921_v49 = vsel %vm1658_vm10, %v4889_v38, %v8677_v36 }
 0x5d0   :  { %v4919_v34 = vsel %vm1658_vm10, %v4887_v23, %v4693_v45  ;;  %v4451_v46 = vpop.permute.xlu1 %4450 }
 0x5d1   :  { %v5786_v1 = vcombine.low %v4919_v34, %v4921_v49  ;;  %v4745_v56 = vsel %vm1576_vm8, %v8721_v57, %v4451_v46  ;;  %v8985_v57 = vld [vmem:[%s9058_s7] ss:$0 sm:$0xff] }
 0x5d2   :  { %v4777_v21 = vsel %vm1625_vm9, %v4745_v56, %v4499_v7 }
 0x5d3   :  { %v4549_v42 = vpop.permute.xlu0 %4548  ;;  %5304 = vmatprep.mubr.bf16.mxu1 %v5786_v1 }
 0x5d4   :  { %v4807_v19 = vsel %vm1658_vm10, %v4775_v62, %v4549_v42  ;;  %v4551_v20 = vpop.permute.xlu1 %4550 }
 0x5d5   :  { %v4809_v24 = vsel %vm1658_vm10, %v4777_v21, %v4551_v20 }
 0x5d6   :  { %v5785_v43 = vcombine.low %v4807_v19, %v4809_v24 }
 0x5d8   :  { %5305 = vmatmul.mubr.bf16.gmra.mxu1 %v5785_v43 }
 0x5e2   :  { %v6228_v23 = vpop.f32.mrf.mxu0 }
 0x5e4   :  { %v5379_v15 = vpop.f32.mrf.mxu0 }
 0x5e6   :  { %v6229_v56 = vpop.f32.mrf.mxu0 }
 0x5e8   :  { %v5382_v20 = vpop.f32.mrf.mxu0 }
 0x609   :  { %v6116_v36 = vpop.f32.mrf.mxu1 }
 0x60b   :  { %v6117_v4 = vpop.f32.mrf.mxu1 }
 0x60c   :  { %v6118_v52 = vadd.f32 %v6117_v4, %v6116_v36 }
 0x60d   :  { %v6119_v41 = vpop.f32.mrf.mxu1 }
 0x60e   :  { %v5251_v13 = vadd.f32 %v6118_v52, %v8985_v57 }
 0x60f   :  { %v6120_v5 = vpop.f32.mrf.mxu1 }
 0x610   :  { %v5348_v28 = vadd.f32 %v5347_v39, %v5251_v13  ;;  %v6121_v59 = vadd.f32 %v6120_v5, %v6119_v41 }
 0x612   :  { %5410 = vst [vmem:[%s9060_s9] sm:$0xff] %v5348_v28  ;;  %v5254_v14 = vadd.f32 %v6121_v59, %v8985_v57  ;;  %v6232_v28 = vpop.f32.mrf.mxu0 }
 0x614   :  { %v5351_v17 = vadd.f32 %v5350_v40, %v5254_v14  ;;  %v5395_v14 = vpop.f32.mrf.mxu0 }
 0x616   :  { %5411 = vst [vmem:[%s9060_s9 + $0x8] sm:$0xff] %v5351_v17 }
 0x621   :  { %v6122_v31 = vpop.f32.mrf.mxu1 }
 0x623   :  { %v6123_v26 = vpop.f32.mrf.mxu1 }
 0x624   :  { %v6124_v12 = vadd.f32 %v6123_v26, %v6122_v31 }
 0x625   :  { %v6125_v53 = vpop.f32.mrf.mxu1 }
 0x626   :  { %v5259_v27 = vadd.f32 %v6124_v12, %v8985_v57  ;;  %v6233_v12 = vpop.f32.mrf.mxu0 }
 0x627   :  { %v6126_v50 = vpop.f32.mrf.mxu1 }
 0x628   :  { %v5356_v8 = vadd.f32 %v6220_v63, %v5259_v27  ;;  %v6127_v16 = vadd.f32 %v6126_v50, %v6125_v53 }
 0x62a   :  { %5412 = vst [vmem:[%s9060_s9 + $0x10] sm:$0xff] %v5356_v8  ;;  %v5262_v22 = vadd.f32 %v6127_v16, %v8985_v57  ;;  %v5398_v16 = vpop.f32.mrf.mxu0 }
 0x62c   :  { %v5359_v0 = vadd.f32 %v6221_v47, %v5262_v22 }
 0x62e   :  { %5413 = vst [vmem:[%s9060_s9 + $0x18] sm:$0xff] %v5359_v0 }
 0x639   :  { %v6128_v9 = vpop.f32.mrf.mxu1 }
 0x63b   :  { %v6129_v29 = vpop.f32.mrf.mxu1 }
 0x63c   :  { %v6130_v7 = vadd.f32 %v6129_v29, %v6128_v9 }
 0x63d   :  { %v6131_v55 = vpop.f32.mrf.mxu1 }
 0x63e   :  { %v5267_v35 = vadd.f32 %v6130_v7, %v8985_v57 }
 0x63f   :  { %v6132_v51 = vpop.f32.mrf.mxu1 }
 0x640   :  { %v5364_v32 = vadd.f32 %v5363_v2, %v5267_v35  ;;  %v6133_v61 = vadd.f32 %v6132_v51, %v6131_v55 }
 0x642   :  { %5414 = vst [vmem:[%s9060_s9 + $0x20] sm:$0xff] %v5364_v32  ;;  %v5270_v25 = vadd.f32 %v6133_v61, %v8985_v57 }
 0x644   :  { %v5367_v37 = vadd.f32 %v5366_v3, %v5270_v25  ;;  %v6134_v6 = vpop.f32.mrf.mxu1 }
 0x646   :  { %5415 = vst [vmem:[%s9060_s9 + $0x28] sm:$0xff] %v5367_v37  ;;  %v6135_v11 = vpop.f32.mrf.mxu1 }
 0x647   :  { %v6136_v33 = vadd.f32 %v6135_v11, %v6134_v6 }
 0x648   :  { %v6137_v54 = vpop.f32.mrf.mxu1 }
 0x649   :  { %v5275_v48 = vadd.f32 %v6136_v33, %v8985_v57 }
 0x64a   :  { %v6138_v58 = vpop.f32.mrf.mxu1 }
 0x64b   :  { %v5372_v10 = vadd.f32 %v6224_v44, %v5275_v48  ;;  %v6139_v60 = vadd.f32 %v6138_v58, %v6137_v54 }
 0x64d   :  { %5416 = vst [vmem:[%s9060_s9 + $0x30] sm:$0xff] %v5372_v10  ;;  %v5278_v30 = vadd.f32 %v6139_v60, %v8985_v57 }
 0x64f   :  { %v5375_v38 = vadd.f32 %v6225_v18, %v5278_v30 }
 0x651   :  { %5417 = vst [vmem:[%s9060_s9 + $0x38] sm:$0xff] %v5375_v38 }
 0x661   :  { %v6140_v45 = vpop.f32.mrf.mxu1 }
 0x663   :  { %v6141_v34 = vpop.f32.mrf.mxu1 }
 0x664   :  { %v6142_v49 = vadd.f32 %v6141_v34, %v6140_v45 }
 0x665   :  { %v6143_v46 = vpop.f32.mrf.mxu1 }
 0x666   :  { %v5283_v1 = vadd.f32 %v6142_v49, %v8985_v57 }
 0x667   :  { %v6144_v62 = vpop.f32.mrf.mxu1 }
 0x668   :  { %v5380_v42 = vadd.f32 %v5379_v15, %v5283_v1  ;;  %v6145_v19 = vadd.f32 %v6144_v62, %v6143_v46 }
 0x66a   :  { %5418 = vst [vmem:[%s9060_s9 + $0x40] sm:$0xff] %v5380_v42  ;;  %v5286_v21 = vadd.f32 %v6145_v19, %v8985_v57 }
 0x66c   :  { %v5383_v24 = vadd.f32 %v5382_v20, %v5286_v21 }
 0x66e   :  { %5419 = vst [vmem:[%s9060_s9 + $0x48] sm:$0xff] %v5383_v24 }
 0x679   :  { %v6146_v43 = vpop.f32.mrf.mxu1 }
 0x67b   :  { %v6147_v63 = vpop.f32.mrf.mxu1 }
 0x67c   :  { %v6148_v36 = vadd.f32 %v6147_v63, %v6146_v43 }
 0x67d   :  { %v6149_v39 = vpop.f32.mrf.mxu1 }
 0x67e   :  { %v5291_v4 = vadd.f32 %v6148_v36, %v8985_v57 }
 0x67f   :  { %v6150_v52 = vpop.f32.mrf.mxu1 }
 0x680   :  { %v5388_v41 = vadd.f32 %v6228_v23, %v5291_v4  ;;  %v6151_v13 = vadd.f32 %v6150_v52, %v6149_v39 }
 0x682   :  { %5420 = vst [vmem:[%s9060_s9 + $0x50] sm:$0xff] %v5388_v41  ;;  %v5294_v47 = vadd.f32 %v6151_v13, %v8985_v57 }
 0x684   :  { %v5391_v5 = vadd.f32 %v6229_v56, %v5294_v47 }
 0x686   :  { %5421 = vst [vmem:[%s9060_s9 + $0x58] sm:$0xff] %v5391_v5 }
 0x68d   :  { %v6152_v59 = vpop.f32.mrf.mxu1 }
 0x68f   :  { %v6153_v40 = vpop.f32.mrf.mxu1 }
 0x690   :  { %v6154_v17 = vadd.f32 %v6153_v40, %v6152_v59 }
 0x691   :  { %v6155_v31 = vpop.f32.mrf.mxu1 }
 0x692   :  { %v5299_v26 = vadd.f32 %v6154_v17, %v8985_v57 }
 0x693   :  { %v6156_v53 = vpop.f32.mrf.mxu1 }
 0x694   :  { %v5396_v27 = vadd.f32 %v5395_v14, %v5299_v26  ;;  %v6157_v50 = vadd.f32 %v6156_v53, %v6155_v31 }
 0x696   :  { %5422 = vst [vmem:[%s9060_s9 + $0x60] sm:$0xff] %v5396_v27  ;;  %v5302_v8 = vadd.f32 %v6157_v50, %v8985_v57 }
 0x698   :  { %v5399_v22 = vadd.f32 %v5398_v16, %v5302_v8  ;;  %v6158_v0 = vpop.f32.mrf.mxu1 }
 0x69a   :  { %5423 = vst [vmem:[%s9060_s9 + $0x68] sm:$0xff] %v5399_v22  ;;  %v6159_v44 = vpop.f32.mrf.mxu1 }
 0x69b   :  { %v6160_v9 = vadd.f32 %v6159_v44, %v6158_v0 }
 0x69c   :  { %v6161_v2 = vpop.f32.mrf.mxu1 }
 0x69d   :  { %v5307_v29 = vadd.f32 %v6160_v9, %v8985_v57 }
 0x69e   :  { %v6162_v7 = vpop.f32.mrf.mxu1 }
 0x69f   :  { %v5404_v55 = vadd.f32 %v6232_v28, %v5307_v29  ;;  %v6163_v35 = vadd.f32 %v6162_v7, %v6161_v2 }
 0x6a1   :  { %5424 = vst [vmem:[%s9060_s9 + $0x70] sm:$0xff] %v5404_v55  ;;  %v5310_v18 = vadd.f32 %v6163_v35, %v8985_v57 }
 0x6a3   :  { %v5407_v51 = vadd.f32 %v6233_v12, %v5310_v18 }
 0x6a5   :  { %5425 = vst [vmem:[%s9060_s9 + $0x78] sm:$0xff] %v5407_v51 }

</bundles_post_ra>
